<compile_context>
chip_gen: v7x
topology: tpu7x:2x2x1
jax: 0.10.0
libtpu: 0.0.40
codegen_flags: <defaults>
</compile_context>

<pallas_src>
import functools

import jax
import jax.numpy as jnp
from jax.experimental import pallas as pl
from jax.experimental.pallas import tpu as pltpu


KSIZE = 5
STRIDE = 2
PAD = 2
BN_EPS = 1e-5
LEAKY_SLOPE = 0.2


def _round_up(x, m):
    return (x + m - 1) // m * m


def _conv_out(hw):
    return (hw + 2 * PAD - KSIZE) // STRIDE + 1


def _leaky(x):
    return jnp.where(x >= 0.0, x, LEAKY_SLOPE * x)


# ----------------------------- fused Pallas kernel ---------------------------

def make_fused_kernel(cfg0, hcfgs, *, batch, n_in, h_last, w_last, bf_row):
    """Ref order: patches0, w0, w_hidden[0..], wf, vecs, out,
                  [pad_scratch_i, patch_scratch_i] per hidden layer."""
    n_hidden = len(hcfgs)

    def kernel(*refs):
        in_refs = refs[:n_in]
        o_ref = refs[n_in]
        scratch = refs[n_in + 1:]

        p_ref, w0_ref = in_refs[0], in_refs[1]
        w_refs = in_refs[2:2 + n_hidden]
        wf_ref = in_refs[2 + n_hidden]
        vec_ref = in_refs[3 + n_hidden]

        # ---- layer 0: one bf16 GEMM on pre-extracted, lane-padded patches ----
        y = jnp.dot(p_ref[...], w0_ref[...], preferred_element_type=jnp.float32)
        if cfg0["add_bias"]:
            y = y + vec_ref[0:1, :cfg0["c_out"]]
        if cfg0["act"]:
            y = _leaky(y)

        # ---- hidden layers: in-kernel strided im2col + ONE K=25*C_in GEMM ----
        for li, cfg in enumerate(hcfgs):
            pscr = scratch[2 * li]        # zero-padded input feature map (f32)
            pref = scratch[2 * li + 1]    # patch matrix, K tap-major on lanes
            h_in, w_in, c_in = cfg["h_in"], cfg["w_in"], cfg["c_in"]
            h_out, w_out, c_out = cfg["h_out"], cfg["w_out"], cfg["c_out"]

            # padding handled once here (no in-kernel lax.pad needed)
            pscr[...] = jnp.zeros(pscr.shape, pscr.dtype)
            pscr[:, PAD:PAD + h_in, PAD:PAD + w_in, :] = y.reshape(
                batch, h_in, w_in, c_in)

            # 25 static stride-2 window copies; every element of pref is written
            for ki in range(KSIZE):
                for kj in range(KSIZE):
                    t = ki * KSIZE + kj
                    pref[:, :, :, t * c_in:(t + 1) * c_in] = pscr[
                        :, pl.ds(ki, h_out, stride=STRIDE),
                        pl.ds(kj, w_out, stride=STRIDE), :]

            # single fused GEMM, K = 25*C_in (one bf16 cast per layer)
            lhs = pref[...].reshape(batch * h_out * w_out,
                                    KSIZE * KSIZE * c_in).astype(jnp.bfloat16)
            acc = jnp.dot(lhs, w_refs[li][...],
                          preferred_element_type=jnp.float32)

            if cfg["use_bn"]:
                # training-mode BN: one-pass batch stats over rows (= N,H,W),
                # biased variance clamped at 0, folded scale/shift.
                g = vec_ref[cfg["g_row"]:cfg["g_row"] + 1, :c_out]
                bt = vec_ref[cfg["b_row"]:cfg["b_row"] + 1, :c_out]
                mu = jnp.mean(acc, axis=0, keepdims=True)
                var = jnp.mean(acc * acc, axis=0, keepdims=True) - mu * mu
                var = jnp.maximum(var, 0.0)
                scale = g * jax.lax.rsqrt(var + BN_EPS)
                y = acc * scale + (bt - mu * scale)
            else:
                y = acc   # last conv layer: bias folded into the final 1x1 bias
            if cfg["act"]:
                y = _leaky(y)

        # ---- final 1x1 conv first (lane-dense), then per-sample spatial mean --
        # mean and a 1x1 conv commute; bias of the last conv + final conv bias
        # were folded into vecs[bf_row] in the wrapper.
        n_glp = o_ref.shape[1]
        z = jnp.dot(y, wf_ref[...], preferred_element_type=jnp.float32)
        bf = vec_ref[bf_row:bf_row + 1, :n_glp]
        hw = h_last * w_last
        for b in range(batch):
            o_ref[b:b + 1, :] = jnp.mean(
                z[b * hw:(b + 1) * hw, :], axis=0, keepdims=True) + bf

    return kernel


# ----------------------------- wrapper helpers --------------------------------

def im2col(x_nhwc, kh, kw, stride, pad):
    """Layout glue, first layer only: 5x5 stride-2 patches -> [M, KH*KW*Cin]."""
    x = jnp.pad(x_nhwc, ((0, 0), (pad, pad), (pad, pad), (0, 0)))
    n, hp, wp, c = x.shape
    ho = (hp - kh) // stride + 1
    wo = (wp - kw) // stride + 1
    cols = []
    for i in range(kh):
        for j in range(kw):
            cols.append(jax.lax.slice(
                x, (0, i, j, 0),
                (n, i + stride * (ho - 1) + 1, j + stride * (wo - 1) + 1, c),
                (1, stride, stride, 1)))
    patches = jnp.stack(cols, axis=3)                 # (N, Ho, Wo, KH*KW, C)
    return patches.reshape(n * ho * wo, kh * kw * c)


# ----------------------------- params & forward -------------------------------

def init_params(key, *, nc, ndf, nDep, nGL):
    """Synthetic parameters matching the module's shapes / PyTorch default init.
    Conv weights are stored tap-major as (25, Cin, Cout); PyTorch (Cout,Cin,KH,KW)
    maps to this via permute(2,3,1,0).reshape(25, Cin, Cout)."""
    params = {"conv": [], "final": None}
    of = nc
    for i in range(nDep):
        nf = ndf * 2 ** i
        key, kw_, kb_ = jax.random.split(key, 3)
        fan_in = of * KSIZE * KSIZE
        bound = 1.0 / (fan_in ** 0.5)
        w = jax.random.uniform(kw_, (KSIZE * KSIZE, of, nf), jnp.float32, -bound, bound)
        b = jax.random.uniform(kb_, (1, nf), jnp.float32, -bound, bound)
        gamma = jnp.ones((1, nf), jnp.float32)        # BatchNorm2d default init
        beta = jnp.zeros((1, nf), jnp.float32)
        params["conv"].append((w, b, gamma, beta))
        of = nf
    key, kw_, kb_ = jax.random.split(key, 3)
    bound = 1.0 / (of ** 0.5)
    wf = jax.random.uniform(kw_, (of, nGL), jnp.float32, -bound, bound)   # 1x1 conv
    bf = jax.random.uniform(kb_, (1, nGL), jnp.float32, -bound, bound)
    params["final"] = (wf, bf)
    return params


def reconstructor_forward(x_nchw, params, *, nDep):
    """Fused forward: ONE pallas_call for all convs + BN/LeakyReLU + mean + 1x1."""
    n = x_nchw.shape[0]
    x = jnp.transpose(x_nchw, (0, 2, 3, 1))          # NCHW -> NHWC (layout glue)
    h, w = x.shape[1], x.shape[2]

    sizes = [(h, w)]
    for _ in range(nDep):
        hh, ww = sizes[-1]
        sizes.append((_conv_out(hh), _conv_out(ww)))
    h_last, w_last = sizes[nDep]

    # ---- layer 0: wrapper-side im2col of the tiny input; K padded to 128 ----
    w0, b0, _, _ = params["conv"][0]
    c0 = w0.shape[2]
    k0 = KSIZE * KSIZE * w0.shape[1]
    k0p = _round_up(k0, 128)
    patches = im2col(x, KSIZE, KSIZE, STRIDE, PAD)                      # (M0, k0) f32
    patches = jnp.pad(patches, ((0, 0), (0, k0p - k0))).astype(jnp.bfloat16)
    w0_2d = jnp.pad(w0.reshape(k0, c0),
                    ((0, k0p - k0), (0, 0))).astype(jnp.bfloat16)
    cfg0 = {"c_out": c0, "act": nDep > 1, "add_bias": nDep > 1}

    inputs = [patches, w0_2d]
    hcfgs = []
    scratch_shapes = []

    # ---- packed per-layer vectors: one consolidated (R, 128) f32 input ----
    wf, bf = params["final"]
    n_gl = wf.shape[1]
    n_glp = _round_up(n_gl, 128)                     # lane-dense output width
    max_c = max(p[0].shape[2] for p in params["conv"])
    vp = max(n_glp, _round_up(max_c, 128))

    def _vec_row(v):
        return jnp.pad(v.astype(jnp.float32), ((0, 0), (0, vp - v.shape[1])))

    vec_rows = [_vec_row(b0)]                        # row 0: layer-0 bias
    row = 1

    # ---- hidden layers: flattened bf16 weights + two small VMEM scratches ----
    for i in range(1, nDep):
        w_i, _, gamma_i, beta_i = params["conv"][i]
        c_in, c_out = w_i.shape[1], w_i.shape[2]
        (h_in, w_in), (h_out, w_out) = sizes[i], sizes[i + 1]
        use_bn = (i != nDep - 1)                     # (i != 0 always true here)
        cfg = {"h_in": h_in, "w_in": w_in, "c_in": c_in,
               "h_out": h_out, "w_out": w_out, "c_out": c_out,
               "use_bn": use_bn, "act": i < nDep - 1}
        if use_bn:       # conv bias omitted: cancels under batch-stat BN
            cfg["g_row"], cfg["b_row"] = row, row + 1
            vec_rows += [_vec_row(gamma_i), _vec_row(beta_i)]
            row += 2
        hcfgs.append(cfg)
        inputs.append(w_i.reshape(KSIZE * KSIZE * c_in, c_out).astype(jnp.bfloat16))
        scratch_shapes += [
            pltpu.VMEM((n, h_in + 2 * PAD, w_in + 2 * PAD, c_in), jnp.float32),
            pltpu.VMEM((n, h_out, w_out, KSIZE * KSIZE * c_in), jnp.float32),
        ]

    # ---- final 1x1 conv; fold the last conv's bias into the final bias ----
    b_last = params["conv"][nDep - 1][1]
    bf_eff = jnp.matmul(b_last, wf) + bf             # exact fold (mean/1x1 commute)
    wf_pad = jnp.pad(wf, ((0, 0), (0, n_glp - n_gl)))
    bf_row = row
    vec_rows.append(_vec_row(bf_eff))
    inputs += [wf_pad, jnp.concatenate(vec_rows, axis=0)]

    kernel = make_fused_kernel(cfg0, hcfgs, batch=n, n_in=len(inputs),
                               h_last=h_last, w_last=w_last, bf_row=bf_row)

    out = pl.pallas_call(
        kernel,
        out_shape=jax.ShapeDtypeStruct((n, n_glp), jnp.float32),
        grid=(1,),
        in_specs=[pl.BlockSpec(a.shape, lambda i: (0, 0)) for a in inputs],
        out_specs=pl.BlockSpec((n, n_glp), lambda i: (0, 0)),
        scratch_shapes=scratch_shapes,
        compiler_params=pltpu.CompilerParams(
            dimension_semantics=("arbitrary",),
            vmem_limit_bytes=32 * 1024 * 1024),
    )(*inputs)

    return out[:, :n_gl].reshape(n, n_gl, 1, 1)      # PyTorch NCHW (N, nGL, 1, 1)


# ----------------------------- main -------------------------------------------

if __name__ == "__main__":
    # Small shapes consistent with the module: nc=3 input channels, 16x16 spatial.
    N, nc, H, W = 2, 3, 16, 16
    ndf, nDep, nGL = 8, 3, 16

    key = jax.random.PRNGKey(0)
    key, kx = jax.random.split(key)
    x = jax.random.normal(kx, (N, nc, H, W), jnp.float32)

    params = init_params(key, nc=nc, ndf=ndf, nDep=nDep, nGL=nGL)

    fwd = jax.jit(functools.partial(reconstructor_forward, nDep=nDep))
    out = jax.block_until_ready(fwd(x, params))

    assert out.shape == (N, nGL, 1, 1), out.shape
    assert out.dtype == jnp.float32
    print("KERNEL_OK")
</pallas_src>

<mosaic_0001>
module attributes {stable_mosaic.version = 11 : i64} {
  func.func @kernel(%arg0: i32, %arg1: memref<128x128xbf16, #tpu.memory_space<vmem>>, %arg2: memref<128x8xbf16, #tpu.memory_space<vmem>>, %arg3: memref<200x16xbf16, #tpu.memory_space<vmem>>, %arg4: memref<400x32xbf16, #tpu.memory_space<vmem>>, %arg5: memref<32x128xf32, #tpu.memory_space<vmem>>, %arg6: memref<4x128xf32, #tpu.memory_space<vmem>>, %arg7: memref<2x128xf32, #tpu.memory_space<vmem>>, %arg8: memref<2x12x12x8xf32, #tpu.memory_space<vmem>>, %arg9: memref<2x4x4x200xf32, #tpu.memory_space<vmem>>, %arg10: memref<2x8x8x16xf32, #tpu.memory_space<vmem>>, %arg11: memref<2x2x2x400xf32, #tpu.memory_space<vmem>>) attributes {dimension_semantics = [#tpu.dimension_semantics<arbitrary>], iteration_bounds = array<i64: 1>, scalar_prefetch = 0 : i64, scratch_operands = 4 : i64, tpu.core_type = #tpu.core_type<tc>, window_params = [{pipeline_mode = #tpu.pipeline_mode<synchronous>, transform_indices = @transform_0, window_bounds = array<i64: 128, 128>}, {pipeline_mode = #tpu.pipeline_mode<synchronous>, transform_indices = @transform_1, window_bounds = array<i64: 128, 8>}, {pipeline_mode = #tpu.pipeline_mode<synchronous>, transform_indices = @transform_2, window_bounds = array<i64: 200, 16>}, {pipeline_mode = #tpu.pipeline_mode<synchronous>, transform_indices = @transform_3, window_bounds = array<i64: 400, 32>}, {pipeline_mode = #tpu.pipeline_mode<synchronous>, transform_indices = @transform_4, window_bounds = array<i64: 32, 128>}, {pipeline_mode = #tpu.pipeline_mode<synchronous>, transform_indices = @transform_5, window_bounds = array<i64: 4, 128>}, {pipeline_mode = #tpu.pipeline_mode<synchronous>, transform_indices = @transform_6, window_bounds = array<i64: 2, 128>}]} {
    %c0 = arith.constant 0 : index
    %c0_0 = arith.constant 0 : index
    %0 = vector.load %arg1[%c0, %c0_0] : memref<128x128xbf16, #tpu.memory_space<vmem>>, vector<128x128xbf16>
    %c0_1 = arith.constant 0 : index
    %c0_2 = arith.constant 0 : index
    %1 = vector.load %arg2[%c0_1, %c0_2] : memref<128x8xbf16, #tpu.memory_space<vmem>>, vector<128x8xbf16>
    %cst = arith.constant dense<0.000000e+00> : vector<128x8xf32>
    %2 = tpu.matmul %0, %1, %cst {dimension_numbers = #tpu.dot_dimension_numbers<[1], [0], [0], [1], [0, 0, 1, 1], [], []>} : vector<128x128xbf16>, vector<128x8xbf16>, vector<128x8xf32> -> vector<128x8xf32>
    %c0_3 = arith.constant 0 : index
    %c0_4 = arith.constant 0 : index
    %3 = vector.load %arg6[%c0_3, %c0_4] : memref<4x128xf32, #tpu.memory_space<vmem>>, vector<1x8xf32>
    %4 = vector.broadcast %3 : vector<1x8xf32> to vector<128x8xf32>
    %5 = arith.addf %2, %4 : vector<128x8xf32>
    %cst_5 = arith.constant 0.000000e+00 : f32
    %6 = vector.broadcast %cst_5 : f32 to vector<128x8xf32>
    %7 = arith.cmpf oge, %5, %6 : vector<128x8xf32>
    %cst_6 = arith.constant 2.000000e-01 : f32
    %8 = vector.broadcast %cst_6 : f32 to vector<128x8xf32>
    %9 = arith.mulf %8, %5 : vector<128x8xf32>
    %10 = arith.select %7, %5, %9 : vector<128x8xi1>, vector<128x8xf32>
    %cst_7 = arith.constant 0.000000e+00 : f32
    %11 = vector.broadcast %cst_7 : f32 to vector<2x12x12x8xf32>
    %c0_8 = arith.constant 0 : index
    %c0_9 = arith.constant 0 : index
    %c0_10 = arith.constant 0 : index
    %c0_11 = arith.constant 0 : index
    %12 = vector.load %arg8[%c0_8, %c0_9, %c0_10, %c0_11] : memref<2x12x12x8xf32, #tpu.memory_space<vmem>>, vector<2x12x12x8xf32>
    tpu.vector_store %arg8[%c0_8, %c0_9, %c0_10, %c0_11], %11 {strides = array<i32>} : memref<2x12x12x8xf32, #tpu.memory_space<vmem>>, vector<2x12x12x8xf32>,
    %13 = vector.shape_cast %10 : vector<128x8xf32> to vector<2x8x8x8xf32>
    %c0_12 = arith.constant 0 : index
    %c2 = arith.constant 2 : index
    %c2_13 = arith.constant 2 : index
    %c0_14 = arith.constant 0 : index
    %14 = vector.load %arg8[%c0_12, %c2, %c2_13, %c0_14] : memref<2x12x12x8xf32, #tpu.memory_space<vmem>>, vector<2x8x8x8xf32>
    tpu.vector_store %arg8[%c0_12, %c2, %c2_13, %c0_14], %13 {strides = array<i32>} : memref<2x12x12x8xf32, #tpu.memory_space<vmem>>, vector<2x8x8x8xf32>,
    %c0_15 = arith.constant 0 : index
    %c0_16 = arith.constant 0 : index
    %c0_17 = arith.constant 0 : index
    %c0_18 = arith.constant 0 : index
    %15 = tpu.strided_load %arg8[%c0_15, %c0_16, %c0_17, %c0_18] {strides = array<i32: 1, 2, 2, 1>} : memref<2x12x12x8xf32, #tpu.memory_space<vmem>>, vector<2x4x4x8xf32>
    %c0_19 = arith.constant 0 : index
    %c0_20 = arith.constant 0 : index
    %c0_21 = arith.constant 0 : index
    %c0_22 = arith.constant 0 : index
    %16 = vector.load %arg9[%c0_19, %c0_20, %c0_21, %c0_22] : memref<2x4x4x200xf32, #tpu.memory_space<vmem>>, vector<2x4x4x8xf32>
    tpu.vector_store %arg9[%c0_19, %c0_20, %c0_21, %c0_22], %15 {strides = array<i32>} : memref<2x4x4x200xf32, #tpu.memory_space<vmem>>, vector<2x4x4x8xf32>,
    %c0_23 = arith.constant 0 : index
    %c0_24 = arith.constant 0 : index
    %c1 = arith.constant 1 : index
    %c0_25 = arith.constant 0 : index
    %17 = tpu.strided_load %arg8[%c0_23, %c0_24, %c1, %c0_25] {strides = array<i32: 1, 2, 2, 1>} : memref<2x12x12x8xf32, #tpu.memory_space<vmem>>, vector<2x4x4x8xf32>
    %c0_26 = arith.constant 0 : index
    %c0_27 = arith.constant 0 : index
    %c0_28 = arith.constant 0 : index
    %c8 = arith.constant 8 : index
    %18 = vector.load %arg9[%c0_26, %c0_27, %c0_28, %c8] : memref<2x4x4x200xf32, #tpu.memory_space<vmem>>, vector<2x4x4x8xf32>
    tpu.vector_store %arg9[%c0_26, %c0_27, %c0_28, %c8], %17 {strides = array<i32>} : memref<2x4x4x200xf32, #tpu.memory_space<vmem>>, vector<2x4x4x8xf32>,
    %c0_29 = arith.constant 0 : index
    %c0_30 = arith.constant 0 : index
    %c2_31 = arith.constant 2 : index
    %c0_32 = arith.constant 0 : index
    %19 = tpu.strided_load %arg8[%c0_29, %c0_30, %c2_31, %c0_32] {strides = array<i32: 1, 2, 2, 1>} : memref<2x12x12x8xf32, #tpu.memory_space<vmem>>, vector<2x4x4x8xf32>
    %c0_33 = arith.constant 0 : index
    %c0_34 = arith.constant 0 : index
    %c0_35 = arith.constant 0 : index
    %c16 = arith.constant 16 : index
    %20 = vector.load %arg9[%c0_33, %c0_34, %c0_35, %c16] : memref<2x4x4x200xf32, #tpu.memory_space<vmem>>, vector<2x4x4x8xf32>
    tpu.vector_store %arg9[%c0_33, %c0_34, %c0_35, %c16], %19 {strides = array<i32>} : memref<2x4x4x200xf32, #tpu.memory_space<vmem>>, vector<2x4x4x8xf32>,
    %c0_36 = arith.constant 0 : index
    %c0_37 = arith.constant 0 : index
    %c3 = arith.constant 3 : index
    %c0_38 = arith.constant 0 : index
    %21 = tpu.strided_load %arg8[%c0_36, %c0_37, %c3, %c0_38] {strides = array<i32: 1, 2, 2, 1>} : memref<2x12x12x8xf32, #tpu.memory_space<vmem>>, vector<2x4x4x8xf32>
    %c0_39 = arith.constant 0 : index
    %c0_40 = arith.constant 0 : index
    %c0_41 = arith.constant 0 : index
    %c24 = arith.constant 24 : index
    %22 = vector.load %arg9[%c0_39, %c0_40, %c0_41, %c24] : memref<2x4x4x200xf32, #tpu.memory_space<vmem>>, vector<2x4x4x8xf32>
    tpu.vector_store %arg9[%c0_39, %c0_40, %c0_41, %c24], %21 {strides = array<i32>} : memref<2x4x4x200xf32, #tpu.memory_space<vmem>>, vector<2x4x4x8xf32>,
    %c0_42 = arith.constant 0 : index
    %c0_43 = arith.constant 0 : index
    %c4 = arith.constant 4 : index
    %c0_44 = arith.constant 0 : index
    %23 = tpu.strided_load %arg8[%c0_42, %c0_43, %c4, %c0_44] {strides = array<i32: 1, 2, 2, 1>} : memref<2x12x12x8xf32, #tpu.memory_space<vmem>>, vector<2x4x4x8xf32>
    %c0_45 = arith.constant 0 : index
    %c0_46 = arith.constant 0 : index
    %c0_47 = arith.constant 0 : index
    %c32 = arith.constant 32 : index
    %24 = vector.load %arg9[%c0_45, %c0_46, %c0_47, %c32] : memref<2x4x4x200xf32, #tpu.memory_space<vmem>>, vector<2x4x4x8xf32>
    tpu.vector_store %arg9[%c0_45, %c0_46, %c0_47, %c32], %23 {strides = array<i32>} : memref<2x4x4x200xf32, #tpu.memory_space<vmem>>, vector<2x4x4x8xf32>,
    %c0_48 = arith.constant 0 : index
    %c1_49 = arith.constant 1 : index
    %c0_50 = arith.constant 0 : index
    %c0_51 = arith.constant 0 : index
    %25 = tpu.strided_load %arg8[%c0_48, %c1_49, %c0_50, %c0_51] {strides = array<i32: 1, 2, 2, 1>} : memref<2x12x12x8xf32, #tpu.memory_space<vmem>>, vector<2x4x4x8xf32>
    %c0_52 = arith.constant 0 : index
    %c0_53 = arith.constant 0 : index
    %c0_54 = arith.constant 0 : index
    %c40 = arith.constant 40 : index
    %26 = vector.load %arg9[%c0_52, %c0_53, %c0_54, %c40] : memref<2x4x4x200xf32, #tpu.memory_space<vmem>>, vector<2x4x4x8xf32>
    tpu.vector_store %arg9[%c0_52, %c0_53, %c0_54, %c40], %25 {strides = array<i32>} : memref<2x4x4x200xf32, #tpu.memory_space<vmem>>, vector<2x4x4x8xf32>,
    %c0_55 = arith.constant 0 : index
    %c1_56 = arith.constant 1 : index
    %c1_57 = arith.constant 1 : index
    %c0_58 = arith.constant 0 : index
    %27 = tpu.strided_load %arg8[%c0_55, %c1_56, %c1_57, %c0_58] {strides = array<i32: 1, 2, 2, 1>} : memref<2x12x12x8xf32, #tpu.memory_space<vmem>>, vector<2x4x4x8xf32>
    %c0_59 = arith.constant 0 : index
    %c0_60 = arith.constant 0 : index
    %c0_61 = arith.constant 0 : index
    %c48 = arith.constant 48 : index
    %28 = vector.load %arg9[%c0_59, %c0_60, %c0_61, %c48] : memref<2x4x4x200xf32, #tpu.memory_space<vmem>>, vector<2x4x4x8xf32>
    tpu.vector_store %arg9[%c0_59, %c0_60, %c0_61, %c48], %27 {strides = array<i32>} : memref<2x4x4x200xf32, #tpu.memory_space<vmem>>, vector<2x4x4x8xf32>,
    %c0_62 = arith.constant 0 : index
    %c1_63 = arith.constant 1 : index
    %c2_64 = arith.constant 2 : index
    %c0_65 = arith.constant 0 : index
    %29 = tpu.strided_load %arg8[%c0_62, %c1_63, %c2_64, %c0_65] {strides = array<i32: 1, 2, 2, 1>} : memref<2x12x12x8xf32, #tpu.memory_space<vmem>>, vector<2x4x4x8xf32>
    %c0_66 = arith.constant 0 : index
    %c0_67 = arith.constant 0 : index
    %c0_68 = arith.constant 0 : index
    %c56 = arith.constant 56 : index
    %30 = vector.load %arg9[%c0_66, %c0_67, %c0_68, %c56] : memref<2x4x4x200xf32, #tpu.memory_space<vmem>>, vector<2x4x4x8xf32>
    tpu.vector_store %arg9[%c0_66, %c0_67, %c0_68, %c56], %29 {strides = array<i32>} : memref<2x4x4x200xf32, #tpu.memory_space<vmem>>, vector<2x4x4x8xf32>,
    %c0_69 = arith.constant 0 : index
    %c1_70 = arith.constant 1 : index
    %c3_71 = arith.constant 3 : index
    %c0_72 = arith.constant 0 : index
    %31 = tpu.strided_load %arg8[%c0_69, %c1_70, %c3_71, %c0_72] {strides = array<i32: 1, 2, 2, 1>} : memref<2x12x12x8xf32, #tpu.memory_space<vmem>>, vector<2x4x4x8xf32>
    %c0_73 = arith.constant 0 : index
    %c0_74 = arith.constant 0 : index
    %c0_75 = arith.constant 0 : index
    %c64 = arith.constant 64 : index
    %32 = vector.load %arg9[%c0_73, %c0_74, %c0_75, %c64] : memref<2x4x4x200xf32, #tpu.memory_space<vmem>>, vector<2x4x4x8xf32>
    tpu.vector_store %arg9[%c0_73, %c0_74, %c0_75, %c64], %31 {strides = array<i32>} : memref<2x4x4x200xf32, #tpu.memory_space<vmem>>, vector<2x4x4x8xf32>,
    %c0_76 = arith.constant 0 : index
    %c1_77 = arith.constant 1 : index
    %c4_78 = arith.constant 4 : index
    %c0_79 = arith.constant 0 : index
    %33 = tpu.strided_load %arg8[%c0_76, %c1_77, %c4_78, %c0_79] {strides = array<i32: 1, 2, 2, 1>} : memref<2x12x12x8xf32, #tpu.memory_space<vmem>>, vector<2x4x4x8xf32>
    %c0_80 = arith.constant 0 : index
    %c0_81 = arith.constant 0 : index
    %c0_82 = arith.constant 0 : index
    %c72 = arith.constant 72 : index
    %34 = vector.load %arg9[%c0_80, %c0_81, %c0_82, %c72] : memref<2x4x4x200xf32, #tpu.memory_space<vmem>>, vector<2x4x4x8xf32>
    tpu.vector_store %arg9[%c0_80, %c0_81, %c0_82, %c72], %33 {strides = array<i32>} : memref<2x4x4x200xf32, #tpu.memory_space<vmem>>, vector<2x4x4x8xf32>,
    %c0_83 = arith.constant 0 : index
    %c2_84 = arith.constant 2 : index
    %c0_85 = arith.constant 0 : index
    %c0_86 = arith.constant 0 : index
    %35 = tpu.strided_load %arg8[%c0_83, %c2_84, %c0_85, %c0_86] {strides = array<i32: 1, 2, 2, 1>} : memref<2x12x12x8xf32, #tpu.memory_space<vmem>>, vector<2x4x4x8xf32>
    %c0_87 = arith.constant 0 : index
    %c0_88 = arith.constant 0 : index
    %c0_89 = arith.constant 0 : index
    %c80 = arith.constant 80 : index
    %36 = vector.load %arg9[%c0_87, %c0_88, %c0_89, %c80] : memref<2x4x4x200xf32, #tpu.memory_space<vmem>>, vector<2x4x4x8xf32>
    tpu.vector_store %arg9[%c0_87, %c0_88, %c0_89, %c80], %35 {strides = array<i32>} : memref<2x4x4x200xf32, #tpu.memory_space<vmem>>, vector<2x4x4x8xf32>,
    %c0_90 = arith.constant 0 : index
    %c2_91 = arith.constant 2 : index
    %c1_92 = arith.constant 1 : index
    %c0_93 = arith.constant 0 : index
    %37 = tpu.strided_load %arg8[%c0_90, %c2_91, %c1_92, %c0_93] {strides = array<i32: 1, 2, 2, 1>} : memref<2x12x12x8xf32, #tpu.memory_space<vmem>>, vector<2x4x4x8xf32>
    %c0_94 = arith.constant 0 : index
    %c0_95 = arith.constant 0 : index
    %c0_96 = arith.constant 0 : index
    %c88 = arith.constant 88 : index
    %38 = vector.load %arg9[%c0_94, %c0_95, %c0_96, %c88] : memref<2x4x4x200xf32, #tpu.memory_space<vmem>>, vector<2x4x4x8xf32>
    tpu.vector_store %arg9[%c0_94, %c0_95, %c0_96, %c88], %37 {strides = array<i32>} : memref<2x4x4x200xf32, #tpu.memory_space<vmem>>, vector<2x4x4x8xf32>,
    %c0_97 = arith.constant 0 : index
    %c2_98 = arith.constant 2 : index
    %c2_99 = arith.constant 2 : index
    %c0_100 = arith.constant 0 : index
    %39 = tpu.strided_load %arg8[%c0_97, %c2_98, %c2_99, %c0_100] {strides = array<i32: 1, 2, 2, 1>} : memref<2x12x12x8xf32, #tpu.memory_space<vmem>>, vector<2x4x4x8xf32>
    %c0_101 = arith.constant 0 : index
    %c0_102 = arith.constant 0 : index
    %c0_103 = arith.constant 0 : index
    %c96 = arith.constant 96 : index
    %40 = vector.load %arg9[%c0_101, %c0_102, %c0_103, %c96] : memref<2x4x4x200xf32, #tpu.memory_space<vmem>>, vector<2x4x4x8xf32>
    tpu.vector_store %arg9[%c0_101, %c0_102, %c0_103, %c96], %39 {strides = array<i32>} : memref<2x4x4x200xf32, #tpu.memory_space<vmem>>, vector<2x4x4x8xf32>,
    %c0_104 = arith.constant 0 : index
    %c2_105 = arith.constant 2 : index
    %c3_106 = arith.constant 3 : index
    %c0_107 = arith.constant 0 : index
    %41 = tpu.strided_load %arg8[%c0_104, %c2_105, %c3_106, %c0_107] {strides = array<i32: 1, 2, 2, 1>} : memref<2x12x12x8xf32, #tpu.memory_space<vmem>>, vector<2x4x4x8xf32>
    %c0_108 = arith.constant 0 : index
    %c0_109 = arith.constant 0 : index
    %c0_110 = arith.constant 0 : index
    %c104 = arith.constant 104 : index
    %42 = vector.load %arg9[%c0_108, %c0_109, %c0_110, %c104] : memref<2x4x4x200xf32, #tpu.memory_space<vmem>>, vector<2x4x4x8xf32>
    tpu.vector_store %arg9[%c0_108, %c0_109, %c0_110, %c104], %41 {strides = array<i32>} : memref<2x4x4x200xf32, #tpu.memory_space<vmem>>, vector<2x4x4x8xf32>,
    %c0_111 = arith.constant 0 : index
    %c2_112 = arith.constant 2 : index
    %c4_113 = arith.constant 4 : index
    %c0_114 = arith.constant 0 : index
    %43 = tpu.strided_load %arg8[%c0_111, %c2_112, %c4_113, %c0_114] {strides = array<i32: 1, 2, 2, 1>} : memref<2x12x12x8xf32, #tpu.memory_space<vmem>>, vector<2x4x4x8xf32>
    %c0_115 = arith.constant 0 : index
    %c0_116 = arith.constant 0 : index
    %c0_117 = arith.constant 0 : index
    %c112 = arith.constant 112 : index
    %44 = vector.load %arg9[%c0_115, %c0_116, %c0_117, %c112] : memref<2x4x4x200xf32, #tpu.memory_space<vmem>>, vector<2x4x4x8xf32>
    tpu.vector_store %arg9[%c0_115, %c0_116, %c0_117, %c112], %43 {strides = array<i32>} : memref<2x4x4x200xf32, #tpu.memory_space<vmem>>, vector<2x4x4x8xf32>,
    %c0_118 = arith.constant 0 : index
    %c3_119 = arith.constant 3 : index
    %c0_120 = arith.constant 0 : index
    %c0_121 = arith.constant 0 : index
    %45 = tpu.strided_load %arg8[%c0_118, %c3_119, %c0_120, %c0_121] {strides = array<i32: 1, 2, 2, 1>} : memref<2x12x12x8xf32, #tpu.memory_space<vmem>>, vector<2x4x4x8xf32>
    %c0_122 = arith.constant 0 : index
    %c0_123 = arith.constant 0 : index
    %c0_124 = arith.constant 0 : index
    %c120 = arith.constant 120 : index
    %46 = vector.load %arg9[%c0_122, %c0_123, %c0_124, %c120] : memref<2x4x4x200xf32, #tpu.memory_space<vmem>>, vector<2x4x4x8xf32>
    tpu.vector_store %arg9[%c0_122, %c0_123, %c0_124, %c120], %45 {strides = array<i32>} : memref<2x4x4x200xf32, #tpu.memory_space<vmem>>, vector<2x4x4x8xf32>,
    %c0_125 = arith.constant 0 : index
    %c3_126 = arith.constant 3 : index
    %c1_127 = arith.constant 1 : index
    %c0_128 = arith.constant 0 : index
    %47 = tpu.strided_load %arg8[%c0_125, %c3_126, %c1_127, %c0_128] {strides = array<i32: 1, 2, 2, 1>} : memref<2x12x12x8xf32, #tpu.memory_space<vmem>>, vector<2x4x4x8xf32>
    %c0_129 = arith.constant 0 : index
    %c0_130 = arith.constant 0 : index
    %c0_131 = arith.constant 0 : index
    %c128 = arith.constant 128 : index
    %48 = vector.load %arg9[%c0_129, %c0_130, %c0_131, %c128] : memref<2x4x4x200xf32, #tpu.memory_space<vmem>>, vector<2x4x4x8xf32>
    tpu.vector_store %arg9[%c0_129, %c0_130, %c0_131, %c128], %47 {strides = array<i32>} : memref<2x4x4x200xf32, #tpu.memory_space<vmem>>, vector<2x4x4x8xf32>,
    %c0_132 = arith.constant 0 : index
    %c3_133 = arith.constant 3 : index
    %c2_134 = arith.constant 2 : index
    %c0_135 = arith.constant 0 : index
    %49 = tpu.strided_load %arg8[%c0_132, %c3_133, %c2_134, %c0_135] {strides = array<i32: 1, 2, 2, 1>} : memref<2x12x12x8xf32, #tpu.memory_space<vmem>>, vector<2x4x4x8xf32>
    %c0_136 = arith.constant 0 : index
    %c0_137 = arith.constant 0 : index
    %c0_138 = arith.constant 0 : index
    %c136 = arith.constant 136 : index
    %50 = vector.load %arg9[%c0_136, %c0_137, %c0_138, %c136] : memref<2x4x4x200xf32, #tpu.memory_space<vmem>>, vector<2x4x4x8xf32>
    tpu.vector_store %arg9[%c0_136, %c0_137, %c0_138, %c136], %49 {strides = array<i32>} : memref<2x4x4x200xf32, #tpu.memory_space<vmem>>, vector<2x4x4x8xf32>,
    %c0_139 = arith.constant 0 : index
    %c3_140 = arith.constant 3 : index
    %c3_141 = arith.constant 3 : index
    %c0_142 = arith.constant 0 : index
    %51 = tpu.strided_load %arg8[%c0_139, %c3_140, %c3_141, %c0_142] {strides = array<i32: 1, 2, 2, 1>} : memref<2x12x12x8xf32, #tpu.memory_space<vmem>>, vector<2x4x4x8xf32>
    %c0_143 = arith.constant 0 : index
    %c0_144 = arith.constant 0 : index
    %c0_145 = arith.constant 0 : index
    %c144 = arith.constant 144 : index
    %52 = vector.load %arg9[%c0_143, %c0_144, %c0_145, %c144] : memref<2x4x4x200xf32, #tpu.memory_space<vmem>>, vector<2x4x4x8xf32>
    tpu.vector_store %arg9[%c0_143, %c0_144, %c0_145, %c144], %51 {strides = array<i32>} : memref<2x4x4x200xf32, #tpu.memory_space<vmem>>, vector<2x4x4x8xf32>,
    %c0_146 = arith.constant 0 : index
    %c3_147 = arith.constant 3 : index
    %c4_148 = arith.constant 4 : index
    %c0_149 = arith.constant 0 : index
    %53 = tpu.strided_load %arg8[%c0_146, %c3_147, %c4_148, %c0_149] {strides = array<i32: 1, 2, 2, 1>} : memref<2x12x12x8xf32, #tpu.memory_space<vmem>>, vector<2x4x4x8xf32>
    %c0_150 = arith.constant 0 : index
    %c0_151 = arith.constant 0 : index
    %c0_152 = arith.constant 0 : index
    %c152 = arith.constant 152 : index
    %54 = vector.load %arg9[%c0_150, %c0_151, %c0_152, %c152] : memref<2x4x4x200xf32, #tpu.memory_space<vmem>>, vector<2x4x4x8xf32>
    tpu.vector_store %arg9[%c0_150, %c0_151, %c0_152, %c152], %53 {strides = array<i32>} : memref<2x4x4x200xf32, #tpu.memory_space<vmem>>, vector<2x4x4x8xf32>,
    %c0_153 = arith.constant 0 : index
    %c4_154 = arith.constant 4 : index
    %c0_155 = arith.constant 0 : index
    %c0_156 = arith.constant 0 : index
    %55 = tpu.strided_load %arg8[%c0_153, %c4_154, %c0_155, %c0_156] {strides = array<i32: 1, 2, 2, 1>} : memref<2x12x12x8xf32, #tpu.memory_space<vmem>>, vector<2x4x4x8xf32>
    %c0_157 = arith.constant 0 : index
    %c0_158 = arith.constant 0 : index
    %c0_159 = arith.constant 0 : index
    %c160 = arith.constant 160 : index
    %56 = vector.load %arg9[%c0_157, %c0_158, %c0_159, %c160] : memref<2x4x4x200xf32, #tpu.memory_space<vmem>>, vector<2x4x4x8xf32>
    tpu.vector_store %arg9[%c0_157, %c0_158, %c0_159, %c160], %55 {strides = array<i32>} : memref<2x4x4x200xf32, #tpu.memory_space<vmem>>, vector<2x4x4x8xf32>,
    %c0_160 = arith.constant 0 : index
    %c4_161 = arith.constant 4 : index
    %c1_162 = arith.constant 1 : index
    %c0_163 = arith.constant 0 : index
    %57 = tpu.strided_load %arg8[%c0_160, %c4_161, %c1_162, %c0_163] {strides = array<i32: 1, 2, 2, 1>} : memref<2x12x12x8xf32, #tpu.memory_space<vmem>>, vector<2x4x4x8xf32>
    %c0_164 = arith.constant 0 : index
    %c0_165 = arith.constant 0 : index
    %c0_166 = arith.constant 0 : index
    %c168 = arith.constant 168 : index
    %58 = vector.load %arg9[%c0_164, %c0_165, %c0_166, %c168] : memref<2x4x4x200xf32, #tpu.memory_space<vmem>>, vector<2x4x4x8xf32>
    tpu.vector_store %arg9[%c0_164, %c0_165, %c0_166, %c168], %57 {strides = array<i32>} : memref<2x4x4x200xf32, #tpu.memory_space<vmem>>, vector<2x4x4x8xf32>,
    %c0_167 = arith.constant 0 : index
    %c4_168 = arith.constant 4 : index
    %c2_169 = arith.constant 2 : index
    %c0_170 = arith.constant 0 : index
    %59 = tpu.strided_load %arg8[%c0_167, %c4_168, %c2_169, %c0_170] {strides = array<i32: 1, 2, 2, 1>} : memref<2x12x12x8xf32, #tpu.memory_space<vmem>>, vector<2x4x4x8xf32>
    %c0_171 = arith.constant 0 : index
    %c0_172 = arith.constant 0 : index
    %c0_173 = arith.constant 0 : index
    %c176 = arith.constant 176 : index
    %60 = vector.load %arg9[%c0_171, %c0_172, %c0_173, %c176] : memref<2x4x4x200xf32, #tpu.memory_space<vmem>>, vector<2x4x4x8xf32>
    tpu.vector_store %arg9[%c0_171, %c0_172, %c0_173, %c176], %59 {strides = array<i32>} : memref<2x4x4x200xf32, #tpu.memory_space<vmem>>, vector<2x4x4x8xf32>,
    %c0_174 = arith.constant 0 : index
    %c4_175 = arith.constant 4 : index
    %c3_176 = arith.constant 3 : index
    %c0_177 = arith.constant 0 : index
    %61 = tpu.strided_load %arg8[%c0_174, %c4_175, %c3_176, %c0_177] {strides = array<i32: 1, 2, 2, 1>} : memref<2x12x12x8xf32, #tpu.memory_space<vmem>>, vector<2x4x4x8xf32>
    %c0_178 = arith.constant 0 : index
    %c0_179 = arith.constant 0 : index
    %c0_180 = arith.constant 0 : index
    %c184 = arith.constant 184 : index
    %62 = vector.load %arg9[%c0_178, %c0_179, %c0_180, %c184] : memref<2x4x4x200xf32, #tpu.memory_space<vmem>>, vector<2x4x4x8xf32>
    tpu.vector_store %arg9[%c0_178, %c0_179, %c0_180, %c184], %61 {strides = array<i32>} : memref<2x4x4x200xf32, #tpu.memory_space<vmem>>, vector<2x4x4x8xf32>,
    %c0_181 = arith.constant 0 : index
    %c4_182 = arith.constant 4 : index
    %c4_183 = arith.constant 4 : index
    %c0_184 = arith.constant 0 : index
    %63 = tpu.strided_load %arg8[%c0_181, %c4_182, %c4_183, %c0_184] {strides = array<i32: 1, 2, 2, 1>} : memref<2x12x12x8xf32, #tpu.memory_space<vmem>>, vector<2x4x4x8xf32>
    %c0_185 = arith.constant 0 : index
    %c0_186 = arith.constant 0 : index
    %c0_187 = arith.constant 0 : index
    %c192 = arith.constant 192 : index
    %64 = vector.load %arg9[%c0_185, %c0_186, %c0_187, %c192] : memref<2x4x4x200xf32, #tpu.memory_space<vmem>>, vector<2x4x4x8xf32>
    tpu.vector_store %arg9[%c0_185, %c0_186, %c0_187, %c192], %63 {strides = array<i32>} : memref<2x4x4x200xf32, #tpu.memory_space<vmem>>, vector<2x4x4x8xf32>,
    %c0_188 = arith.constant 0 : index
    %c0_189 = arith.constant 0 : index
    %c0_190 = arith.constant 0 : index
    %c0_191 = arith.constant 0 : index
    %65 = vector.load %arg9[%c0_188, %c0_189, %c0_190, %c0_191] : memref<2x4x4x200xf32, #tpu.memory_space<vmem>>, vector<2x4x4x200xf32>
    %66 = vector.shape_cast %65 : vector<2x4x4x200xf32> to vector<32x200xf32>
    %67 = arith.truncf %66 : vector<32x200xf32> to vector<32x200xbf16>
    %c0_192 = arith.constant 0 : index
    %c0_193 = arith.constant 0 : index
    %68 = vector.load %arg3[%c0_192, %c0_193] : memref<200x16xbf16, #tpu.memory_space<vmem>>, vector<200x16xbf16>
    %cst_194 = arith.constant dense<0.000000e+00> : vector<32x16xf32>
    %69 = tpu.matmul %67, %68, %cst_194 {dimension_numbers = #tpu.dot_dimension_numbers<[1], [0], [0], [1], [0, 0, 1, 1], [], []>} : vector<32x200xbf16>, vector<200x16xbf16>, vector<32x16xf32> -> vector<32x16xf32>
    %c1_195 = arith.constant 1 : index
    %c0_196 = arith.constant 0 : index
    %70 = vector.load %arg6[%c1_195, %c0_196] : memref<4x128xf32, #tpu.memory_space<vmem>>, vector<1x16xf32>
    %c2_197 = arith.constant 2 : index
    %c0_198 = arith.constant 0 : index
    %71 = vector.load %arg6[%c2_197, %c0_198] : memref<4x128xf32, #tpu.memory_space<vmem>>, vector<1x16xf32>
    %cst_199 = arith.constant dense<0.000000e+00> : vector<16xf32>
    %72 = vector.multi_reduction <add>, %69, %cst_199 [0] : vector<32x16xf32> to vector<16xf32>
    %73 = vector.shape_cast %72 : vector<16xf32> to vector<1x16xf32>
    %cst_200 = arith.constant 3.200000e+01 : f32
    %74 = vector.broadcast %cst_200 : f32 to vector<1x16xf32>
    %75 = arith.divf %73, %74 : vector<1x16xf32>
    %76 = arith.mulf %69, %69 : vector<32x16xf32>
    %cst_201 = arith.constant dense<0.000000e+00> : vector<16xf32>
    %77 = vector.multi_reduction <add>, %76, %cst_201 [0] : vector<32x16xf32> to vector<16xf32>
    %78 = vector.shape_cast %77 : vector<16xf32> to vector<1x16xf32>
    %cst_202 = arith.constant 3.200000e+01 : f32
    %79 = vector.broadcast %cst_202 : f32 to vector<1x16xf32>
    %80 = arith.divf %78, %79 : vector<1x16xf32>
    %81 = arith.mulf %75, %75 : vector<1x16xf32>
    %82 = arith.subf %80, %81 : vector<1x16xf32>
    %cst_203 = arith.constant 0.000000e+00 : f32
    %83 = vector.broadcast %cst_203 : f32 to vector<1x16xf32>
    %84 = arith.maximumf %82, %83 : vector<1x16xf32>
    %cst_204 = arith.constant 9.99999974E-6 : f32
    %85 = vector.broadcast %cst_204 : f32 to vector<1x16xf32>
    %86 = arith.addf %84, %85 : vector<1x16xf32>
    %87 = math.rsqrt %86 : vector<1x16xf32>
    %88 = arith.mulf %70, %87 : vector<1x16xf32>
    %89 = vector.broadcast %88 : vector<1x16xf32> to vector<32x16xf32>
    %90 = arith.mulf %69, %89 : vector<32x16xf32>
    %91 = arith.mulf %75, %88 : vector<1x16xf32>
    %92 = arith.subf %71, %91 : vector<1x16xf32>
    %93 = vector.broadcast %92 : vector<1x16xf32> to vector<32x16xf32>
    %94 = arith.addf %90, %93 : vector<32x16xf32>
    %cst_205 = arith.constant 0.000000e+00 : f32
    %95 = vector.broadcast %cst_205 : f32 to vector<32x16xf32>
    %96 = arith.cmpf oge, %94, %95 : vector<32x16xf32>
    %cst_206 = arith.constant 2.000000e-01 : f32
    %97 = vector.broadcast %cst_206 : f32 to vector<32x16xf32>
    %98 = arith.mulf %97, %94 : vector<32x16xf32>
    %99 = arith.select %96, %94, %98 : vector<32x16xi1>, vector<32x16xf32>
    %cst_207 = arith.constant 0.000000e+00 : f32
    %100 = vector.broadcast %cst_207 : f32 to vector<2x8x8x16xf32>
    %c0_208 = arith.constant 0 : index
    %c0_209 = arith.constant 0 : index
    %c0_210 = arith.constant 0 : index
    %c0_211 = arith.constant 0 : index
    %101 = vector.load %arg10[%c0_208, %c0_209, %c0_210, %c0_211] : memref<2x8x8x16xf32, #tpu.memory_space<vmem>>, vector<2x8x8x16xf32>
    tpu.vector_store %arg10[%c0_208, %c0_209, %c0_210, %c0_211], %100 {strides = array<i32>} : memref<2x8x8x16xf32, #tpu.memory_space<vmem>>, vector<2x8x8x16xf32>,
    %102 = vector.shape_cast %99 : vector<32x16xf32> to vector<2x4x4x16xf32>
    %c0_212 = arith.constant 0 : index
    %c2_213 = arith.constant 2 : index
    %c2_214 = arith.constant 2 : index
    %c0_215 = arith.constant 0 : index
    %103 = vector.load %arg10[%c0_212, %c2_213, %c2_214, %c0_215] : memref<2x8x8x16xf32, #tpu.memory_space<vmem>>, vector<2x4x4x16xf32>
    tpu.vector_store %arg10[%c0_212, %c2_213, %c2_214, %c0_215], %102 {strides = array<i32>} : memref<2x8x8x16xf32, #tpu.memory_space<vmem>>, vector<2x4x4x16xf32>,
    %c0_216 = arith.constant 0 : index
    %c0_217 = arith.constant 0 : index
    %c0_218 = arith.constant 0 : index
    %c0_219 = arith.constant 0 : index
    %104 = tpu.strided_load %arg10[%c0_216, %c0_217, %c0_218, %c0_219] {strides = array<i32: 1, 2, 2, 1>} : memref<2x8x8x16xf32, #tpu.memory_space<vmem>>, vector<2x2x2x16xf32>
    %c0_220 = arith.constant 0 : index
    %c0_221 = arith.constant 0 : index
    %c0_222 = arith.constant 0 : index
    %c0_223 = arith.constant 0 : index
    %105 = vector.load %arg11[%c0_220, %c0_221, %c0_222, %c0_223] : memref<2x2x2x400xf32, #tpu.memory_space<vmem>>, vector<2x2x2x16xf32>
    tpu.vector_store %arg11[%c0_220, %c0_221, %c0_222, %c0_223], %104 {strides = array<i32>} : memref<2x2x2x400xf32, #tpu.memory_space<vmem>>, vector<2x2x2x16xf32>,
    %c0_224 = arith.constant 0 : index
    %c0_225 = arith.constant 0 : index
    %c1_226 = arith.constant 1 : index
    %c0_227 = arith.constant 0 : index
    %106 = tpu.strided_load %arg10[%c0_224, %c0_225, %c1_226, %c0_227] {strides = array<i32: 1, 2, 2, 1>} : memref<2x8x8x16xf32, #tpu.memory_space<vmem>>, vector<2x2x2x16xf32>
    %c0_228 = arith.constant 0 : index
    %c0_229 = arith.constant 0 : index
    %c0_230 = arith.constant 0 : index
    %c16_231 = arith.constant 16 : index
    %107 = vector.load %arg11[%c0_228, %c0_229, %c0_230, %c16_231] : memref<2x2x2x400xf32, #tpu.memory_space<vmem>>, vector<2x2x2x16xf32>
    tpu.vector_store %arg11[%c0_228, %c0_229, %c0_230, %c16_231], %106 {strides = array<i32>} : memref<2x2x2x400xf32, #tpu.memory_space<vmem>>, vector<2x2x2x16xf32>,
    %c0_232 = arith.constant 0 : index
    %c0_233 = arith.constant 0 : index
    %c2_234 = arith.constant 2 : index
    %c0_235 = arith.constant 0 : index
    %108 = tpu.strided_load %arg10[%c0_232, %c0_233, %c2_234, %c0_235] {strides = array<i32: 1, 2, 2, 1>} : memref<2x8x8x16xf32, #tpu.memory_space<vmem>>, vector<2x2x2x16xf32>
    %c0_236 = arith.constant 0 : index
    %c0_237 = arith.constant 0 : index
    %c0_238 = arith.constant 0 : index
    %c32_239 = arith.constant 32 : index
    %109 = vector.load %arg11[%c0_236, %c0_237, %c0_238, %c32_239] : memref<2x2x2x400xf32, #tpu.memory_space<vmem>>, vector<2x2x2x16xf32>
    tpu.vector_store %arg11[%c0_236, %c0_237, %c0_238, %c32_239], %108 {strides = array<i32>} : memref<2x2x2x400xf32, #tpu.memory_space<vmem>>, vector<2x2x2x16xf32>,
    %c0_240 = arith.constant 0 : index
    %c0_241 = arith.constant 0 : index
    %c3_242 = arith.constant 3 : index
    %c0_243 = arith.constant 0 : index
    %110 = tpu.strided_load %arg10[%c0_240, %c0_241, %c3_242, %c0_243] {strides = array<i32: 1, 2, 2, 1>} : memref<2x8x8x16xf32, #tpu.memory_space<vmem>>, vector<2x2x2x16xf32>
    %c0_244 = arith.constant 0 : index
    %c0_245 = arith.constant 0 : index
    %c0_246 = arith.constant 0 : index
    %c48_247 = arith.constant 48 : index
    %111 = vector.load %arg11[%c0_244, %c0_245, %c0_246, %c48_247] : memref<2x2x2x400xf32, #tpu.memory_space<vmem>>, vector<2x2x2x16xf32>
    tpu.vector_store %arg11[%c0_244, %c0_245, %c0_246, %c48_247], %110 {strides = array<i32>} : memref<2x2x2x400xf32, #tpu.memory_space<vmem>>, vector<2x2x2x16xf32>,
    %c0_248 = arith.constant 0 : index
    %c0_249 = arith.constant 0 : index
    %c4_250 = arith.constant 4 : index
    %c0_251 = arith.constant 0 : index
    %112 = tpu.strided_load %arg10[%c0_248, %c0_249, %c4_250, %c0_251] {strides = array<i32: 1, 2, 2, 1>} : memref<2x8x8x16xf32, #tpu.memory_space<vmem>>, vector<2x2x2x16xf32>
    %c0_252 = arith.constant 0 : index
    %c0_253 = arith.constant 0 : index
    %c0_254 = arith.constant 0 : index
    %c64_255 = arith.constant 64 : index
    %113 = vector.load %arg11[%c0_252, %c0_253, %c0_254, %c64_255] : memref<2x2x2x400xf32, #tpu.memory_space<vmem>>, vector<2x2x2x16xf32>
    tpu.vector_store %arg11[%c0_252, %c0_253, %c0_254, %c64_255], %112 {strides = array<i32>} : memref<2x2x2x400xf32, #tpu.memory_space<vmem>>, vector<2x2x2x16xf32>,
    %c0_256 = arith.constant 0 : index
    %c1_257 = arith.constant 1 : index
    %c0_258 = arith.constant 0 : index
    %c0_259 = arith.constant 0 : index
    %114 = tpu.strided_load %arg10[%c0_256, %c1_257, %c0_258, %c0_259] {strides = array<i32: 1, 2, 2, 1>} : memref<2x8x8x16xf32, #tpu.memory_space<vmem>>, vector<2x2x2x16xf32>
    %c0_260 = arith.constant 0 : index
    %c0_261 = arith.constant 0 : index
    %c0_262 = arith.constant 0 : index
    %c80_263 = arith.constant 80 : index
    %115 = vector.load %arg11[%c0_260, %c0_261, %c0_262, %c80_263] : memref<2x2x2x400xf32, #tpu.memory_space<vmem>>, vector<2x2x2x16xf32>
    tpu.vector_store %arg11[%c0_260, %c0_261, %c0_262, %c80_263], %114 {strides = array<i32>} : memref<2x2x2x400xf32, #tpu.memory_space<vmem>>, vector<2x2x2x16xf32>,
    %c0_264 = arith.constant 0 : index
    %c1_265 = arith.constant 1 : index
    %c1_266 = arith.constant 1 : index
    %c0_267 = arith.constant 0 : index
    %116 = tpu.strided_load %arg10[%c0_264, %c1_265, %c1_266, %c0_267] {strides = array<i32: 1, 2, 2, 1>} : memref<2x8x8x16xf32, #tpu.memory_space<vmem>>, vector<2x2x2x16xf32>
    %c0_268 = arith.constant 0 : index
    %c0_269 = arith.constant 0 : index
    %c0_270 = arith.constant 0 : index
    %c96_271 = arith.constant 96 : index
    %117 = vector.load %arg11[%c0_268, %c0_269, %c0_270, %c96_271] : memref<2x2x2x400xf32, #tpu.memory_space<vmem>>, vector<2x2x2x16xf32>
    tpu.vector_store %arg11[%c0_268, %c0_269, %c0_270, %c96_271], %116 {strides = array<i32>} : memref<2x2x2x400xf32, #tpu.memory_space<vmem>>, vector<2x2x2x16xf32>,
    %c0_272 = arith.constant 0 : index
    %c1_273 = arith.constant 1 : index
    %c2_274 = arith.constant 2 : index
    %c0_275 = arith.constant 0 : index
    %118 = tpu.strided_load %arg10[%c0_272, %c1_273, %c2_274, %c0_275] {strides = array<i32: 1, 2, 2, 1>} : memref<2x8x8x16xf32, #tpu.memory_space<vmem>>, vector<2x2x2x16xf32>
    %c0_276 = arith.constant 0 : index
    %c0_277 = arith.constant 0 : index
    %c0_278 = arith.constant 0 : index
    %c112_279 = arith.constant 112 : index
    %119 = vector.load %arg11[%c0_276, %c0_277, %c0_278, %c112_279] : memref<2x2x2x400xf32, #tpu.memory_space<vmem>>, vector<2x2x2x16xf32>
    tpu.vector_store %arg11[%c0_276, %c0_277, %c0_278, %c112_279], %118 {strides = array<i32>} : memref<2x2x2x400xf32, #tpu.memory_space<vmem>>, vector<2x2x2x16xf32>,
    %c0_280 = arith.constant 0 : index
    %c1_281 = arith.constant 1 : index
    %c3_282 = arith.constant 3 : index
    %c0_283 = arith.constant 0 : index
    %120 = tpu.strided_load %arg10[%c0_280, %c1_281, %c3_282, %c0_283] {strides = array<i32: 1, 2, 2, 1>} : memref<2x8x8x16xf32, #tpu.memory_space<vmem>>, vector<2x2x2x16xf32>
    %c0_284 = arith.constant 0 : index
    %c0_285 = arith.constant 0 : index
    %c0_286 = arith.constant 0 : index
    %c128_287 = arith.constant 128 : index
    %121 = vector.load %arg11[%c0_284, %c0_285, %c0_286, %c128_287] : memref<2x2x2x400xf32, #tpu.memory_space<vmem>>, vector<2x2x2x16xf32>
    tpu.vector_store %arg11[%c0_284, %c0_285, %c0_286, %c128_287], %120 {strides = array<i32>} : memref<2x2x2x400xf32, #tpu.memory_space<vmem>>, vector<2x2x2x16xf32>,
    %c0_288 = arith.constant 0 : index
    %c1_289 = arith.constant 1 : index
    %c4_290 = arith.constant 4 : index
    %c0_291 = arith.constant 0 : index
    %122 = tpu.strided_load %arg10[%c0_288, %c1_289, %c4_290, %c0_291] {strides = array<i32: 1, 2, 2, 1>} : memref<2x8x8x16xf32, #tpu.memory_space<vmem>>, vector<2x2x2x16xf32>
    %c0_292 = arith.constant 0 : index
    %c0_293 = arith.constant 0 : index
    %c0_294 = arith.constant 0 : index
    %c144_295 = arith.constant 144 : index
    %123 = vector.load %arg11[%c0_292, %c0_293, %c0_294, %c144_295] : memref<2x2x2x400xf32, #tpu.memory_space<vmem>>, vector<2x2x2x16xf32>
    tpu.vector_store %arg11[%c0_292, %c0_293, %c0_294, %c144_295], %122 {strides = array<i32>} : memref<2x2x2x400xf32, #tpu.memory_space<vmem>>, vector<2x2x2x16xf32>,
    %c0_296 = arith.constant 0 : index
    %c2_297 = arith.constant 2 : index
    %c0_298 = arith.constant 0 : index
    %c0_299 = arith.constant 0 : index
    %124 = tpu.strided_load %arg10[%c0_296, %c2_297, %c0_298, %c0_299] {strides = array<i32: 1, 2, 2, 1>} : memref<2x8x8x16xf32, #tpu.memory_space<vmem>>, vector<2x2x2x16xf32>
    %c0_300 = arith.constant 0 : index
    %c0_301 = arith.constant 0 : index
    %c0_302 = arith.constant 0 : index
    %c160_303 = arith.constant 160 : index
    %125 = vector.load %arg11[%c0_300, %c0_301, %c0_302, %c160_303] : memref<2x2x2x400xf32, #tpu.memory_space<vmem>>, vector<2x2x2x16xf32>
    tpu.vector_store %arg11[%c0_300, %c0_301, %c0_302, %c160_303], %124 {strides = array<i32>} : memref<2x2x2x400xf32, #tpu.memory_space<vmem>>, vector<2x2x2x16xf32>,
    %c0_304 = arith.constant 0 : index
    %c2_305 = arith.constant 2 : index
    %c1_306 = arith.constant 1 : index
    %c0_307 = arith.constant 0 : index
    %126 = tpu.strided_load %arg10[%c0_304, %c2_305, %c1_306, %c0_307] {strides = array<i32: 1, 2, 2, 1>} : memref<2x8x8x16xf32, #tpu.memory_space<vmem>>, vector<2x2x2x16xf32>
    %c0_308 = arith.constant 0 : index
    %c0_309 = arith.constant 0 : index
    %c0_310 = arith.constant 0 : index
    %c176_311 = arith.constant 176 : index
    %127 = vector.load %arg11[%c0_308, %c0_309, %c0_310, %c176_311] : memref<2x2x2x400xf32, #tpu.memory_space<vmem>>, vector<2x2x2x16xf32>
    tpu.vector_store %arg11[%c0_308, %c0_309, %c0_310, %c176_311], %126 {strides = array<i32>} : memref<2x2x2x400xf32, #tpu.memory_space<vmem>>, vector<2x2x2x16xf32>,
    %c0_312 = arith.constant 0 : index
    %c2_313 = arith.constant 2 : index
    %c2_314 = arith.constant 2 : index
    %c0_315 = arith.constant 0 : index
    %128 = tpu.strided_load %arg10[%c0_312, %c2_313, %c2_314, %c0_315] {strides = array<i32: 1, 2, 2, 1>} : memref<2x8x8x16xf32, #tpu.memory_space<vmem>>, vector<2x2x2x16xf32>
    %c0_316 = arith.constant 0 : index
    %c0_317 = arith.constant 0 : index
    %c0_318 = arith.constant 0 : index
    %c192_319 = arith.constant 192 : index
    %129 = vector.load %arg11[%c0_316, %c0_317, %c0_318, %c192_319] : memref<2x2x2x400xf32, #tpu.memory_space<vmem>>, vector<2x2x2x16xf32>
    tpu.vector_store %arg11[%c0_316, %c0_317, %c0_318, %c192_319], %128 {strides = array<i32>} : memref<2x2x2x400xf32, #tpu.memory_space<vmem>>, vector<2x2x2x16xf32>,
    %c0_320 = arith.constant 0 : index
    %c2_321 = arith.constant 2 : index
    %c3_322 = arith.constant 3 : index
    %c0_323 = arith.constant 0 : index
    %130 = tpu.strided_load %arg10[%c0_320, %c2_321, %c3_322, %c0_323] {strides = array<i32: 1, 2, 2, 1>} : memref<2x8x8x16xf32, #tpu.memory_space<vmem>>, vector<2x2x2x16xf32>
    %c0_324 = arith.constant 0 : index
    %c0_325 = arith.constant 0 : index
    %c0_326 = arith.constant 0 : index
    %c208 = arith.constant 208 : index
    %131 = vector.load %arg11[%c0_324, %c0_325, %c0_326, %c208] : memref<2x2x2x400xf32, #tpu.memory_space<vmem>>, vector<2x2x2x16xf32>
    tpu.vector_store %arg11[%c0_324, %c0_325, %c0_326, %c208], %130 {strides = array<i32>} : memref<2x2x2x400xf32, #tpu.memory_space<vmem>>, vector<2x2x2x16xf32>,
    %c0_327 = arith.constant 0 : index
    %c2_328 = arith.constant 2 : index
    %c4_329 = arith.constant 4 : index
    %c0_330 = arith.constant 0 : index
    %132 = tpu.strided_load %arg10[%c0_327, %c2_328, %c4_329, %c0_330] {strides = array<i32: 1, 2, 2, 1>} : memref<2x8x8x16xf32, #tpu.memory_space<vmem>>, vector<2x2x2x16xf32>
    %c0_331 = arith.constant 0 : index
    %c0_332 = arith.constant 0 : index
    %c0_333 = arith.constant 0 : index
    %c224 = arith.constant 224 : index
    %133 = vector.load %arg11[%c0_331, %c0_332, %c0_333, %c224] : memref<2x2x2x400xf32, #tpu.memory_space<vmem>>, vector<2x2x2x16xf32>
    tpu.vector_store %arg11[%c0_331, %c0_332, %c0_333, %c224], %132 {strides = array<i32>} : memref<2x2x2x400xf32, #tpu.memory_space<vmem>>, vector<2x2x2x16xf32>,
    %c0_334 = arith.constant 0 : index
    %c3_335 = arith.constant 3 : index
    %c0_336 = arith.constant 0 : index
    %c0_337 = arith.constant 0 : index
    %134 = tpu.strided_load %arg10[%c0_334, %c3_335, %c0_336, %c0_337] {strides = array<i32: 1, 2, 2, 1>} : memref<2x8x8x16xf32, #tpu.memory_space<vmem>>, vector<2x2x2x16xf32>
    %c0_338 = arith.constant 0 : index
    %c0_339 = arith.constant 0 : index
    %c0_340 = arith.constant 0 : index
    %c240 = arith.constant 240 : index
    %135 = vector.load %arg11[%c0_338, %c0_339, %c0_340, %c240] : memref<2x2x2x400xf32, #tpu.memory_space<vmem>>, vector<2x2x2x16xf32>
    tpu.vector_store %arg11[%c0_338, %c0_339, %c0_340, %c240], %134 {strides = array<i32>} : memref<2x2x2x400xf32, #tpu.memory_space<vmem>>, vector<2x2x2x16xf32>,
    %c0_341 = arith.constant 0 : index
    %c3_342 = arith.constant 3 : index
    %c1_343 = arith.constant 1 : index
    %c0_344 = arith.constant 0 : index
    %136 = tpu.strided_load %arg10[%c0_341, %c3_342, %c1_343, %c0_344] {strides = array<i32: 1, 2, 2, 1>} : memref<2x8x8x16xf32, #tpu.memory_space<vmem>>, vector<2x2x2x16xf32>
    %c0_345 = arith.constant 0 : index
    %c0_346 = arith.constant 0 : index
    %c0_347 = arith.constant 0 : index
    %c256 = arith.constant 256 : index
    %137 = vector.load %arg11[%c0_345, %c0_346, %c0_347, %c256] : memref<2x2x2x400xf32, #tpu.memory_space<vmem>>, vector<2x2x2x16xf32>
    tpu.vector_store %arg11[%c0_345, %c0_346, %c0_347, %c256], %136 {strides = array<i32>} : memref<2x2x2x400xf32, #tpu.memory_space<vmem>>, vector<2x2x2x16xf32>,
    %c0_348 = arith.constant 0 : index
    %c3_349 = arith.constant 3 : index
    %c2_350 = arith.constant 2 : index
    %c0_351 = arith.constant 0 : index
    %138 = tpu.strided_load %arg10[%c0_348, %c3_349, %c2_350, %c0_351] {strides = array<i32: 1, 2, 2, 1>} : memref<2x8x8x16xf32, #tpu.memory_space<vmem>>, vector<2x2x2x16xf32>
    %c0_352 = arith.constant 0 : index
    %c0_353 = arith.constant 0 : index
    %c0_354 = arith.constant 0 : index
    %c272 = arith.constant 272 : index
    %139 = vector.load %arg11[%c0_352, %c0_353, %c0_354, %c272] : memref<2x2x2x400xf32, #tpu.memory_space<vmem>>, vector<2x2x2x16xf32>
    tpu.vector_store %arg11[%c0_352, %c0_353, %c0_354, %c272], %138 {strides = array<i32>} : memref<2x2x2x400xf32, #tpu.memory_space<vmem>>, vector<2x2x2x16xf32>,
    %c0_355 = arith.constant 0 : index
    %c3_356 = arith.constant 3 : index
    %c3_357 = arith.constant 3 : index
    %c0_358 = arith.constant 0 : index
    %140 = tpu.strided_load %arg10[%c0_355, %c3_356, %c3_357, %c0_358] {strides = array<i32: 1, 2, 2, 1>} : memref<2x8x8x16xf32, #tpu.memory_space<vmem>>, vector<2x2x2x16xf32>
    %c0_359 = arith.constant 0 : index
    %c0_360 = arith.constant 0 : index
    %c0_361 = arith.constant 0 : index
    %c288 = arith.constant 288 : index
    %141 = vector.load %arg11[%c0_359, %c0_360, %c0_361, %c288] : memref<2x2x2x400xf32, #tpu.memory_space<vmem>>, vector<2x2x2x16xf32>
    tpu.vector_store %arg11[%c0_359, %c0_360, %c0_361, %c288], %140 {strides = array<i32>} : memref<2x2x2x400xf32, #tpu.memory_space<vmem>>, vector<2x2x2x16xf32>,
    %c0_362 = arith.constant 0 : index
    %c3_363 = arith.constant 3 : index
    %c4_364 = arith.constant 4 : index
    %c0_365 = arith.constant 0 : index
    %142 = tpu.strided_load %arg10[%c0_362, %c3_363, %c4_364, %c0_365] {strides = array<i32: 1, 2, 2, 1>} : memref<2x8x8x16xf32, #tpu.memory_space<vmem>>, vector<2x2x2x16xf32>
    %c0_366 = arith.constant 0 : index
    %c0_367 = arith.constant 0 : index
    %c0_368 = arith.constant 0 : index
    %c304 = arith.constant 304 : index
    %143 = vector.load %arg11[%c0_366, %c0_367, %c0_368, %c304] : memref<2x2x2x400xf32, #tpu.memory_space<vmem>>, vector<2x2x2x16xf32>
    tpu.vector_store %arg11[%c0_366, %c0_367, %c0_368, %c304], %142 {strides = array<i32>} : memref<2x2x2x400xf32, #tpu.memory_space<vmem>>, vector<2x2x2x16xf32>,
    %c0_369 = arith.constant 0 : index
    %c4_370 = arith.constant 4 : index
    %c0_371 = arith.constant 0 : index
    %c0_372 = arith.constant 0 : index
    %144 = tpu.strided_load %arg10[%c0_369, %c4_370, %c0_371, %c0_372] {strides = array<i32: 1, 2, 2, 1>} : memref<2x8x8x16xf32, #tpu.memory_space<vmem>>, vector<2x2x2x16xf32>
    %c0_373 = arith.constant 0 : index
    %c0_374 = arith.constant 0 : index
    %c0_375 = arith.constant 0 : index
    %c320 = arith.constant 320 : index
    %145 = vector.load %arg11[%c0_373, %c0_374, %c0_375, %c320] : memref<2x2x2x400xf32, #tpu.memory_space<vmem>>, vector<2x2x2x16xf32>
    tpu.vector_store %arg11[%c0_373, %c0_374, %c0_375, %c320], %144 {strides = array<i32>} : memref<2x2x2x400xf32, #tpu.memory_space<vmem>>, vector<2x2x2x16xf32>,
    %c0_376 = arith.constant 0 : index
    %c4_377 = arith.constant 4 : index
    %c1_378 = arith.constant 1 : index
    %c0_379 = arith.constant 0 : index
    %146 = tpu.strided_load %arg10[%c0_376, %c4_377, %c1_378, %c0_379] {strides = array<i32: 1, 2, 2, 1>} : memref<2x8x8x16xf32, #tpu.memory_space<vmem>>, vector<2x2x2x16xf32>
    %c0_380 = arith.constant 0 : index
    %c0_381 = arith.constant 0 : index
    %c0_382 = arith.constant 0 : index
    %c336 = arith.constant 336 : index
    %147 = vector.load %arg11[%c0_380, %c0_381, %c0_382, %c336] : memref<2x2x2x400xf32, #tpu.memory_space<vmem>>, vector<2x2x2x16xf32>
    tpu.vector_store %arg11[%c0_380, %c0_381, %c0_382, %c336], %146 {strides = array<i32>} : memref<2x2x2x400xf32, #tpu.memory_space<vmem>>, vector<2x2x2x16xf32>,
    %c0_383 = arith.constant 0 : index
    %c4_384 = arith.constant 4 : index
    %c2_385 = arith.constant 2 : index
    %c0_386 = arith.constant 0 : index
    %148 = tpu.strided_load %arg10[%c0_383, %c4_384, %c2_385, %c0_386] {strides = array<i32: 1, 2, 2, 1>} : memref<2x8x8x16xf32, #tpu.memory_space<vmem>>, vector<2x2x2x16xf32>
    %c0_387 = arith.constant 0 : index
    %c0_388 = arith.constant 0 : index
    %c0_389 = arith.constant 0 : index
    %c352 = arith.constant 352 : index
    %149 = vector.load %arg11[%c0_387, %c0_388, %c0_389, %c352] : memref<2x2x2x400xf32, #tpu.memory_space<vmem>>, vector<2x2x2x16xf32>
    tpu.vector_store %arg11[%c0_387, %c0_388, %c0_389, %c352], %148 {strides = array<i32>} : memref<2x2x2x400xf32, #tpu.memory_space<vmem>>, vector<2x2x2x16xf32>,
    %c0_390 = arith.constant 0 : index
    %c4_391 = arith.constant 4 : index
    %c3_392 = arith.constant 3 : index
    %c0_393 = arith.constant 0 : index
    %150 = tpu.strided_load %arg10[%c0_390, %c4_391, %c3_392, %c0_393] {strides = array<i32: 1, 2, 2, 1>} : memref<2x8x8x16xf32, #tpu.memory_space<vmem>>, vector<2x2x2x16xf32>
    %c0_394 = arith.constant 0 : index
    %c0_395 = arith.constant 0 : index
    %c0_396 = arith.constant 0 : index
    %c368 = arith.constant 368 : index
    %151 = vector.load %arg11[%c0_394, %c0_395, %c0_396, %c368] : memref<2x2x2x400xf32, #tpu.memory_space<vmem>>, vector<2x2x2x16xf32>
    tpu.vector_store %arg11[%c0_394, %c0_395, %c0_396, %c368], %150 {strides = array<i32>} : memref<2x2x2x400xf32, #tpu.memory_space<vmem>>, vector<2x2x2x16xf32>,
    %c0_397 = arith.constant 0 : index
    %c4_398 = arith.constant 4 : index
    %c4_399 = arith.constant 4 : index
    %c0_400 = arith.constant 0 : index
    %152 = tpu.strided_load %arg10[%c0_397, %c4_398, %c4_399, %c0_400] {strides = array<i32: 1, 2, 2, 1>} : memref<2x8x8x16xf32, #tpu.memory_space<vmem>>, vector<2x2x2x16xf32>
    %c0_401 = arith.constant 0 : index
    %c0_402 = arith.constant 0 : index
    %c0_403 = arith.constant 0 : index
    %c384 = arith.constant 384 : index
    %153 = vector.load %arg11[%c0_401, %c0_402, %c0_403, %c384] : memref<2x2x2x400xf32, #tpu.memory_space<vmem>>, vector<2x2x2x16xf32>
    tpu.vector_store %arg11[%c0_401, %c0_402, %c0_403, %c384], %152 {strides = array<i32>} : memref<2x2x2x400xf32, #tpu.memory_space<vmem>>, vector<2x2x2x16xf32>,
    %c0_404 = arith.constant 0 : index
    %c0_405 = arith.constant 0 : index
    %c0_406 = arith.constant 0 : index
    %c0_407 = arith.constant 0 : index
    %154 = vector.load %arg11[%c0_404, %c0_405, %c0_406, %c0_407] : memref<2x2x2x400xf32, #tpu.memory_space<vmem>>, vector<2x2x2x400xf32>
    %155 = vector.shape_cast %154 : vector<2x2x2x400xf32> to vector<8x400xf32>
    %156 = arith.truncf %155 : vector<8x400xf32> to vector<8x400xbf16>
    %c0_408 = arith.constant 0 : index
    %c0_409 = arith.constant 0 : index
    %157 = vector.load %arg4[%c0_408, %c0_409] : memref<400x32xbf16, #tpu.memory_space<vmem>>, vector<400x32xbf16>
    %cst_410 = arith.constant dense<0.000000e+00> : vector<8x32xf32>
    %158 = tpu.matmul %156, %157, %cst_410 {dimension_numbers = #tpu.dot_dimension_numbers<[1], [0], [0], [1], [0, 0, 1, 1], [], []>} : vector<8x400xbf16>, vector<400x32xbf16>, vector<8x32xf32> -> vector<8x32xf32>
    %c0_411 = arith.constant 0 : index
    %c0_412 = arith.constant 0 : index
    %159 = vector.load %arg5[%c0_411, %c0_412] : memref<32x128xf32, #tpu.memory_space<vmem>>, vector<32x128xf32>
    %cst_413 = arith.constant dense<0.000000e+00> : vector<8x128xf32>
    %160 = tpu.matmul %158, %159, %cst_413 {dimension_numbers = #tpu.dot_dimension_numbers<[1], [0], [0], [1], [0, 0, 1, 1], [], []>} : vector<8x32xf32>, vector<32x128xf32>, vector<8x128xf32> -> vector<8x128xf32>
    %c3_414 = arith.constant 3 : index
    %c0_415 = arith.constant 0 : index
    %161 = vector.load %arg6[%c3_414, %c0_415] : memref<4x128xf32, #tpu.memory_space<vmem>>, vector<1x128xf32>
    %162 = vector.extract_strided_slice %160 {offsets = [0, 0], sizes = [4, 128], strides = [1, 1]} : vector<8x128xf32> to vector<4x128xf32>
    %cst_416 = arith.constant dense<0.000000e+00> : vector<128xf32>
    %163 = vector.multi_reduction <add>, %162, %cst_416 [0] : vector<4x128xf32> to vector<128xf32>
    %164 = vector.shape_cast %163 : vector<128xf32> to vector<1x128xf32>
    %cst_417 = arith.constant 4.000000e+00 : f32
    %165 = vector.broadcast %cst_417 : f32 to vector<1x128xf32>
    %166 = arith.divf %164, %165 : vector<1x128xf32>
    %167 = arith.addf %166, %161 : vector<1x128xf32>
    %c0_418 = arith.constant 0 : index
    %c0_419 = arith.constant 0 : index
    %168 = vector.load %arg7[%c0_418, %c0_419] : memref<2x128xf32, #tpu.memory_space<vmem>>, vector<1x128xf32>
    tpu.vector_store %arg7[%c0_418, %c0_419], %167 {strides = array<i32>} : memref<2x128xf32, #tpu.memory_space<vmem>>, vector<1x128xf32>,
    %169 = vector.extract_strided_slice %160 {offsets = [4, 0], sizes = [4, 128], strides = [1, 1]} : vector<8x128xf32> to vector<4x128xf32>
    %cst_420 = arith.constant dense<0.000000e+00> : vector<128xf32>
    %170 = vector.multi_reduction <add>, %169, %cst_420 [0] : vector<4x128xf32> to vector<128xf32>
    %171 = vector.shape_cast %170 : vector<128xf32> to vector<1x128xf32>
    %cst_421 = arith.constant 4.000000e+00 : f32
    %172 = vector.broadcast %cst_421 : f32 to vector<1x128xf32>
    %173 = arith.divf %171, %172 : vector<1x128xf32>
    %174 = arith.addf %173, %161 : vector<1x128xf32>
    %c1_422 = arith.constant 1 : index
    %c0_423 = arith.constant 0 : index
    %175 = vector.load %arg7[%c1_422, %c0_423] : memref<2x128xf32, #tpu.memory_space<vmem>>, vector<1x128xf32>
    tpu.vector_store %arg7[%c1_422, %c0_423], %174 {strides = array<i32>} : memref<2x128xf32, #tpu.memory_space<vmem>>, vector<1x128xf32>,
    return
  }
  func.func @transform_0(%arg0: i32) -> (i32, i32) {
    %c0_i32 = arith.constant 0 : i32
    %c0_i32_0 = arith.constant 0 : i32
    %c0_i32_1 = arith.constant 0 : i32
    return %c0_i32, %c0_i32_0 : i32, i32
  }
  func.func @transform_1(%arg0: i32) -> (i32, i32) {
    %c0_i32 = arith.constant 0 : i32
    %c0_i32_0 = arith.constant 0 : i32
    %c0_i32_1 = arith.constant 0 : i32
    return %c0_i32, %c0_i32_0 : i32, i32
  }
  func.func @transform_2(%arg0: i32) -> (i32, i32) {
    %c0_i32 = arith.constant 0 : i32
    %c0_i32_0 = arith.constant 0 : i32
    %c0_i32_1 = arith.constant 0 : i32
    return %c0_i32, %c0_i32_0 : i32, i32
  }
  func.func @transform_3(%arg0: i32) -> (i32, i32) {
    %c0_i32 = arith.constant 0 : i32
    %c0_i32_0 = arith.constant 0 : i32
    %c0_i32_1 = arith.constant 0 : i32
    return %c0_i32, %c0_i32_0 : i32, i32
  }
  func.func @transform_4(%arg0: i32) -> (i32, i32) {
    %c0_i32 = arith.constant 0 : i32
    %c0_i32_0 = arith.constant 0 : i32
    %c0_i32_1 = arith.constant 0 : i32
    return %c0_i32, %c0_i32_0 : i32, i32
  }
  func.func @transform_5(%arg0: i32) -> (i32, i32) {
    %c0_i32 = arith.constant 0 : i32
    %c0_i32_0 = arith.constant 0 : i32
    %c0_i32_1 = arith.constant 0 : i32
    return %c0_i32, %c0_i32_0 : i32, i32
  }
  func.func @transform_6(%arg0: i32) -> (i32, i32) {
    %c0_i32 = arith.constant 0 : i32
    %c0_i32_0 = arith.constant 0 : i32
    %c0_i32_1 = arith.constant 0 : i32
    return %c0_i32, %c0_i32_0 : i32, i32
  }
}

</mosaic_0001>

<bundles_post_ra>
// kernel: reconstructor_forward.1
= control target key start
LH: loop header
LB: loop body
LE: loop exit
PB: predicated region body
PF: predicated region fallthrough
CT: control target
= control target key end

     0   :  { %vm303_vm0 = vcmask 64512   ;;  %v4209_v2 = vmov 0.0   ;;  %vm305_vm1 = vcmask 60416   ;;  %s4210_s9 = smov 8   ;;  %s4211_s12 = smov 16   ;;  %s5451_s0 = inlined_call_operand.vmem [shape: bf16[128,128], index: 0, kind: input, shape index: {}]   ;;  %s5452_s1 = inlined_call_operand.vmem [shape: bf16[128,8], index: 1, kind: input, shape index: {}]   ;;  %s5453_s2 = inlined_call_operand.vmem [shape: bf16[200,16], index: 2, kind: input, shape index: {}]   ;;  %s5454_s3 = inlined_call_operand.vmem [shape: bf16[400,32], index: 3, kind: input, shape index: {}]   ;;  %s5455_s4 = inlined_call_operand.vmem [shape: f32[32,128], index: 4, kind: input, shape index: {}]   ;;  %s5456_s5 = inlined_call_operand.vmem [shape: f32[4,128], index: 5, kind: input, shape index: {}]   ;;  %s5457_s6 = inlined_call_operand.hbm [shape: f32[2,128], index: 6, kind: output, shape index: {}]  }
   0x1   :  { %v4111_v0 = vld [vmem:[%s5452_s1] sm:$0xff]   ;;  %v4112_v1 = vld [vmem:[%s5452_s1 + $0x8] sm:$0xff]   ;;  %304 = vst.msk [vmem:[#allocation2] sm:$0xff] %vm303_vm0, %v4209_v2  ;;  %307 = vst.msk [vmem:[#allocation2 + $0x10] sm:$0xff] %vm303_vm0, %v4209_v2  ;;  %s4212_s17 = smov 24   ;;  %s4213_s18 = smov 32  }
   0x2   :  { %4041 = vmatprep.subr.bf16.mxu0 %v4111_v0  ;;  %309 = vst.msk [vmem:[#allocation2 + $0x20] sm:$0xff] %vm303_vm0, %v4209_v2  ;;  %311 = vst.msk [vmem:[#allocation2 + $0x30] sm:$0xff] %vm303_vm0, %v4209_v2  ;;  %v4113_v3 = vld [vmem:[%s5452_s1 + $0x10] sm:$0xff]   ;;  %v4114_v4 = vld [vmem:[%s5452_s1 + $0x18] sm:$0xff]   ;;  %s4214_s21 = smov 40   ;;  %s4215_s23 = smov 48  }
   0x3   :  { %313 = vst.msk [vmem:[#allocation2 + $0x40] sm:$0xff] %vm303_vm0, %v4209_v2  ;;  %315 = vst.msk [vmem:[#allocation2 + $0x50] sm:$0xff] %vm303_vm0, %v4209_v2  ;;  %4042 = vmatpush3.bf16.msra.mxu0 %v4111_v0  ;;  %v4119_v5 = vld [vmem:[%s5451_s0] sm:$0xff]   ;;  %v4116_v8 = vld [vmem:[%s5452_s1 + $0x28] sm:$0xff]   ;;  %s4216_s28 = smov 56   ;;  %s4217_s29 = smov 64  }
   0x4   :  { %317 = vst.msk [vmem:[#allocation2 + $0x60] sm:$0xff] %vm303_vm0, %v4209_v2  ;;  %319 = vst.msk [vmem:[#allocation2 + $0x70] sm:$0xff] %vm303_vm0, %v4209_v2  ;;  %4043 = vmatprep.subr.bf16.mxu0 %v4112_v1  ;;  %4057 = vmatprep.mubr.bf16.mxu0 %v4119_v5  ;;  %v4115_v6 = vld [vmem:[%s5452_s1 + $0x20] sm:$0xff]   ;;  %v4117_v11 = vld [vmem:[%s5452_s1 + $0x30] sm:$0xff]  }
   0x5   :  { %321 = vst.msk [vmem:[#allocation2 + $0x80] sm:$0xff] %vm303_vm0, %v4209_v2  ;;  %323 = vst.msk [vmem:[#allocation2 + $0x90] sm:$0xff] %vm303_vm0, %v4209_v2  ;;  %v4118_v13 = vld [vmem:[%s5452_s1 + $0x38] sm:$0xff]   ;;  %v4120_v17 = vld [vmem:[%s5451_s0 + $0x8] sm:$0xff]  }
   0x6   :  { %325 = vst.msk [vmem:[#allocation2 + $0xa0] sm:$0xff] %vm303_vm0, %v4209_v2  ;;  %329 = vst.msk [vmem:[#allocation2 + $0xc0] sm:$0xff] %vm303_vm0, %v4209_v2  ;;  %v4121_v18 = vld [vmem:[%s5451_s0 + $0x10] sm:$0xff]   ;;  %v4122_v21 = vld [vmem:[%s5451_s0 + $0x18] sm:$0xff]  }
   0x7   :  { %331 = vst.msk [vmem:[#allocation2 + $0xd0] sm:$0xff] %vm303_vm0, %v4209_v2  ;;  %333 = vst.msk [vmem:[#allocation2 + $0xe0] sm:$0xff] %vm303_vm0, %v4209_v2  ;;  %4044 = vmatpush3.bf16.msra.mxu0 %v4112_v1  ;;  %v4123_v22 = vld [vmem:[%s5451_s0 + $0x20] sm:$0xff]   ;;  %v4124_v25 = vld [vmem:[%s5451_s0 + $0x28] sm:$0xff]  }
   0x8   :  { %335 = vst.msk [vmem:[#allocation2 + $0xf0] sm:$0xff] %vm303_vm0, %v4209_v2  ;;  %337 = vst.msk [vmem:[#allocation2 + $0x100] sm:$0xff] %vm303_vm0, %v4209_v2  ;;  %4045 = vmatprep.subr.bf16.mxu0 %v4113_v3  ;;  %v394_v7 = vld [vmem:[#allocation2 + $0x1] ss:$2 sm:$0xf]  ;;  %v4125_v26 = vld [vmem:[%s5451_s0 + $0x30] sm:$0xff]  }
   0x9   :  { %339 = vst.msk [vmem:[#allocation2 + $0x110] sm:$0xff] %vm303_vm0, %v4209_v2  ;;  %341 = vst.msk [vmem:[#allocation2 + $0x120] sm:$0xff] %vm303_vm0, %v4209_v2  ;;  %417 = vrot.lane.b32.xlu0 %v394_v7, %s4210_s9  ;;  %v622_v16 = vld [vmem:[#allocation2 + $0x10] ss:$2 sm:$0xf] }
   0xa   :  { %343 = vst.msk [vmem:[#allocation2 + $0x130] sm:$0xff] %vm303_vm0, %v4209_v2  ;;  %345 = vst.msk [vmem:[#allocation2 + $0x140] sm:$0xff] %vm303_vm0, %v4209_v2  ;;  %v679_v19 = vld [vmem:[#allocation2 + $0x11] ss:$2 sm:$0xf] }
   0xb   :  { %347 = vst.msk [vmem:[#allocation2 + $0x150] sm:$0xff] %vm303_vm0, %v4209_v2  ;;  %349 = vst.msk [vmem:[#allocation2 + $0x160] sm:$0xff] %vm303_vm0, %v4209_v2  ;;  %4046 = vmatpush3.bf16.msra.mxu0 %v4113_v3 }
   0xc   :  { %306 = vst.msk [vmem:[#allocation2 + $0x8] sm:$0xf] %vm305_vm1, %v4209_v2  ;;  %308 = vst.msk [vmem:[#allocation2 + $0x18] sm:$0xf] %vm305_vm1, %v4209_v2  ;;  %4047 = vmatprep.subr.bf16.mxu0 %v4114_v4 }
   0xd   :  { %310 = vst.msk [vmem:[#allocation2 + $0x28] sm:$0xf] %vm305_vm1, %v4209_v2  ;;  %312 = vst.msk [vmem:[#allocation2 + $0x38] sm:$0xf] %vm305_vm1, %v4209_v2 }
   0xe   :  { %314 = vst.msk [vmem:[#allocation2 + $0x48] sm:$0xf] %vm305_vm1, %v4209_v2  ;;  %316 = vst.msk [vmem:[#allocation2 + $0x58] sm:$0xf] %vm305_vm1, %v4209_v2 }
   0xf   :  { %318 = vst.msk [vmem:[#allocation2 + $0x68] sm:$0xf] %vm305_vm1, %v4209_v2  ;;  %320 = vst.msk [vmem:[#allocation2 + $0x78] sm:$0xf] %vm305_vm1, %v4209_v2  ;;  %4048 = vmatpush3.bf16.msra.mxu0 %v4114_v4 }
  0x10   :  { %322 = vst.msk [vmem:[#allocation2 + $0x88] sm:$0xf] %vm305_vm1, %v4209_v2  ;;  %324 = vst.msk [vmem:[#allocation2 + $0x98] sm:$0xf] %vm305_vm1, %v4209_v2  ;;  %4049 = vmatprep.subr.bf16.mxu0 %v4115_v6 }
  0x11   :  { %326 = vst.msk [vmem:[#allocation2 + $0xa8] sm:$0xf] %vm305_vm1, %v4209_v2  ;;  %330 = vst.msk [vmem:[#allocation2 + $0xc8] sm:$0xf] %vm305_vm1, %v4209_v2 }
  0x12   :  { %332 = vst.msk [vmem:[#allocation2 + $0xd8] sm:$0xf] %vm305_vm1, %v4209_v2  ;;  %334 = vst.msk [vmem:[#allocation2 + $0xe8] sm:$0xf] %vm305_vm1, %v4209_v2 }
  0x13   :  { %336 = vst.msk [vmem:[#allocation2 + $0xf8] sm:$0xf] %vm305_vm1, %v4209_v2  ;;  %338 = vst.msk [vmem:[#allocation2 + $0x108] sm:$0xf] %vm305_vm1, %v4209_v2  ;;  %4050 = vmatpush3.bf16.msra.mxu0 %v4115_v6 }
  0x14   :  { %340 = vst.msk [vmem:[#allocation2 + $0x118] sm:$0xf] %vm305_vm1, %v4209_v2  ;;  %342 = vst.msk [vmem:[#allocation2 + $0x128] sm:$0xf] %vm305_vm1, %v4209_v2  ;;  %4051 = vmatprep.subr.bf16.mxu0 %v4116_v8 }
  0x15   :  { %344 = vst.msk [vmem:[#allocation2 + $0x138] sm:$0xf] %vm305_vm1, %v4209_v2  ;;  %346 = vst.msk [vmem:[#allocation2 + $0x148] sm:$0xf] %vm305_vm1, %v4209_v2 }
  0x16   :  { %348 = vst.msk [vmem:[#allocation2 + $0x158] sm:$0xf] %vm305_vm1, %v4209_v2  ;;  %350 = vst.msk [vmem:[#allocation2 + $0x168] sm:$0xf] %vm305_vm1, %v4209_v2 }
  0x17   :  { %v451_v9 = vld [vmem:[#allocation2 + $0x2] ss:$2 sm:$0xf]  ;;  %v508_v10 = vld [vmem:[#allocation2 + $0x3] ss:$2 sm:$0xf]  ;;  %4052 = vmatpush3.bf16.msra.mxu0 %v4116_v8 }
  0x18   :  { %474 = vrot.lane.b32.xlu0 %v451_v9, %s4211_s12  ;;  %v1446_v12 = vld [vmem:[#allocation2 + $0xa0] ss:$2 sm:$0xf]  ;;  %4053 = vmatprep.subr.bf16.mxu0 %v4117_v11  ;;  %v1502_v15 = vld [vmem:[#allocation2 + $0xa1] ss:$2 sm:$0xf] }
  0x19   :  { %v565_v14 = vld [vmem:[#allocation2 + $0x4] ss:$2 sm:$0xf]  ;;  %1469 = vrot.lane.b32.xlu1 %v1446_v12, %s4213_s18  ;;  %v736_v20 = vld [vmem:[#allocation2 + $0x12] ss:$2 sm:$0xf] }
  0x1a   :  { %v793_v23 = vld [vmem:[#allocation2 + $0x13] ss:$2 sm:$0xf]  ;;  %v402_v24 = vld [vmem:[#allocation2 + $0xc1] ss:$2 sm:$0xf] }
  0x1b   :  { %4054 = vmatpush3.bf16.msra.mxu0 %v4117_v11  ;;  %v850_v27 = vld [vmem:[#allocation2 + $0x14] ss:$2 sm:$0xf] }
  0x1c   :  { %531 = vrot.lane.b32.xlu0 %v508_v10, %s4212_s17  ;;  %4055 = vmatprep.subr.bf16.mxu0 %v4118_v13 }
  0x1d   :  { %1525 = vrot.lane.b32.xlu1 %v1502_v15, %s4214_s21 }
  0x1f   :  { %4056 = vmatpush3.bf16.msra.mxu0 %v4118_v13 }
  0x20   :  { %588 = vrot.lane.b32.xlu0 %v565_v14, %s4213_s18 }
  0x22   :  { %4058 = vmatmul.mubr.bf16.vlgmr.msra.gmra.mrb[0].mxu0 %v4120_v17 }
  0x23   :  { %4061 = vmatprep.mubr.bf16.mxu0 %v4121_v18 }
  0x24   :  { %645 = vrot.lane.b32.xlu0 %v622_v16, %s4214_s21 }
  0x28   :  { %702 = vrot.lane.b32.xlu0 %v679_v19, %s4215_s23 }
  0x2a   :  { %4062 = vmatmul.mubr.bf16.gmra.mrb[4].mxu0 %v4122_v21 }
  0x2b   :  { %4065 = vmatprep.mubr.bf16.mxu0 %v4123_v22 }
  0x2c   :  { %759 = vrot.lane.b32.xlu0 %v736_v20, %s4216_s28 }
  0x30   :  { %816 = vrot.lane.b32.xlu0 %v793_v23, %s4217_s29 }
  0x34   :  { %425 = vrot.lane.b32.xlu0 %v402_v24, %s4210_s9 }
  0x35   :  { %11 = vsyncpa [#allocation7], 0  ;;  %4066 = vmatmul.mubr.bf16.gmra.mrb[8].mxu0 %v4124_v25  ;;  %s4218_s11 = smov 72   ;;  %v459_v28 = vld [vmem:[#allocation2 + $0xc2] ss:$2 sm:$0xf] }
  0x36   :  { %4069 = vmatprep.mubr.bf16.mxu0 %v4125_v26  ;;  %v4126_v29 = vld [vmem:[%s5451_s0 + $0x38] sm:$0xff]   ;;  %v516_v30 = vld [vmem:[#allocation2 + $0xc3] ss:$2 sm:$0xf]  ;;  %vm441_vm2 = vcmask 126016   ;;  %vm498_vm3 = vcmask 191616  }
  0x37   :  { %v573_v31 = vld [vmem:[#allocation2 + $0xc4] ss:$2 sm:$0xf]  ;;  %v630_v32 = vld [vmem:[#allocation2 + $0xd0] ss:$2 sm:$0xf] }
  0x38   :  { %873 = vrot.lane.b32.xlu0 %v850_v27, %s4218_s11  ;;  %v687_v33 = vld [vmem:[#allocation2 + $0xd1] ss:$2 sm:$0xf]  ;;  %v1558_v34 = vld [vmem:[#allocation2 + $0xa2] ss:$2 sm:$0xf] }
  0x39   :  { %v744_v35 = vld [vmem:[#allocation2 + $0xd2] ss:$2 sm:$0xf]  ;;  %1581 = vrot.lane.b32.xlu1 %v1558_v34, %s4215_s23  ;;  %v1614_v36 = vld [vmem:[#allocation2 + $0xa3] ss:$2 sm:$0xf] }
  0x3a   :  { %v801_v37 = vld [vmem:[#allocation2 + $0xd3] ss:$2 sm:$0xf]  ;;  %v1670_v38 = vld [vmem:[#allocation2 + $0xa4] ss:$2 sm:$0xf] }
  0x3b   :  { %v858_v39 = vld [vmem:[#allocation2 + $0xd4] ss:$2 sm:$0xf]  ;;  %v370_v41 = vld [vmem:[#allocation2] ss:$2 sm:$0xf] }
  0x3c   :  { %482 = vrot.lane.b32.xlu0 %v459_v28, %s4211_s12  ;;  %385 = vst.msk [vmem:[#allocation3] sm:$0xf] %vm305_vm1, %v370_v41  ;;  %vm555_vm4 = vcmask 257216   ;;  %vm612_vm5 = vcmask 322816   ;;  %vm669_vm6 = vcmask 388416   ;;  %vm726_vm7 = vcmask 454016  }
  0x3d   :  { %4070 = vmatmul.mubr.bf16.gmra.mrb[12].mxu0 %v4126_v29  ;;  %1637 = vrot.lane.b32.xlu1 %v1614_v36, %s4216_s28  ;;  %vm783_vm8 = vcmask 519616   ;;  %vm840_vm9 = vcmask 585216   ;;  %v378_v49 = vld [vmem:[#allocation2 + $0xc0] ss:$2 sm:$0xf]  ;;  %vm897_vm10 = vcmask 650816  }
  0x3e   :  { %389 = vst.msk [vmem:[#allocation3 + $0x20] sm:$0xf] %vm305_vm1, %v378_v49  ;;  %v4447_v60 = vld [vmem:[%s5456_s5] ss:$0 sm:$0xff]  ;;  %s4219_s16 = smov 80   ;;  %s4220_s19 = smov 88  }
  0x3f   :  { %s4221_s20 = smov 96   ;;  %s4222_s1 = smov 104  }
  0x40   :  { %539 = vrot.lane.b32.xlu0 %v516_v30, %s4212_s17  ;;  %s4223_s22 = smov 112   ;;  %s4224_s24 = smov 120  }
  0x41   :  { %1693 = vrot.lane.b32.xlu1 %v1670_v38, %s4217_s29 }
  0x44   :  { %596 = vrot.lane.b32.xlu0 %v573_v31, %s4213_s18 }
  0x48   :  { %653 = vrot.lane.b32.xlu0 %v630_v32, %s4214_s21 }
  0x4c   :  { %710 = vrot.lane.b32.xlu0 %v687_v33, %s4215_s23 }
  0x50   :  { %767 = vrot.lane.b32.xlu0 %v744_v35, %s4216_s28 }
  0x54   :  { %824 = vrot.lane.b32.xlu0 %v801_v37, %s4217_s29 }
  0x58   :  { %881 = vrot.lane.b32.xlu0 %v858_v39, %s4218_s11 }
  0x7b   :  { %v418_v40 = vpop.permute.xlu0 %417 }
  0x7c   :  { %442 = vst.msk [vmem:[#allocation3] sm:$0xf] %vm441_vm2, %v418_v40 }
  0x8a   :  { %v475_v42 = vpop.permute.xlu0 %474 }
  0x8b   :  { %499 = vst.msk [vmem:[#allocation3] sm:$0xf] %vm498_vm3, %v475_v42 }
  0x8e   :  { %v532_v43 = vpop.permute.xlu0 %531 }
  0x8f   :  { %556 = vst.msk [vmem:[#allocation3] sm:$0xf] %vm555_vm4, %v532_v43 }
  0x92   :  { %v589_v44 = vpop.permute.xlu0 %588 }
  0x93   :  { %613 = vst.msk [vmem:[#allocation3] sm:$0xf] %vm612_vm5, %v589_v44 }
  0x96   :  { %v646_v45 = vpop.permute.xlu0 %645 }
  0x97   :  { %670 = vst.msk [vmem:[#allocation3] sm:$0xf] %vm669_vm6, %v646_v45 }
  0x9a   :  { %v703_v46 = vpop.permute.xlu0 %702 }
  0x9b   :  { %727 = vst.msk [vmem:[#allocation3] sm:$0xf] %vm726_vm7, %v703_v46 }
  0x9e   :  { %v760_v47 = vpop.permute.xlu0 %759 }
  0x9f   :  { %784 = vst.msk [vmem:[#allocation3] sm:$0xf] %vm783_vm8, %v760_v47 }
  0xa2   :  { %v817_v48 = vpop.permute.xlu0 %816 }
  0xa3   :  { %841 = vst.msk [vmem:[#allocation3] sm:$0xf] %vm840_vm9, %v817_v48 }
  0xa6   :  { %v426_v50 = vpop.permute.xlu0 %425 }
  0xa7   :  { %446 = vst.msk [vmem:[#allocation3 + $0x20] sm:$0xf] %vm441_vm2, %v426_v50 }
  0xaa   :  { %v874_v51 = vpop.permute.xlu0 %873 }
  0xab   :  { %898 = vst.msk [vmem:[#allocation3] sm:$0xf] %vm897_vm10, %v874_v51 }
  0xae   :  { %v483_v52 = vpop.permute.xlu0 %482 }
  0xaf   :  { %503 = vst.msk [vmem:[#allocation3 + $0x20] sm:$0xf] %vm498_vm3, %v483_v52 }
  0xb2   :  { %v540_v53 = vpop.permute.xlu0 %539 }
  0xb3   :  { %560 = vst.msk [vmem:[#allocation3 + $0x20] sm:$0xf] %vm555_vm4, %v540_v53 }
  0xb6   :  { %v597_v54 = vpop.permute.xlu0 %596 }
  0xb7   :  { %617 = vst.msk [vmem:[#allocation3 + $0x20] sm:$0xf] %vm612_vm5, %v597_v54 }
  0xba   :  { %v654_v55 = vpop.permute.xlu0 %653 }
  0xbb   :  { %674 = vst.msk [vmem:[#allocation3 + $0x20] sm:$0xf] %vm669_vm6, %v654_v55 }
  0xbe   :  { %v711_v56 = vpop.permute.xlu0 %710 }
  0xbf   :  { %731 = vst.msk [vmem:[#allocation3 + $0x20] sm:$0xf] %vm726_vm7, %v711_v56 }
  0xc2   :  { %v768_v57 = vpop.permute.xlu0 %767 }
  0xc3   :  { %788 = vst.msk [vmem:[#allocation3 + $0x20] sm:$0xf] %vm783_vm8, %v768_v57 }
  0xc6   :  { %v825_v58 = vpop.permute.xlu0 %824 }
  0xc7   :  { %845 = vst.msk [vmem:[#allocation3 + $0x20] sm:$0xf] %vm840_vm9, %v825_v58 }
  0xca   :  { %v882_v59 = vpop.permute.xlu0 %881 }
  0xcb   :  { %902 = vst.msk [vmem:[#allocation3 + $0x20] sm:$0xf] %vm897_vm10, %v882_v59 }
  0xf5   :  { %v4059_v61 = vpop.f32.mrb[0].mxu0 }
  0xf6   :  { %v201_v62 = vadd.f32 %v4059_v61, %v4447_v60  ;;  %v192_v63 = vpop.f32.mrb[1].mxu0 }
  0xf7   :  { %v193_v0 = vadd.f32 %v4447_v60, %v192_v63  ;;  %v4060_v1 = vpop.f32.mrb[2].mxu0 }
  0xf8   :  { %vm257_vm11 = vcmp.ge.f32.partialorder %v201_v62, 0.0  ;;  %v273_v3 = vmul.f32 0.2, %v201_v62  ;;  %v204_v4 = vadd.f32 %v4060_v1, %v4447_v60  ;;  %v195_v5 = vpop.f32.mrb[3].mxu0 }
  0xf9   :  { %vm255_vm12 = vcmp.ge.f32.partialorder %v193_v0, 0.0  ;;  %v271_v6 = vmul.f32 0.2, %v193_v0  ;;  %v196_v7 = vadd.f32 %v4447_v60, %v195_v5 }
  0xfa   :  { %v289_v8 = vsel %vm257_vm11, %v201_v62, %v273_v3  ;;  %vm258_vm13 = vcmp.ge.f32.partialorder %v204_v4, 0.0  ;;  %v274_v9 = vmul.f32 0.2, %v204_v4 }
  0xfb   :  { %356 = vst.msk [vmem:[#allocation2 + $0x42] sm:$0xff] %vm303_vm0, %v289_v8  ;;  %v287_v10 = vsel %vm255_vm12, %v193_v0, %v271_v6  ;;  %vm256_vm14 = vcmp.ge.f32.partialorder %v196_v7, 0.0  ;;  %v272_v11 = vmul.f32 0.2, %v196_v7 }
  0xfc   :  { %354 = vst.msk [vmem:[#allocation2 + $0x22] sm:$0xff] %vm303_vm0, %v287_v10  ;;  %v290_v12 = vsel %vm258_vm13, %v204_v4, %v274_v9 }
  0xfd   :  { %357 = vst.msk [vmem:[#allocation2 + $0x52] sm:$0xff] %vm303_vm0, %v290_v12  ;;  %v288_v13 = vsel %vm256_vm14, %v196_v7, %v272_v11  ;;  %v4063_v14 = vpop.f32.mrb[4].mxu0 }
  0xfe   :  { %355 = vst.msk [vmem:[#allocation2 + $0x32] sm:$0xff] %vm303_vm0, %v288_v13  ;;  %v217_v15 = vadd.f32 %v4063_v14, %v4447_v60  ;;  %v208_v16 = vpop.f32.mrb[5].mxu0 }
  0xff   :  { %v209_v17 = vadd.f32 %v4447_v60, %v208_v16  ;;  %v4064_v18 = vpop.f32.mrb[6].mxu0 }
 0x100   :  { %vm261_vm15 = vcmp.ge.f32.partialorder %v217_v15, 0.0  ;;  %v277_v19 = vmul.f32 0.2, %v217_v15  ;;  %v211_v20 = vpop.f32.mrb[7].mxu0  ;;  %v220_v30 = vadd.f32 %v4064_v18, %v4447_v60 }
 0x101   :  { %vm259_vm11 = vcmp.ge.f32.partialorder %v209_v17, 0.0  ;;  %v275_v21 = vmul.f32 0.2, %v209_v17  ;;  %v212_v31 = vadd.f32 %v4447_v60, %v211_v20 }
 0x102   :  { %v455_v22 = vld [vmem:[#allocation2 + $0x42] ss:$2 sm:$0xf]  ;;  %v398_v23 = vld [vmem:[#allocation2 + $0x41] ss:$2 sm:$0xf]  ;;  %v293_v24 = vsel %vm261_vm15, %v217_v15, %v277_v19 }
 0x103   :  { %478 = vrot.lane.b32.xlu0 %v455_v22, %s4211_s12  ;;  %421 = vrot.lane.b32.xlu1 %v398_v23, %s4210_s9  ;;  %360 = vst.msk [vmem:[#allocation2 + $0x82] sm:$0xff] %vm303_vm0, %v293_v24  ;;  %v291_v25 = vsel %vm259_vm11, %v209_v17, %v275_v21  ;;  %v512_v26 = vld [vmem:[#allocation2 + $0x43] ss:$2 sm:$0xf]  ;;  %vm262_vm12 = vcmp.ge.f32.partialorder %v220_v30, 0.0  ;;  %vm260_vm13 = vcmp.ge.f32.partialorder %v212_v31, 0.0 }
 0x104   :  { %358 = vst.msk [vmem:[#allocation2 + $0x62] sm:$0xff] %vm303_vm0, %v291_v25  ;;  %v908_v27 = vld [vmem:[#allocation2 + $0x40] ss:$2 sm:$0xf]  ;;  %v278_v34 = vmul.f32 0.2, %v220_v30 }
 0x105   :  { %v569_v28 = vld [vmem:[#allocation2 + $0x44] ss:$2 sm:$0xf]  ;;  %v965_v29 = vld [vmem:[#allocation2 + $0x41] ss:$2 sm:$0xf] }
 0x106   :  { %v1440_v32 = vld [vmem:[#allocation2 + $0x40] ss:$2 sm:$0xf]  ;;  %v276_v35 = vmul.f32 0.2, %v212_v31  ;;  %v294_v38 = vsel %vm262_vm12, %v220_v30, %v278_v34 }
 0x107   :  { %535 = vrot.lane.b32.xlu0 %v512_v26, %s4212_s17  ;;  %931 = vrot.lane.b32.xlu1 %v908_v27, %s4219_s16  ;;  %v1022_v33 = vld [vmem:[#allocation2 + $0x42] ss:$2 sm:$0xf]  ;;  %v1496_v36 = vld [vmem:[#allocation2 + $0x41] ss:$2 sm:$0xf] }
 0x108   :  { %v1079_v37 = vld [vmem:[#allocation2 + $0x43] ss:$2 sm:$0xf]  ;;  %v292_v39 = vsel %vm260_vm13, %v212_v31, %v276_v35  ;;  %361 = vst.msk [vmem:[#allocation2 + $0x92] sm:$0xff] %vm303_vm0, %v294_v38  ;;  %v4067_v49 = vpop.f32.mrb[8].mxu0 }
 0x109   :  { %359 = vst.msk [vmem:[#allocation2 + $0x72] sm:$0xff] %vm303_vm0, %v292_v39  ;;  %v1552_v40 = vld [vmem:[#allocation2 + $0x42] ss:$2 sm:$0xf]  ;;  %v233_v52 = vadd.f32 %v4067_v49, %v4447_v60  ;;  %v224_v56 = vpop.f32.mrb[9].mxu0 }
 0x10a   :  { %v1136_v41 = vld [vmem:[#allocation2 + $0x44] ss:$2 sm:$0xf]  ;;  %v1608_v42 = vld [vmem:[#allocation2 + $0x43] ss:$2 sm:$0xf]  ;;  %v225_v58 = vadd.f32 %v4447_v60, %v224_v56 }
 0x10b   :  { %592 = vrot.lane.b32.xlu0 %v569_v28, %s4213_s18  ;;  %988 = vrot.lane.b32.xlu1 %v965_v29, %s4220_s19  ;;  %v453_v43 = vld [vmem:[#allocation2 + $0x22] ss:$2 sm:$0xf]  ;;  %v510_v45 = vld [vmem:[#allocation2 + $0x23] ss:$2 sm:$0xf] }
 0x10c   :  { %v1664_v44 = vld [vmem:[#allocation2 + $0x44] ss:$2 sm:$0xf]  ;;  %v396_v48 = vld [vmem:[#allocation2 + $0x21] ss:$2 sm:$0xf] }
 0x10d   :  { %v374_v46 = vld [vmem:[#allocation2 + $0x40] ss:$2 sm:$0xf]  ;;  %v1274_v50 = vld [vmem:[#allocation2 + $0x52] ss:$2 sm:$0xf] }
 0x10e   :  { %387 = vst.msk [vmem:[#allocation3 + $0x10] sm:$0xf] %vm305_vm1, %v374_v46  ;;  %v567_v47 = vld [vmem:[#allocation2 + $0x24] ss:$2 sm:$0xf]  ;;  %vm265_vm14 = vcmp.ge.f32.partialorder %v233_v52, 0.0 }
 0x10f   :  { %1463 = vrot.lane.b32.xlu0 %v1440_v32, %s4213_s18  ;;  %1045 = vrot.lane.b32.xlu1 %v1022_v33, %s4221_s20  ;;  %v906_v51 = vld [vmem:[#allocation2 + $0x20] ss:$2 sm:$0xf]  ;;  %v1330_v53 = vld [vmem:[#allocation2 + $0x53] ss:$2 sm:$0xf] }
 0x110   :  { %v281_v54 = vmul.f32 0.2, %v233_v52  ;;  %v963_v55 = vld [vmem:[#allocation2 + $0x21] ss:$2 sm:$0xf]  ;;  %v4068_v61 = vpop.f32.mrb[10].mxu0 }
 0x111   :  { %v372_v59 = vld [vmem:[#allocation2 + $0x20] ss:$2 sm:$0xf]  ;;  %v236_v62 = vadd.f32 %v4068_v61, %v4447_v60  ;;  %v227_v63 = vpop.f32.mrb[11].mxu0  ;;  %vm263_vm15 = vcmp.ge.f32.partialorder %v225_v58, 0.0 }
 0x112   :  { %v297_v57 = vsel %vm265_vm14, %v233_v52, %v281_v54  ;;  %386 = vst.msk [vmem:[#allocation3 + $0x8] sm:$0xf] %vm305_vm1, %v372_v59  ;;  %v279_v0 = vmul.f32 0.2, %v225_v58  ;;  %v228_v1 = vadd.f32 %v4447_v60, %v227_v63  ;;  %v4071_v24 = vpop.f32.mrb[12].mxu0 }
 0x113   :  { %1519 = vrot.lane.b32.xlu0 %v1496_v36, %s4214_s21  ;;  %1102 = vrot.lane.b32.xlu1 %v1079_v37, %s4222_s1  ;;  %364 = vst.msk [vmem:[#allocation2 + $0x102] sm:$0xff] %vm303_vm0, %v297_v57  ;;  %v1250_v3 = vld [vmem:[#allocation2 + $0x51] ss:$2 sm:$0xf]  ;;  %vm266_vm11 = vcmp.ge.f32.partialorder %v236_v62, 0.0  ;;  %v249_v26 = vadd.f32 %v4071_v24, %v4447_v60  ;;  %v240_v27 = vpop.f32.mrb[13].mxu0 }
 0x114   :  { %v1386_v4 = vld [vmem:[#allocation2 + $0x54] ss:$2 sm:$0xf]  ;;  %v282_v5 = vmul.f32 0.2, %v236_v62  ;;  %v295_v7 = vsel %vm263_vm15, %v225_v58, %v279_v0  ;;  %vm264_vm12 = vcmp.ge.f32.partialorder %v228_v1, 0.0  ;;  %v241_v28 = vadd.f32 %v4447_v60, %v240_v27 }
 0x115   :  { %1264 = vst.msk [vmem:[#allocation3 + $0xc] sm:$0xf] %vm305_vm1, %v1250_v3  ;;  %v1020_v6 = vld [vmem:[#allocation2 + $0x22] ss:$2 sm:$0xf]  ;;  %v4072_v29 = vpop.f32.mrb[14].mxu0 }
 0x116   :  { %v280_v8 = vmul.f32 0.2, %v228_v1  ;;  %362 = vst.msk [vmem:[#allocation2 + $0xe2] sm:$0xff] %vm303_vm0, %v295_v7  ;;  %v298_v9 = vsel %vm266_vm11, %v236_v62, %v282_v5  ;;  %v1248_v10 = vld [vmem:[#allocation2 + $0x31] ss:$2 sm:$0xf]  ;;  %v252_v31 = vadd.f32 %v4072_v29, %v4447_v60 }
 0x117   :  { %1575 = vrot.lane.b32.xlu0 %v1552_v40, %s4215_s23  ;;  %1159 = vrot.lane.b32.xlu1 %v1136_v41, %s4223_s22  ;;  %365 = vst.msk [vmem:[#allocation2 + $0x112] sm:$0xff] %vm303_vm0, %v298_v9  ;;  %v376_v12 = vld [vmem:[#allocation2 + $0x60] ss:$2 sm:$0xf]  ;;  %vm269_vm13 = vcmp.ge.f32.partialorder %v249_v26, 0.0  ;;  %v243_v32 = vpop.f32.mrb[15].mxu0 }
 0x118   :  { %v296_v11 = vsel %vm264_vm12, %v228_v1, %v280_v8  ;;  %1263 = vst.msk [vmem:[#allocation3 + $0x4] sm:$0xf] %vm305_vm1, %v1248_v10  ;;  %v1254_v13 = vld [vmem:[#allocation2 + $0x91] ss:$2 sm:$0xf]  ;;  %vm267_vm14 = vcmp.ge.f32.partialorder %v241_v28, 0.0  ;;  %v244_v35 = vadd.f32 %v4447_v60, %v243_v32 }
 0x119   :  { %363 = vst.msk [vmem:[#allocation2 + $0xf2] sm:$0xff] %vm303_vm0, %v296_v11  ;;  %v1252_v14 = vld [vmem:[#allocation2 + $0x71] ss:$2 sm:$0xf]  ;;  %v285_v30 = vmul.f32 0.2, %v249_v26 }
 0x11a   :  { %388 = vst.msk [vmem:[#allocation3 + $0x18] sm:$0xf] %vm305_vm1, %v376_v12  ;;  %1266 = vst.msk [vmem:[#allocation3 + $0x1c] sm:$0xf] %vm305_vm1, %v1254_v13  ;;  %v283_v34 = vmul.f32 0.2, %v241_v28 }
 0x11b   :  { %1631 = vrot.lane.b32.xlu0 %v1608_v42, %s4216_s28  ;;  %476 = vrot.lane.b32.xlu1 %v453_v43, %s4211_s12  ;;  %v1193_v15 = vld [vmem:[#allocation2 + $0x50] ss:$2 sm:$0xf]  ;;  %v1077_v16 = vld [vmem:[#allocation2 + $0x23] ss:$2 sm:$0xf]  ;;  %v301_v37 = vsel %vm269_vm13, %v249_v26, %v285_v30 }
 0x11c   :  { %1265 = vst.msk [vmem:[#allocation3 + $0x14] sm:$0xf] %vm305_vm1, %v1252_v14  ;;  %v624_v17 = vld [vmem:[#allocation2 + $0x30] ss:$2 sm:$0xf]  ;;  %vm270_vm15 = vcmp.ge.f32.partialorder %v252_v31, 0.0  ;;  %v299_v39 = vsel %vm267_vm14, %v241_v28, %v283_v34 }
 0x11d   :  { %v1134_v18 = vld [vmem:[#allocation2 + $0x24] ss:$2 sm:$0xf]  ;;  %v681_v19 = vld [vmem:[#allocation2 + $0x31] ss:$2 sm:$0xf] }
 0x11e   :  { %v626_v20 = vld [vmem:[#allocation2 + $0x50] ss:$2 sm:$0xf]  ;;  %v683_v22 = vld [vmem:[#allocation2 + $0x51] ss:$2 sm:$0xf] }
 0x11f   :  { %1687 = vrot.lane.b32.xlu0 %v1664_v44, %s4217_s29  ;;  %533 = vrot.lane.b32.xlu1 %v510_v45, %s4212_s17  ;;  %v738_v21 = vld [vmem:[#allocation2 + $0x32] ss:$2 sm:$0xf]  ;;  %v795_v23 = vld [vmem:[#allocation2 + $0x33] ss:$2 sm:$0xf] }
 0x120   :  { %v740_v25 = vld [vmem:[#allocation2 + $0x52] ss:$2 sm:$0xf]  ;;  %v797_v36 = vld [vmem:[#allocation2 + $0x53] ss:$2 sm:$0xf] }
 0x121   :  { %v852_v33 = vld [vmem:[#allocation2 + $0x34] ss:$2 sm:$0xf]  ;;  %v286_v38 = vmul.f32 0.2, %v252_v31  ;;  %368 = vst.msk [vmem:[#allocation2 + $0x142] sm:$0xff] %vm303_vm0, %v301_v37 }
 0x122   :  { %vm268_vm11 = vcmp.ge.f32.partialorder %v244_v35, 0.0  ;;  %v284_v40 = vmul.f32 0.2, %v244_v35  ;;  %366 = vst.msk [vmem:[#allocation2 + $0x122] sm:$0xff] %vm303_vm0, %v299_v39  ;;  %v4225_v11 = vmov 0   ;;  %v4129_v30 = vld [vmem:[%s5453_s2 + $0x10] sm:$0xff]  }
 0x123   :  { %590 = vrot.lane.b32.xlu1 %v567_v47, %s4213_s18  ;;  %419 = vrot.lane.b32.xlu0 %v396_v48, %s4210_s9  ;;  %v302_v41 = vsel %vm270_vm15, %v252_v31, %v286_v38  ;;  %v912_v60 = vld [vmem:[#allocation2 + $0x80] ss:$2 sm:$0xf]  ;;  %v854_v43 = vld [vmem:[#allocation2 + $0x54] ss:$2 sm:$0xf] }
 0x124   :  { %369 = vst.msk [vmem:[#allocation2 + $0x152] sm:$0xff] %vm303_vm0, %v302_v41  ;;  %v300_v42 = vsel %vm268_vm11, %v244_v35, %v284_v40  ;;  %v969_v44 = vld [vmem:[#allocation2 + $0x81] ss:$2 sm:$0xf]  ;;  %1866 = vmatprep.subr.bf16.mxu1 %v4225_v11  ;;  %v4130_v35 = vld [vmem:[%s5453_s2 + $0x18] sm:$0xff]   ;;  %vm1067_vm12 = vcmask 847616  }
 0x125   :  { %367 = vst.msk [vmem:[#allocation2 + $0x132] sm:$0xff] %vm303_vm0, %v300_v42  ;;  %v1272_v45 = vld [vmem:[#allocation2 + $0x32] ss:$2 sm:$0xf]  ;;  %v4131_v38 = vld [vmem:[%s5453_s2 + $0x20] sm:$0xff]   ;;  %vm953_vm0 = vcmask 716416  }
 0x126   :  { %v1026_v46 = vld [vmem:[#allocation2 + $0x82] ss:$2 sm:$0xf]  ;;  %v1328_v47 = vld [vmem:[#allocation2 + $0x33] ss:$2 sm:$0xf] }
 0x127   :  { %1297 = vrot.lane.b32.xlu1 %v1274_v50, %s4210_s9  ;;  %929 = vrot.lane.b32.xlu0 %v906_v51, %s4219_s16  ;;  %v382_v48 = vld [vmem:[#allocation2 + $0x100] ss:$2 sm:$0xf]  ;;  %v1083_v49 = vld [vmem:[#allocation2 + $0x83] ss:$2 sm:$0xf]  ;;  %v4533_v51 = vpop.permute.xlu1 %1469 }
 0x128   :  { %391 = vst.msk [vmem:[#allocation3 + $0x30] sm:$0xf] %vm305_vm1, %v382_v48  ;;  %v1384_v50 = vld [vmem:[#allocation2 + $0x34] ss:$2 sm:$0xf]  ;;  %vm1124_vm13 = vcmask 913216  }
 0x129   :  { %v380_v52 = vld [vmem:[#allocation2 + $0xe0] ss:$2 sm:$0xf]  ;;  %v1258_v54 = vld [vmem:[#allocation2 + $0x111] ss:$2 sm:$0xf] }
 0x12a   :  { %390 = vst.msk [vmem:[#allocation3 + $0x28] sm:$0xf] %vm305_vm1, %v380_v52  ;;  %1268 = vst.msk [vmem:[#allocation3 + $0x2c] sm:$0xf] %vm305_vm1, %v1258_v54  ;;  %vm1181_vm14 = vcmask 978816   ;;  %vm5458_vm15 = vcmask 1043456  }
 0x12b   :  { %1353 = vrot.lane.b32.xlu1 %v1330_v53, %s4211_s12  ;;  %986 = vrot.lane.b32.xlu0 %v963_v55, %s4220_s19  ;;  %v1140_v53 = vld [vmem:[#allocation2 + $0x84] ss:$2 sm:$0xf]  ;;  %v1191_v55 = vld [vmem:[#allocation2 + $0x30] ss:$2 sm:$0xf]  ;;  %v4540_v57 = vpop.permute.xlu1 %1525 }
 0x12c   :  { %v1256_v56 = vld [vmem:[#allocation2 + $0xf1] ss:$2 sm:$0xf]  ;;  %v400_v58 = vld [vmem:[#allocation2 + $0x61] ss:$2 sm:$0xf] }
 0x12d   :  { %1267 = vst.msk [vmem:[#allocation3 + $0x24] sm:$0xf] %vm305_vm1, %v1256_v56  ;;  %v1444_v59 = vld [vmem:[#allocation2 + $0x80] ss:$2 sm:$0xf]  ;;  %vm1238_vm11 = vcmask 1044416  }
 0x12e   :  { %v457_v61 = vld [vmem:[#allocation2 + $0x62] ss:$2 sm:$0xf]  ;;  %v1500_v62 = vld [vmem:[#allocation2 + $0x81] ss:$2 sm:$0xf] }
 0x12f   :  { %1409 = vrot.lane.b32.xlu1 %v1386_v4, %s4212_s17  ;;  %1043 = vrot.lane.b32.xlu0 %v1020_v6, %s4221_s20  ;;  %v4546_v63 = vpop.permute.xlu1 %1581  ;;  %v514_v0 = vld [vmem:[#allocation2 + $0x63] ss:$2 sm:$0xf]  ;;  %v1556_v1 = vld [vmem:[#allocation2 + $0x82] ss:$2 sm:$0xf] }
 0x130   :  { %v571_v4 = vld [vmem:[#allocation2 + $0x64] ss:$2 sm:$0xf]  ;;  %v1612_v5 = vld [vmem:[#allocation2 + $0x83] ss:$2 sm:$0xf] }
 0x131   :  { %v1442_v6 = vld [vmem:[#allocation2 + $0x60] ss:$2 sm:$0xf]  ;;  %v1498_v9 = vld [vmem:[#allocation2 + $0x61] ss:$2 sm:$0xf] }
 0x132   :  { %v1668_v7 = vld [vmem:[#allocation2 + $0x84] ss:$2 sm:$0xf]  ;;  %v1278_v28 = vld [vmem:[#allocation2 + $0x92] ss:$2 sm:$0xf] }
 0x133   :  { %1216 = vrot.lane.b32.xlu1 %v1193_v15, %s4224_s24  ;;  %1100 = vrot.lane.b32.xlu0 %v1077_v16, %s4222_s1  ;;  %v4550_v3 = vpop.permute.xlu1 %1637  ;;  %v910_v10 = vld [vmem:[#allocation2 + $0x60] ss:$2 sm:$0xf]  ;;  %v967_v15 = vld [vmem:[#allocation2 + $0x61] ss:$2 sm:$0xf] }
 0x134   :  { %v1554_v14 = vld [vmem:[#allocation2 + $0x62] ss:$2 sm:$0xf]  ;;  %v1276_v34 = vld [vmem:[#allocation2 + $0x72] ss:$2 sm:$0xf] }
 0x135   :  { %v4127_v16 = vld [vmem:[%s5453_s2] sm:$0xff]   ;;  %v1390_v39 = vld [vmem:[#allocation2 + $0x94] ss:$2 sm:$0xf] }
 0x136   :  { %1867 = vmatpush1.bf16.msra.mxu1 %v4127_v16  ;;  %v1666_v24 = vld [vmem:[#allocation2 + $0x64] ss:$2 sm:$0xf]  ;;  %v1332_v40 = vld [vmem:[#allocation2 + $0x73] ss:$2 sm:$0xf] }
 0x137   :  { %647 = vrot.lane.b32.xlu1 %v624_v17, %s4214_s21  ;;  %1157 = vrot.lane.b32.xlu0 %v1134_v18, %s4223_s22  ;;  %v4556_v8 = vpop.permute.xlu1 %1693  ;;  %v1138_v29 = vld [vmem:[#allocation2 + $0x64] ss:$2 sm:$0xf]  ;;  %v1260_v41 = vld [vmem:[#allocation2 + $0x131] ss:$2 sm:$0xf] }
 0x138   :  { %1868 = vmatprep.subr.bf16.mxu1 %v4225_v11  ;;  %1269 = vst.msk [vmem:[#allocation3 + $0x34] sm:$0xf] %vm305_vm1, %v1260_v41  ;;  %v628_v52 = vld [vmem:[#allocation2 + $0x70] ss:$2 sm:$0xf] }
 0x139   :  { %v406_v54 = vld [vmem:[#allocation2 + $0x101] ss:$2 sm:$0xf]  ;;  %v4137_v16 = vld [vmem:[%s5453_s2 + $0x50] sm:$0xff]  }
 0x13b   :  { %704 = vrot.lane.b32.xlu1 %v681_v19, %s4215_s23  ;;  %649 = vrot.lane.b32.xlu0 %v626_v20, %s4214_s21  ;;  %v1610_v19 = vld [vmem:[#allocation2 + $0x63] ss:$2 sm:$0xf]  ;;  %v1024_v20 = vld [vmem:[#allocation2 + $0x62] ss:$2 sm:$0xf] }
 0x13f   :  { %761 = vrot.lane.b32.xlu1 %v738_v21, %s4216_s28  ;;  %706 = vrot.lane.b32.xlu0 %v683_v22, %s4215_s23  ;;  %v4128_v21 = vld [vmem:[%s5453_s2 + $0x8] sm:$0xff]  }
 0x140   :  { %1869 = vmatpush1.bf16.msra.mxu1 %v4128_v21  ;;  %v914_v21 = vld [vmem:[#allocation2 + $0xe0] ss:$2 sm:$0xf] }
 0x141   :  { %1870 = vmatprep.subr.bf16.mxu1 %v4225_v11 }
 0x143   :  { %818 = vrot.lane.b32.xlu1 %v795_v23, %s4217_s29  ;;  %763 = vrot.lane.b32.xlu0 %v740_v25, %s4216_s28  ;;  %v1081_v25 = vld [vmem:[#allocation2 + $0x63] ss:$2 sm:$0xf] }
 0x144   :  { %1871 = vmatpush1.bf16.msra.mxu1 %v4129_v30  ;;  %v634_v30 = vld [vmem:[#allocation2 + $0x110] ss:$2 sm:$0xf] }
 0x145   :  { %1872 = vmatprep.subr.bf16.mxu1 %v4225_v11 }
 0x147   :  { %875 = vrot.lane.b32.xlu1 %v852_v33, %s4218_s11  ;;  %820 = vrot.lane.b32.xlu0 %v797_v36, %s4217_s29  ;;  %v1334_v33 = vld [vmem:[#allocation2 + $0x93] ss:$2 sm:$0xf] }
 0x148   :  { %1873 = vmatpush1.bf16.msra.mxu1 %v4130_v35 }
 0x149   :  { %1874 = vmatprep.subr.bf16.mxu1 %v4225_v11 }
 0x14b   :  { %935 = vrot.lane.b32.xlu1 %v912_v60, %s4219_s16  ;;  %877 = vrot.lane.b32.xlu0 %v854_v43, %s4218_s11  ;;  %v4132_v43 = vld [vmem:[%s5453_s2 + $0x28] sm:$0xff]  }
 0x14c   :  { %1875 = vmatpush1.bf16.msra.mxu1 %v4131_v38  ;;  %v461_v38 = vld [vmem:[#allocation2 + $0xe2] ss:$2 sm:$0xf] }
 0x14d   :  { %1876 = vmatprep.subr.bf16.mxu1 %v4225_v11 }
 0x14f   :  { %992 = vrot.lane.b32.xlu1 %v969_v44, %s4220_s19  ;;  %1295 = vrot.lane.b32.xlu0 %v1272_v45, %s4210_s9  ;;  %v384_v44 = vld [vmem:[#allocation2 + $0x120] ss:$2 sm:$0xf]  ;;  %v1197_v45 = vld [vmem:[#allocation2 + $0x90] ss:$2 sm:$0xf] }
 0x150   :  { %392 = vst.msk [vmem:[#allocation3 + $0x38] sm:$0xf] %vm305_vm1, %v384_v44  ;;  %1877 = vmatpush1.bf16.msra.mxu1 %v4132_v43  ;;  %v748_v43 = vld [vmem:[#allocation2 + $0x112] ss:$2 sm:$0xf] }
 0x151   :  { %1878 = vmatprep.subr.bf16.mxu1 %v4225_v11 }
 0x153   :  { %1049 = vrot.lane.b32.xlu1 %v1026_v46, %s4221_s20  ;;  %1351 = vrot.lane.b32.xlu0 %v1328_v47, %s4211_s12  ;;  %v1388_v46 = vld [vmem:[#allocation2 + $0x74] ss:$2 sm:$0xf]  ;;  %v1262_v47 = vld [vmem:[#allocation2 + $0x151] ss:$2 sm:$0xf] }
 0x154   :  { %1270 = vst.msk [vmem:[#allocation3 + $0x3c] sm:$0xf] %vm305_vm1, %v1262_v47  ;;  %vm1010_vm1 = vcmask 782016   ;;  %v805_v47 = vld [vmem:[#allocation2 + $0x113] ss:$2 sm:$0xf] }
 0x157   :  { %1106 = vrot.lane.b32.xlu1 %v1083_v49, %s4222_s1  ;;  %1407 = vrot.lane.b32.xlu0 %v1384_v50, %s4212_s17  ;;  %v4133_v50 = vld [vmem:[%s5453_s2 + $0x30] sm:$0xff]  }
 0x158   :  { %1879 = vmatpush1.bf16.msra.mxu1 %v4133_v50 }
 0x159   :  { %1880 = vmatprep.subr.bf16.mxu1 %v4225_v11 }
 0x15b   :  { %1163 = vrot.lane.b32.xlu1 %v1140_v53, %s4223_s22  ;;  %1214 = vrot.lane.b32.xlu0 %v1191_v55, %s4224_s24  ;;  %v1195_v53 = vld [vmem:[#allocation2 + $0x70] ss:$2 sm:$0xf] }
 0x15f   :  { %423 = vrot.lane.b32.xlu1 %v400_v58, %s4210_s9  ;;  %1467 = vrot.lane.b32.xlu0 %v1444_v59, %s4213_s18  ;;  %v4134_v58 = vld [vmem:[%s5453_s2 + $0x38] sm:$0xff]   ;;  %v685_v59 = vld [vmem:[#allocation2 + $0x71] ss:$2 sm:$0xf] }
 0x160   :  { %1881 = vmatpush1.bf16.msra.mxu1 %v4134_v58  ;;  %v1336_v58 = vld [vmem:[#allocation2 + $0xf3] ss:$2 sm:$0xf] }
 0x161   :  { %1882 = vmatprep.subr.bf16.mxu1 %v4225_v11 }
 0x163   :  { %480 = vrot.lane.b32.xlu1 %v457_v61, %s4211_s12  ;;  %1523 = vrot.lane.b32.xlu0 %v1500_v62, %s4214_s21  ;;  %v463_v61 = vld [vmem:[#allocation2 + $0x102] ss:$2 sm:$0xf] }
 0x167   :  { %537 = vrot.lane.b32.xlu1 %v514_v0, %s4212_s17  ;;  %1579 = vrot.lane.b32.xlu0 %v1556_v1, %s4215_s23  ;;  %v742_v1 = vld [vmem:[#allocation2 + $0x72] ss:$2 sm:$0xf] }
 0x16b   :  { %594 = vrot.lane.b32.xlu1 %v571_v4, %s4213_s18  ;;  %1635 = vrot.lane.b32.xlu0 %v1612_v5, %s4216_s28  ;;  %v520_v4 = vld [vmem:[#allocation2 + $0x103] ss:$2 sm:$0xf] }
 0x16c   :  { %v4135_v5 = vld [vmem:[%s5453_s2 + $0x40] sm:$0xff]  }
 0x16d   :  { %1883 = vmatpush1.bf16.msra.mxu1 %v4135_v5  ;;  %v689_v5 = vld [vmem:[#allocation2 + $0xf1] ss:$2 sm:$0xf] }
 0x16e   :  { %1884 = vmatprep.subr.bf16.mxu1 %v4225_v11 }
 0x16f   :  { %1465 = vrot.lane.b32.xlu1 %v1442_v6, %s4213_s18  ;;  %1691 = vrot.lane.b32.xlu0 %v1668_v7, %s4217_s29 }
 0x173   :  { %1521 = vrot.lane.b32.xlu1 %v1498_v9, %s4214_s21  ;;  %933 = vrot.lane.b32.xlu0 %v910_v10, %s4219_s16  ;;  %v799_v9 = vld [vmem:[#allocation2 + $0x73] ss:$2 sm:$0xf]  ;;  %v4136_v10 = vld [vmem:[%s5453_s2 + $0x48] sm:$0xff]  }
 0x174   :  { %1885 = vmatpush1.bf16.msra.mxu1 %v4136_v10 }
 0x175   :  { %v479_v12 = vpop.permute.xlu0 %478  ;;  %v422_v13 = vpop.permute.xlu1 %421  ;;  %1886 = vmatprep.subr.bf16.mxu1 %v4225_v11 }
 0x176   :  { %444 = vst.msk [vmem:[#allocation3 + $0x10] sm:$0xf] %vm441_vm2, %v422_v13 }
 0x177   :  { %501 = vst.msk [vmem:[#allocation3 + $0x10] sm:$0xf] %vm498_vm3, %v479_v12  ;;  %1577 = vrot.lane.b32.xlu1 %v1554_v14, %s4215_s23  ;;  %990 = vrot.lane.b32.xlu0 %v967_v15, %s4220_s19  ;;  %v577_v12 = vld [vmem:[#allocation2 + $0x104] ss:$2 sm:$0xf] }
 0x178   :  { %v856_v15 = vld [vmem:[#allocation2 + $0x74] ss:$2 sm:$0xf]  ;;  %1887 = vmatpush1.bf16.msra.mxu1 %v4137_v16 }
 0x179   :  { %v536_v17 = vpop.permute.xlu0 %535  ;;  %v4568_v18 = vpop.permute.xlu1 %931  ;;  %1888 = vmatprep.subr.bf16.mxu1 %v4225_v11 }
 0x17a   :  { %558 = vst.msk [vmem:[#allocation3 + $0x10] sm:$0xf] %vm555_vm4, %v536_v17 }
 0x17b   :  { %1633 = vrot.lane.b32.xlu1 %v1610_v19, %s4216_s28  ;;  %1047 = vrot.lane.b32.xlu0 %v1024_v20, %s4221_s20  ;;  %v916_v20 = vld [vmem:[#allocation2 + $0x100] ss:$2 sm:$0xf] }
 0x17d   :  { %v593_v22 = vpop.permute.xlu0 %592  ;;  %v4577_v23 = vpop.permute.xlu1 %988 }
 0x17e   :  { %615 = vst.msk [vmem:[#allocation3 + $0x10] sm:$0xf] %vm612_vm5, %v593_v22  ;;  %v4138_v22 = vld [vmem:[%s5453_s2 + $0x58] sm:$0xff]  }
 0x17f   :  { %1689 = vrot.lane.b32.xlu1 %v1666_v24, %s4217_s29  ;;  %1104 = vrot.lane.b32.xlu0 %v1081_v25, %s4222_s1  ;;  %v4139_v24 = vld [vmem:[%s5453_s2 + $0x60] ss:$0 sps:$4 sm:$0xff]  }
 0x180   :  { %1889 = vmatpush1.bf16.msra.mxu1 %v4138_v22  ;;  %v408_v22 = vld [vmem:[#allocation2 + $0x121] ss:$2 sm:$0xf] }
 0x181   :  { %v4583_v26 = vpop.permute.xlu0 %1463  ;;  %v4585_v27 = vpop.permute.xlu1 %1045  ;;  %1890 = vmatprep.subr.bf16.mxu1 %v4225_v11 }
 0x183   :  { %1301 = vrot.lane.b32.xlu1 %v1278_v28, %s4210_s9  ;;  %1161 = vrot.lane.b32.xlu0 %v1138_v29, %s4223_s22  ;;  %v404_v29 = vld [vmem:[#allocation2 + $0xe1] ss:$2 sm:$0xf] }
 0x185   :  { %v4592_v31 = vpop.permute.xlu0 %1519  ;;  %v4594_v32 = vpop.permute.xlu1 %1102 }
 0x187   :  { %1357 = vrot.lane.b32.xlu1 %v1334_v33, %s4211_s12  ;;  %1299 = vrot.lane.b32.xlu0 %v1276_v34, %s4210_s9  ;;  %v1864_v33 = vsel %vm5458_vm15, %v4139_v24, 0  ;;  %v975_v24 = vld [vmem:[#allocation2 + $0x121] ss:$2 sm:$0xf]  ;;  %vm1855_vm15 = vcmask 588800  }
 0x188   :  { %1891 = vmatpush1.bf16.msra.mxu1 %v1864_v33 }
 0x189   :  { %v4602_v36 = vpop.permute.xlu0 %1575  ;;  %v4604_v37 = vpop.permute.xlu1 %1159  ;;  %3550 = vmatprep.subr.bf16.mxu1 %v4225_v11 }
 0x18b   :  { %1413 = vrot.lane.b32.xlu1 %v1390_v39, %s4212_s17  ;;  %1355 = vrot.lane.b32.xlu0 %v1332_v40, %s4211_s12  ;;  %v691_v39 = vld [vmem:[#allocation2 + $0x111] ss:$2 sm:$0xf] }
 0x18d   :  { %v4613_v42 = vpop.permute.xlu0 %1631  ;;  %v477_v60 = vpop.permute.xlu1 %476 }
 0x18f   :  { %1220 = vrot.lane.b32.xlu1 %v1197_v45, %s4224_s24  ;;  %1411 = vrot.lane.b32.xlu0 %v1388_v46, %s4212_s17  ;;  %v575_v46 = vld [vmem:[#allocation2 + $0xe4] ss:$2 sm:$0xf] }
 0x191   :  { %v4623_v48 = vpop.permute.xlu0 %1687  ;;  %v534_v49 = vpop.permute.xlu1 %533 }
 0x193   :  { %651 = vrot.lane.b32.xlu1 %v628_v52, %s4214_s21  ;;  %1218 = vrot.lane.b32.xlu0 %v1195_v53, %s4224_s24  ;;  %v1282_v52 = vld [vmem:[#allocation2 + $0x112] ss:$2 sm:$0xf] }
 0x194   :  { %v862_v53 = vld [vmem:[#allocation2 + $0x114] ss:$2 sm:$0xf] }
 0x195   :  { %v591_v55 = vpop.permute.xlu1 %590  ;;  %v420_v56 = vpop.permute.xlu0 %419 }
 0x196   :  { %443 = vst.msk [vmem:[#allocation3 + $0x8] sm:$0xf] %vm441_vm2, %v420_v56  ;;  %v1280_v56 = vld [vmem:[#allocation2 + $0xf2] ss:$2 sm:$0xf] }
 0x197   :  { %500 = vst.msk [vmem:[#allocation3 + $0x8] sm:$0xf] %vm498_vm3, %v477_v60  ;;  %708 = vrot.lane.b32.xlu1 %v685_v59, %s4215_s23  ;;  %429 = vrot.lane.b32.xlu0 %v406_v54, %s4210_s9  ;;  %v518_v60 = vld [vmem:[#allocation2 + $0xe3] ss:$2 sm:$0xf] }
 0x198   :  { %557 = vst.msk [vmem:[#allocation3 + $0x8] sm:$0xf] %vm555_vm4, %v534_v49 }
 0x199   :  { %614 = vst.msk [vmem:[#allocation3 + $0x8] sm:$0xf] %vm612_vm5, %v591_v55  ;;  %v1298_v62 = vpop.permute.xlu1 %1297  ;;  %v930_v0 = vpop.permute.xlu0 %929 }
 0x19a   :  { %1320 = vst.msk [vmem:[#allocation3 + $0xc] sm:$0xf] %vm441_vm2, %v1298_v62  ;;  %v1392_v62 = vld [vmem:[#allocation2 + $0xf4] ss:$2 sm:$0xf] }
 0x19b   :  { %954 = vst.msk [vmem:[#allocation3] sm:$0xf] %vm953_vm0, %v930_v0  ;;  %765 = vrot.lane.b32.xlu1 %v742_v1, %s4216_s28  ;;  %486 = vrot.lane.b32.xlu0 %v463_v61, %s4211_s12  ;;  %v632_v61 = vld [vmem:[#allocation2 + $0xf0] ss:$2 sm:$0xf] }
 0x19c   :  { %v918_v0 = vld [vmem:[#allocation2 + $0x120] ss:$2 sm:$0xf] }
 0x19d   :  { %v1354_v6 = vpop.permute.xlu1 %1353  ;;  %v987_v7 = vpop.permute.xlu0 %986 }
 0x19e   :  { %1376 = vst.msk [vmem:[#allocation3 + $0xc] sm:$0xf] %vm498_vm3, %v1354_v6  ;;  %v1284_v6 = vld [vmem:[#allocation2 + $0x132] ss:$2 sm:$0xf] }
 0x19f   :  { %1011 = vst.msk [vmem:[#allocation3] sm:$0xf] %vm1010_vm1, %v987_v7  ;;  %822 = vrot.lane.b32.xlu1 %v799_v9, %s4217_s29  ;;  %543 = vrot.lane.b32.xlu0 %v520_v4, %s4212_s17 }
 0x1a1   :  { %v1410_v13 = vpop.permute.xlu1 %1409  ;;  %v1044_v14 = vpop.permute.xlu0 %1043 }
 0x1a2   :  { %1432 = vst.msk [vmem:[#allocation3 + $0xc] sm:$0xf] %vm555_vm4, %v1410_v13 }
 0x1a3   :  { %1068 = vst.msk [vmem:[#allocation3] sm:$0xf] %vm1067_vm12, %v1044_v14  ;;  %879 = vrot.lane.b32.xlu1 %v856_v15, %s4218_s11  ;;  %600 = vrot.lane.b32.xlu0 %v577_v12, %s4213_s18 }
 0x1a5   :  { %v4665_v17 = vpop.permute.xlu1 %1216  ;;  %v1101_v19 = vpop.permute.xlu0 %1100 }
 0x1a6   :  { %1125 = vst.msk [vmem:[#allocation3] sm:$0xf] %vm1124_vm13, %v1101_v19  ;;  %v971_v19 = vld [vmem:[#allocation2 + $0xe1] ss:$2 sm:$0xf] }
 0x1a7   :  { %939 = vrot.lane.b32.xlu1 %v916_v20, %s4219_s16  ;;  %937 = vrot.lane.b32.xlu0 %v914_v21, %s4219_s16 }
 0x1a9   :  { %v648_v25 = vpop.permute.xlu1 %647  ;;  %v1158_v28 = vpop.permute.xlu0 %1157 }
 0x1aa   :  { %671 = vst.msk [vmem:[#allocation3 + $0x8] sm:$0xf] %vm669_vm6, %v648_v25 }
 0x1ab   :  { %1182 = vst.msk [vmem:[#allocation3] sm:$0xf] %vm1181_vm14, %v1158_v28  ;;  %427 = vrot.lane.b32.xlu1 %v404_v29, %s4210_s9  ;;  %657 = vrot.lane.b32.xlu0 %v634_v30, %s4214_s21  ;;  %v465_v29 = vld [vmem:[#allocation2 + $0x122] ss:$2 sm:$0xf] }
 0x1ac   :  { %v1448_v30 = vld [vmem:[#allocation2 + $0x100] ss:$2 sm:$0xf] }
 0x1ad   :  { %v705_v34 = vpop.permute.xlu1 %704  ;;  %v650_v35 = vpop.permute.xlu0 %649 }
 0x1ae   :  { %728 = vst.msk [vmem:[#allocation3 + $0x8] sm:$0xf] %vm726_vm7, %v705_v34 }
 0x1af   :  { %672 = vst.msk [vmem:[#allocation3 + $0x10] sm:$0xf] %vm669_vm6, %v650_v35  ;;  %484 = vrot.lane.b32.xlu1 %v461_v38, %s4211_s12  ;;  %714 = vrot.lane.b32.xlu0 %v691_v39, %s4215_s23  ;;  %v522_v35 = vld [vmem:[#allocation2 + $0x123] ss:$2 sm:$0xf] }
 0x1b0   :  { %v1452_v38 = vld [vmem:[#allocation2 + $0x140] ss:$2 sm:$0xf] }
 0x1b1   :  { %v762_v40 = vpop.permute.xlu1 %761  ;;  %v707_v41 = vpop.permute.xlu0 %706 }
 0x1b2   :  { %785 = vst.msk [vmem:[#allocation3 + $0x8] sm:$0xf] %vm783_vm8, %v762_v40 }
 0x1b3   :  { %729 = vst.msk [vmem:[#allocation3 + $0x10] sm:$0xf] %vm726_vm7, %v707_v41  ;;  %541 = vrot.lane.b32.xlu1 %v518_v60, %s4212_s17  ;;  %771 = vrot.lane.b32.xlu0 %v748_v43, %s4216_s28  ;;  %v579_v41 = vld [vmem:[#allocation2 + $0x124] ss:$2 sm:$0xf] }
 0x1b4   :  { %v1028_v60 = vld [vmem:[#allocation2 + $0xe2] ss:$2 sm:$0xf] }
 0x1b5   :  { %v819_v44 = vpop.permute.xlu1 %818  ;;  %v764_v45 = vpop.permute.xlu0 %763 }
 0x1b6   :  { %842 = vst.msk [vmem:[#allocation3 + $0x8] sm:$0xf] %vm840_vm9, %v819_v44 }
 0x1b7   :  { %786 = vst.msk [vmem:[#allocation3 + $0x10] sm:$0xf] %vm783_vm8, %v764_v45  ;;  %598 = vrot.lane.b32.xlu1 %v575_v46, %s4213_s18  ;;  %828 = vrot.lane.b32.xlu0 %v805_v47, %s4217_s29  ;;  %v1286_v45 = vld [vmem:[#allocation2 + $0x152] ss:$2 sm:$0xf] }
 0x1b8   :  { %v1032_v46 = vld [vmem:[#allocation2 + $0x122] ss:$2 sm:$0xf] }
 0x1b9   :  { %v876_v49 = vpop.permute.xlu1 %875  ;;  %v821_v50 = vpop.permute.xlu0 %820 }
 0x1ba   :  { %899 = vst.msk [vmem:[#allocation3 + $0x8] sm:$0xf] %vm897_vm10, %v876_v49 }
 0x1bb   :  { %843 = vst.msk [vmem:[#allocation3 + $0x10] sm:$0xf] %vm840_vm9, %v821_v50  ;;  %1305 = vrot.lane.b32.xlu1 %v1282_v52, %s4210_s9  ;;  %885 = vrot.lane.b32.xlu0 %v862_v53, %s4218_s11  ;;  %v1342_v50 = vld [vmem:[#allocation2 + $0x153] ss:$2 sm:$0xf] }
 0x1bc   :  { %955 = vst.msk [vmem:[#allocation3 + $0x8] sm:$0xf] %vm953_vm0, %v4568_v18  ;;  %v1338_v18 = vld [vmem:[#allocation2 + $0x113] ss:$2 sm:$0xf] }
 0x1bd   :  { %1012 = vst.msk [vmem:[#allocation3 + $0x8] sm:$0xf] %vm1010_vm1, %v4577_v23  ;;  %v4706_v54 = vpop.permute.xlu1 %935  ;;  %v878_v55 = vpop.permute.xlu0 %877  ;;  %v1504_v52 = vld [vmem:[#allocation2 + $0x101] ss:$2 sm:$0xf] }
 0x1be   :  { %1069 = vst.msk [vmem:[#allocation3 + $0x8] sm:$0xf] %vm1067_vm12, %v4585_v27 }
 0x1bf   :  { %1126 = vst.msk [vmem:[#allocation3 + $0x8] sm:$0xf] %vm1124_vm13, %v4594_v32  ;;  %1361 = vrot.lane.b32.xlu1 %v1338_v18, %s4211_s12  ;;  %1303 = vrot.lane.b32.xlu0 %v1280_v56, %s4210_s9  ;;  %v1394_v32 = vld [vmem:[#allocation2 + $0x114] ss:$2 sm:$0xf] }
 0x1c0   :  { %900 = vst.msk [vmem:[#allocation3 + $0x10] sm:$0xf] %vm897_vm10, %v878_v55  ;;  %v1398_v18 = vld [vmem:[#allocation2 + $0x154] ss:$2 sm:$0xf] }
 0x1c1   :  { %1183 = vst.msk [vmem:[#allocation3 + $0x8] sm:$0xf] %vm1181_vm14, %v4604_v37  ;;  %v4717_v23 = vpop.permute.xlu1 %992  ;;  %v1296_v27 = vpop.permute.xlu0 %1295  ;;  %v1508_v56 = vld [vmem:[#allocation2 + $0x141] ss:$2 sm:$0xf] }
 0x1c2   :  { %1240 = vst.msk [vmem:[#allocation3 + $0x8] sm:$0xf] %vm1238_vm11, %v4665_v17  ;;  %v920_v17 = vld [vmem:[#allocation2 + $0x140] ss:$2 sm:$0xf] }
 0x1c3   :  { %1319 = vst.msk [vmem:[#allocation3 + $0x4] sm:$0xf] %vm441_vm2, %v1296_v27  ;;  %1417 = vrot.lane.b32.xlu1 %v1394_v32, %s4212_s17  ;;  %1359 = vrot.lane.b32.xlu0 %v1336_v58, %s4211_s12  ;;  %v636_v58 = vld [vmem:[#allocation2 + $0x130] ss:$2 sm:$0xf] }
 0x1c5   :  { %v4722_v59 = vpop.permute.xlu1 %1049  ;;  %v1352_v37 = vpop.permute.xlu0 %1351 }
 0x1c6   :  { %1375 = vst.msk [vmem:[#allocation3 + $0x4] sm:$0xf] %vm498_vm3, %v1352_v37  ;;  %v1085_v37 = vld [vmem:[#allocation2 + $0xe3] ss:$2 sm:$0xf] }
 0x1c7   :  { %655 = vrot.lane.b32.xlu1 %v632_v61, %s4214_s21  ;;  %1415 = vrot.lane.b32.xlu0 %v1392_v62, %s4212_s17 }
 0x1c9   :  { %v4727_v1 = vpop.permute.xlu1 %1106  ;;  %v1408_v4 = vpop.permute.xlu0 %1407 }
 0x1ca   :  { %1431 = vst.msk [vmem:[#allocation3 + $0x4] sm:$0xf] %vm555_vm4, %v1408_v4  ;;  %v1089_v4 = vld [vmem:[#allocation2 + $0x123] ss:$2 sm:$0xf] }
 0x1cb   :  { %1487 = vst.msk [vmem:[#allocation3 + $0x4] sm:$0xf] %vm612_vm5, %v4583_v26  ;;  %712 = vrot.lane.b32.xlu1 %v689_v5, %s4215_s23  ;;  %941 = vrot.lane.b32.xlu0 %v918_v0, %s4219_s16  ;;  %v746_v26 = vld [vmem:[#allocation2 + $0xf2] ss:$2 sm:$0xf] }
 0x1cc   :  { %1543 = vst.msk [vmem:[#allocation3 + $0x4] sm:$0xf] %vm669_vm6, %v4592_v31  ;;  %v1340_v31 = vld [vmem:[#allocation2 + $0x133] ss:$2 sm:$0xf] }
 0x1cd   :  { %1599 = vst.msk [vmem:[#allocation3 + $0x4] sm:$0xf] %vm726_vm7, %v4602_v36  ;;  %v4738_v7 = vpop.permute.xlu1 %1163  ;;  %v1215_v9 = vpop.permute.xlu0 %1214  ;;  %v803_v36 = vld [vmem:[#allocation2 + $0xf3] ss:$2 sm:$0xf] }
 0x1ce   :  { %1655 = vst.msk [vmem:[#allocation3 + $0x4] sm:$0xf] %vm783_vm8, %v4613_v42  ;;  %v1396_v42 = vld [vmem:[#allocation2 + $0x134] ss:$2 sm:$0xf] }
 0x1cf   :  { %1239 = vst.msk [vmem:[#allocation3] sm:$0xf] %vm1238_vm11, %v1215_v9  ;;  %769 = vrot.lane.b32.xlu1 %v746_v26, %s4216_s28  ;;  %1307 = vrot.lane.b32.xlu0 %v1284_v6, %s4210_s9  ;;  %v693_v0 = vld [vmem:[#allocation2 + $0x131] ss:$2 sm:$0xf] }
 0x1d0   :  { %1711 = vst.msk [vmem:[#allocation3 + $0x4] sm:$0xf] %vm840_vm9, %v4623_v48  ;;  %v860_v48 = vld [vmem:[#allocation2 + $0xf4] ss:$2 sm:$0xf] }
 0x1d1   :  { %v424_v10 = vpop.permute.xlu1 %423  ;;  %v4747_v12 = vpop.permute.xlu0 %1467  ;;  %v750_v9 = vld [vmem:[#allocation2 + $0x132] ss:$2 sm:$0xf] }
 0x1d2   :  { %445 = vst.msk [vmem:[#allocation3 + $0x18] sm:$0xf] %vm441_vm2, %v424_v10  ;;  %v864_v10 = vld [vmem:[#allocation2 + $0x134] ss:$2 sm:$0xf] }
 0x1d3   :  { %826 = vrot.lane.b32.xlu1 %v803_v36, %s4217_s29  ;;  %1363 = vrot.lane.b32.xlu0 %v1340_v31, %s4211_s12 }
 0x1d5   :  { %v481_v13 = vpop.permute.xlu1 %480  ;;  %v4752_v14 = vpop.permute.xlu0 %1523 }
 0x1d6   :  { %502 = vst.msk [vmem:[#allocation3 + $0x18] sm:$0xf] %vm498_vm3, %v481_v13  ;;  %v973_v13 = vld [vmem:[#allocation2 + $0x101] ss:$2 sm:$0xf] }
 0x1d7   :  { %883 = vrot.lane.b32.xlu1 %v860_v48, %s4218_s11  ;;  %1419 = vrot.lane.b32.xlu0 %v1396_v42, %s4212_s17 }
 0x1d9   :  { %v538_v15 = vpop.permute.xlu1 %537  ;;  %v4757_v16 = vpop.permute.xlu0 %1579 }
 0x1da   :  { %559 = vst.msk [vmem:[#allocation3 + $0x18] sm:$0xf] %vm555_vm4, %v538_v15 }
 0x1db   :  { %943 = vrot.lane.b32.xlu1 %v920_v17, %s4219_s16  ;;  %994 = vrot.lane.b32.xlu0 %v971_v19, %s4220_s19  ;;  %v1616_v17 = vld [vmem:[#allocation2 + $0x103] ss:$2 sm:$0xf] }
 0x1dd   :  { %v595_v20 = vpop.permute.xlu1 %594  ;;  %v4762_v21 = vpop.permute.xlu0 %1635 }
 0x1de   :  { %616 = vst.msk [vmem:[#allocation3 + $0x18] sm:$0xf] %vm612_vm5, %v595_v20 }
 0x1df   :  { %431 = vrot.lane.b32.xlu1 %v408_v22, %s4210_s9  ;;  %998 = vrot.lane.b32.xlu0 %v975_v24, %s4220_s19  ;;  %v1620_v22 = vld [vmem:[#allocation2 + $0x143] ss:$2 sm:$0xf]  ;;  %v1454_v24 = vld [vmem:[#allocation2 + $0x160] ss:$2 sm:$0xf] }
 0x1e1   :  { %v1466_v25 = vpop.permute.xlu1 %1465  ;;  %v4767_v28 = vpop.permute.xlu0 %1691 }
 0x1e2   :  { %1488 = vst.msk [vmem:[#allocation3 + $0xc] sm:$0xf] %vm612_vm5, %v1466_v25 }
 0x1e3   :  { %488 = vrot.lane.b32.xlu1 %v465_v29, %s4211_s12  ;;  %1471 = vrot.lane.b32.xlu0 %v1448_v30, %s4213_s18  ;;  %v1203_v29 = vld [vmem:[#allocation2 + $0x130] ss:$2 sm:$0xf] }
 0x1e5   :  { %v1522_v33 = vpop.permute.xlu1 %1521  ;;  %v934_v34 = vpop.permute.xlu0 %933 }
 0x1e6   :  { %1544 = vst.msk [vmem:[#allocation3 + $0xc] sm:$0xf] %vm669_vm6, %v1522_v33  ;;  %v1034_v33 = vld [vmem:[#allocation2 + $0x142] ss:$2 sm:$0xf] }
 0x1e7   :  { %956 = vst.msk [vmem:[#allocation3 + $0x10] sm:$0xf] %vm953_vm0, %v934_v34  ;;  %545 = vrot.lane.b32.xlu1 %v522_v35, %s4212_s17  ;;  %1475 = vrot.lane.b32.xlu0 %v1452_v38, %s4213_s18  ;;  %v1672_v34 = vld [vmem:[#allocation2 + $0x104] ss:$2 sm:$0xf] }
 0x1e8   :  { %v4140_v35 = vld [vmem:[#allocation3] ss:$8 sps:$4 sm:$0xff]  }
 0x1e9   :  { %v1578_v39 = vpop.permute.xlu1 %1577  ;;  %v991_v40 = vpop.permute.xlu0 %990 }
 0x1ea   :  { %1600 = vst.msk [vmem:[#allocation3 + $0xc] sm:$0xf] %vm726_vm7, %v1578_v39 }
 0x1eb   :  { %1013 = vst.msk [vmem:[#allocation3 + $0x10] sm:$0xf] %vm1010_vm1, %v991_v40  ;;  %602 = vrot.lane.b32.xlu1 %v579_v41, %s4213_s18  ;;  %1051 = vrot.lane.b32.xlu0 %v1028_v60, %s4221_s20 }
 0x1ed   :  { %v1634_v43 = vpop.permute.xlu1 %1633  ;;  %v1048_v44 = vpop.permute.xlu0 %1047 }
 0x1ee   :  { %1656 = vst.msk [vmem:[#allocation3 + $0xc] sm:$0xf] %vm783_vm8, %v1634_v43 }
 0x1ef   :  { %1070 = vst.msk [vmem:[#allocation3 + $0x10] sm:$0xf] %vm1067_vm12, %v1048_v44  ;;  %1309 = vrot.lane.b32.xlu1 %v1286_v45, %s4210_s9  ;;  %1055 = vrot.lane.b32.xlu0 %v1032_v46, %s4221_s20  ;;  %v1506_v45 = vld [vmem:[#allocation2 + $0x121] ss:$2 sm:$0xf] }
 0x1f0   :  { %v1676_v46 = vld [vmem:[#allocation2 + $0x144] ss:$2 sm:$0xf] }
 0x1f1   :  { %v1690_v47 = vpop.permute.xlu1 %1689  ;;  %v1105_v49 = vpop.permute.xlu0 %1104 }
 0x1f2   :  { %1712 = vst.msk [vmem:[#allocation3 + $0xc] sm:$0xf] %vm840_vm9, %v1690_v47  ;;  %v1510_v47 = vld [vmem:[#allocation2 + $0x161] ss:$2 sm:$0xf] }
 0x1f3   :  { %1127 = vst.msk [vmem:[#allocation3 + $0x10] sm:$0xf] %vm1124_vm13, %v1105_v49  ;;  %1365 = vrot.lane.b32.xlu1 %v1342_v50, %s4211_s12  ;;  %1527 = vrot.lane.b32.xlu0 %v1504_v52, %s4214_s21 }
 0x1f5   :  { %v1302_v53 = vpop.permute.xlu1 %1301  ;;  %v1162_v55 = vpop.permute.xlu0 %1161 }
 0x1f6   :  { %1322 = vst.msk [vmem:[#allocation3 + $0x1c] sm:$0xf] %vm441_vm2, %v1302_v53 }
 0x1f7   :  { %1184 = vst.msk [vmem:[#allocation3 + $0x10] sm:$0xf] %vm1181_vm14, %v1162_v55  ;;  %1421 = vrot.lane.b32.xlu1 %v1398_v18, %s4212_s17  ;;  %1531 = vrot.lane.b32.xlu0 %v1508_v56, %s4214_s21  ;;  %v1087_v55 = vld [vmem:[#allocation2 + $0x103] ss:$2 sm:$0xf] }
 0x1f9   :  { %v1358_v27 = vpop.permute.xlu1 %1357  ;;  %v1300_v32 = vpop.permute.xlu0 %1299  ;;  %v4142_v38 = vld [vmem:[#allocation3 + $0x4] ss:$8 sps:$4 sm:$0xff]  }
 0x1fa   :  { %1378 = vst.msk [vmem:[#allocation3 + $0x1c] sm:$0xf] %vm498_vm3, %v1358_v27  ;;  %v1091_v27 = vld [vmem:[#allocation2 + $0x143] ss:$2 sm:$0xf] }
 0x1fb   :  { %1321 = vst.msk [vmem:[#allocation3 + $0x14] sm:$0xf] %vm441_vm2, %v1300_v32  ;;  %659 = vrot.lane.b32.xlu1 %v636_v58, %s4214_s21  ;;  %1108 = vrot.lane.b32.xlu0 %v1085_v37, %s4222_s1  ;;  %v1562_v37 = vld [vmem:[#allocation2 + $0x122] ss:$2 sm:$0xf] }
 0x1fd   :  { %v1414_v61 = vpop.permute.xlu1 %1413  ;;  %v1356_v62 = vpop.permute.xlu0 %1355 }
 0x1fe   :  { %1434 = vst.msk [vmem:[#allocation3 + $0x1c] sm:$0xf] %vm555_vm4, %v1414_v61  ;;  %v1566_v61 = vld [vmem:[#allocation2 + $0x162] ss:$2 sm:$0xf] }
 0x1ff   :  { %1377 = vst.msk [vmem:[#allocation3 + $0x14] sm:$0xf] %vm498_vm3, %v1356_v62  ;;  %716 = vrot.lane.b32.xlu1 %v693_v0, %s4215_s23  ;;  %1112 = vrot.lane.b32.xlu0 %v1089_v4, %s4222_s1 }
 0x200   :  { %1490 = vst.msk [vmem:[#allocation3 + $0x1c] sm:$0xf] %vm612_vm5, %v4533_v51  ;;  %v1560_v51 = vld [vmem:[#allocation2 + $0x102] ss:$2 sm:$0xf] }
 0x201   :  { %1546 = vst.msk [vmem:[#allocation3 + $0x1c] sm:$0xf] %vm669_vm6, %v4540_v57  ;;  %v4806_v5 = vpop.permute.xlu1 %1220  ;;  %v1412_v6 = vpop.permute.xlu0 %1411 }
 0x202   :  { %1602 = vst.msk [vmem:[#allocation3 + $0x1c] sm:$0xf] %vm726_vm7, %v4546_v63 }
 0x203   :  { %1658 = vst.msk [vmem:[#allocation3 + $0x1c] sm:$0xf] %vm783_vm8, %v4550_v3  ;;  %773 = vrot.lane.b32.xlu1 %v750_v9, %s4216_s28  ;;  %1583 = vrot.lane.b32.xlu0 %v1560_v51, %s4215_s23  ;;  %v807_v3 = vld [vmem:[#allocation2 + $0x133] ss:$2 sm:$0xf] }
 0x204   :  { %1433 = vst.msk [vmem:[#allocation3 + $0x14] sm:$0xf] %vm555_vm4, %v1412_v6  ;;  %v1144_v6 = vld [vmem:[#allocation2 + $0x104] ss:$2 sm:$0xf] }
 0x205   :  { %1714 = vst.msk [vmem:[#allocation3 + $0x1c] sm:$0xf] %vm840_vm9, %v4556_v8  ;;  %v652_v57 = vpop.permute.xlu1 %651  ;;  %v1219_v63 = vpop.permute.xlu0 %1218  ;;  %v1564_v8 = vld [vmem:[#allocation2 + $0x142] ss:$2 sm:$0xf] }
 0x206   :  { %1489 = vst.msk [vmem:[#allocation3 + $0x14] sm:$0xf] %vm612_vm5, %v4747_v12  ;;  %v1142_v12 = vld [vmem:[#allocation2 + $0xe4] ss:$2 sm:$0xf] }
 0x207   :  { %1545 = vst.msk [vmem:[#allocation3 + $0x14] sm:$0xf] %vm669_vm6, %v4752_v14  ;;  %673 = vst.msk [vmem:[#allocation3 + $0x18] sm:$0xf] %vm669_vm6, %v652_v57  ;;  %830 = vrot.lane.b32.xlu1 %v807_v3, %s4217_s29  ;;  %1587 = vrot.lane.b32.xlu0 %v1564_v8, %s4215_s23 }
 0x208   :  { %1601 = vst.msk [vmem:[#allocation3 + $0x14] sm:$0xf] %vm726_vm7, %v4757_v16  ;;  %v1146_v14 = vld [vmem:[#allocation2 + $0x124] ss:$2 sm:$0xf] }
 0x209   :  { %1657 = vst.msk [vmem:[#allocation3 + $0x14] sm:$0xf] %vm783_vm8, %v4762_v21  ;;  %v709_v26 = vpop.permute.xlu1 %708  ;;  %v430_v31 = vpop.permute.xlu0 %429  ;;  %v977_v16 = vld [vmem:[#allocation2 + $0x141] ss:$2 sm:$0xf] }
 0x20a   :  { %1241 = vst.msk [vmem:[#allocation3 + $0x10] sm:$0xf] %vm1238_vm11, %v1219_v63  ;;  %v1450_v21 = vld [vmem:[#allocation2 + $0x120] ss:$2 sm:$0xf] }
 0x20b   :  { %1713 = vst.msk [vmem:[#allocation3 + $0x14] sm:$0xf] %vm840_vm9, %v4767_v28  ;;  %887 = vrot.lane.b32.xlu1 %v864_v10, %s4218_s11  ;;  %1165 = vrot.lane.b32.xlu0 %v1142_v12, %s4223_s22  ;;  %v1148_v57 = vld [vmem:[#allocation2 + $0x144] ss:$2 sm:$0xf]  ;;  %s4229_s11 = smov [#allocation6]  }
 0x20c   :  { %730 = vst.msk [vmem:[#allocation3 + $0x18] sm:$0xf] %vm726_vm7, %v709_v26  ;;  %v1618_v8 = vld [vmem:[#allocation2 + $0x123] ss:$2 sm:$0xf] }
 0x20d   :  { %448 = vst.msk [vmem:[#allocation3 + $0x30] sm:$0xf] %vm441_vm2, %v430_v31  ;;  %v766_v36 = vpop.permute.xlu1 %765  ;;  %v487_v42 = vpop.permute.xlu0 %486  ;;  %v1622_v26 = vld [vmem:[#allocation2 + $0x163] ss:$2 sm:$0xf] }
 0x20e   :  { %787 = vst.msk [vmem:[#allocation3 + $0x18] sm:$0xf] %vm783_vm8, %v766_v36 }
 0x20f   :  { %505 = vst.msk [vmem:[#allocation3 + $0x30] sm:$0xf] %vm498_vm3, %v487_v42  ;;  %996 = vrot.lane.b32.xlu1 %v973_v13, %s4220_s19  ;;  %1169 = vrot.lane.b32.xlu0 %v1146_v14, %s4223_s22  ;;  %v1201_v42 = vld [vmem:[#allocation2 + $0x110] ss:$2 sm:$0xf] }
 0x211   :  { %v823_v48 = vpop.permute.xlu1 %822  ;;  %v544_v15 = vpop.permute.xlu0 %543 }
 0x212   :  { %844 = vst.msk [vmem:[#allocation3 + $0x18] sm:$0xf] %vm840_vm9, %v823_v48  ;;  %v4145_v40 = vld [vmem:[#allocation3 + $0x14] ss:$8 sps:$4 sm:$0xff]  }
 0x213   :  { %562 = vst.msk [vmem:[#allocation3 + $0x30] sm:$0xf] %vm555_vm4, %v544_v15  ;;  %1000 = vrot.lane.b32.xlu1 %v977_v16, %s4220_s19  ;;  %1639 = vrot.lane.b32.xlu0 %v1616_v17, %s4216_s28  ;;  %v1752_v43 = vpack.c.bf16 %v4145_v40, %v4142_v38  ;;  %v1205_v48 = vld [vmem:[#allocation2 + $0x150] ss:$2 sm:$0xf]  ;;  %s3699_s19 = sshll.u32 %s4229_s11, 4  ;;  %s3700_s19 = int_to_ptr.vmem [resolvable:$true] %s3699_s19 }
 0x214   :  { %v1674_v17 = vld [vmem:[#allocation2 + $0x124] ss:$2 sm:$0xf]  ;;  %p4190_p1 = scmp.lt.s32.totalorder %s3700_s19, %s3700_s19 }
 0x215   :  { %v880_v19 = vpop.permute.xlu1 %879  ;;  %v601_v20 = vpop.permute.xlu0 %600  ;;  %3969 = vmatprep.mubr.msk.bf16.mxu1 %vm1855_vm15, %v1752_v43 }
 0x216   :  { %901 = vst.msk [vmem:[#allocation3 + $0x18] sm:$0xf] %vm897_vm10, %v880_v19  ;;  %v1678_v19 = vld [vmem:[#allocation2 + $0x164] ss:$2 sm:$0xf] }
 0x217   :  { %619 = vst.msk [vmem:[#allocation3 + $0x30] sm:$0xf] %vm612_vm5, %v601_v20  ;;  %1473 = vrot.lane.b32.xlu1 %v1450_v21, %s4213_s18  ;;  %1643 = vrot.lane.b32.xlu0 %v1620_v22, %s4216_s28 }
 0x218   :  { %957 = vst.msk [vmem:[#allocation3 + $0x18] sm:$0xf] %vm953_vm0, %v4706_v54  ;;  %v1199_v54 = vld [vmem:[#allocation2 + $0xf0] ss:$2 sm:$0xf] }
 0x219   :  { %1014 = vst.msk [vmem:[#allocation3 + $0x18] sm:$0xf] %vm1010_vm1, %v4717_v23  ;;  %v4851_v25 = vpop.permute.xlu1 %939  ;;  %v938_v28 = vpop.permute.xlu0 %937 }
 0x21a   :  { %1071 = vst.msk [vmem:[#allocation3 + $0x18] sm:$0xf] %vm1067_vm12, %v4722_v59 }
 0x21b   :  { %1128 = vst.msk [vmem:[#allocation3 + $0x18] sm:$0xf] %vm1124_vm13, %v4727_v1  ;;  %1477 = vrot.lane.b32.xlu1 %v1454_v24, %s4213_s18  ;;  %1222 = vrot.lane.b32.xlu0 %v1199_v54, %s4224_s24  ;;  %v1030_v1 = vld [vmem:[#allocation2 + $0x102] ss:$2 sm:$0xf] }
 0x21c   :  { %958 = vst.msk [vmem:[#allocation3 + $0x20] sm:$0xf] %vm953_vm0, %v938_v28 }
 0x21d   :  { %1185 = vst.msk [vmem:[#allocation3 + $0x18] sm:$0xf] %vm1181_vm14, %v4738_v7  ;;  %v428_v23 = vpop.permute.xlu1 %427  ;;  %v658_v59 = vpop.permute.xlu0 %657 }
 0x21e   :  { %1242 = vst.msk [vmem:[#allocation3 + $0x18] sm:$0xf] %vm1238_vm11, %v4806_v5 }
 0x21f   :  { %447 = vst.msk [vmem:[#allocation3 + $0x28] sm:$0xf] %vm441_vm2, %v428_v23  ;;  %1053 = vrot.lane.b32.xlu1 %v1030_v1, %s4221_s20  ;;  %1226 = vrot.lane.b32.xlu0 %v1203_v29, %s4224_s24 }
 0x220   :  { %676 = vst.msk [vmem:[#allocation3 + $0x30] sm:$0xf] %vm669_vm6, %v658_v59 }
 0x221   :  { %v485_v7 = vpop.permute.xlu1 %484  ;;  %v715_v30 = vpop.permute.xlu0 %714 }
 0x222   :  { %504 = vst.msk [vmem:[#allocation3 + $0x28] sm:$0xf] %vm498_vm3, %v485_v7 }
 0x223   :  { %733 = vst.msk [vmem:[#allocation3 + $0x30] sm:$0xf] %vm726_vm7, %v715_v30  ;;  %1057 = vrot.lane.b32.xlu1 %v1034_v33, %s4221_s20  ;;  %1695 = vrot.lane.b32.xlu0 %v1672_v34, %s4217_s29 }
 0x225   :  { %v4143_v39 = vld [vmem:[#allocation3 + $0x10] ss:$8 sps:$4 sm:$0xff]   ;;  %v542_v41 = vpop.permute.xlu1 %541  ;;  %v772_v60 = vpop.permute.xlu0 %771 }
 0x226   :  { %v1751_v44 = vpack.c.bf16 %v4143_v39, %v4140_v35  ;;  %561 = vst.msk [vmem:[#allocation3 + $0x28] sm:$0xf] %vm555_vm4, %v542_v41 }
 0x227   :  { %790 = vst.msk [vmem:[#allocation3 + $0x30] sm:$0xf] %vm783_vm8, %v772_v60  ;;  %1529 = vrot.lane.b32.xlu1 %v1506_v45, %s4214_s21  ;;  %1699 = vrot.lane.b32.xlu0 %v1676_v46, %s4217_s29  ;;  %v4226_v45 = vmov 1983009808  }
 0x228   :  { %1899 = vmatmul.mubr.bf16.vlgmr.msra.gmra.mrb[0].mxu1 %v1751_v44  ;;  %v1957_v44 = vlaneseq  ;;  %v2050_v46 = vunpack.c.l.s4 %v4226_v45 }
 0x229   :  { %v599_v49 = vpop.permute.xlu1 %598  ;;  %v829_v50 = vpop.permute.xlu0 %828 }
 0x22a   :  { %618 = vst.msk [vmem:[#allocation3 + $0x28] sm:$0xf] %vm612_vm5, %v599_v49 }
 0x22b   :  { %847 = vst.msk [vmem:[#allocation3 + $0x30] sm:$0xf] %vm840_vm9, %v829_v50  ;;  %1533 = vrot.lane.b32.xlu1 %v1510_v47, %s4214_s21  ;;  %v4967_v47 = vshrl.u32 %v1957_v44, 7 }
 0x22d   :  { %v1306_v52 = vpop.permute.xlu1 %1305  ;;  %v886_v53 = vpop.permute.xlu0 %885 }
 0x22e   :  { %1324 = vst.msk [vmem:[#allocation3 + $0x2c] sm:$0xf] %vm441_vm2, %v1306_v52  ;;  %v2051_v52 = vunpack.c.0.s8 %v2050_v46 }
 0x22f   :  { %904 = vst.msk [vmem:[#allocation3 + $0x30] sm:$0xf] %vm897_vm10, %v886_v53  ;;  %1110 = vrot.lane.b32.xlu1 %v1087_v55, %s4222_s1 }
 0x230   :  { %v4972_v55 = vsub.s32 %v2051_v52, %v4967_v47 }
 0x231   :  { %v1362_v18 = vpop.permute.xlu1 %1361  ;;  %v1304_v56 = vpop.permute.xlu0 %1303 }
 0x232   :  { %1380 = vst.msk [vmem:[#allocation3 + $0x2c] sm:$0xf] %vm498_vm3, %v1362_v18 }
 0x233   :  { %1323 = vst.msk [vmem:[#allocation3 + $0x24] sm:$0xf] %vm441_vm2, %v1304_v56  ;;  %1114 = vrot.lane.b32.xlu1 %v1091_v27, %s4222_s1  ;;  %s4185_s1 = scalar_lea.vmem %s3700_s19, 32 }
 0x234   :  { %p4186_p0 = scmp.ne.s32.totalorder %s3700_s19, %s4185_s1  ;;  %p4191_p2 = scmp.lt.s32.totalorder %s4185_s1, %s4185_s1 }
 0x235   :  { %v1418_v32 = vpop.permute.xlu1 %1417  ;;  %v1360_v58 = vpop.permute.xlu0 %1359 }
 0x236   :  { %1436 = vst.msk [vmem:[#allocation3 + $0x2c] sm:$0xf] %vm555_vm4, %v1418_v32  ;;  %p4192_p3 = por %p4191_p2, %p4190_p1 }
 0x237   :  { %1379 = vst.msk [vmem:[#allocation3 + $0x24] sm:$0xf] %vm498_vm3, %v1360_v58  ;;  %1585 = vrot.lane.b32.xlu1 %v1562_v37, %s4215_s23 }
 0x238   :  { %p4193_p4 = pnand %p4192_p3, %p4186_p0 }
 0x239   :  { %v656_v62 = vpop.permute.xlu1 %655  ;;  %v1416_v0 = vpop.permute.xlu0 %1415 }
 0x23a   :  { %675 = vst.msk [vmem:[#allocation3 + $0x28] sm:$0xf] %vm669_vm6, %v656_v62 }
 0x23b   :  { %1435 = vst.msk [vmem:[#allocation3 + $0x24] sm:$0xf] %vm555_vm4, %v1416_v0  ;;  %1589 = vrot.lane.b32.xlu1 %v1566_v61, %s4215_s23 }
 0x23d   :  { %v713_v4 = vpop.permute.xlu1 %712  ;;  %v942_v5 = vpop.permute.xlu0 %941 }
 0x23e   :  { %732 = vst.msk [vmem:[#allocation3 + $0x28] sm:$0xf] %vm726_vm7, %v713_v4 }
 0x23f   :  { %960 = vst.msk [vmem:[#allocation3 + $0x30] sm:$0xf] %vm953_vm0, %v942_v5  ;;  %1167 = vrot.lane.b32.xlu1 %v1144_v6, %s4223_s22 }
 0x241   :  { %v770_v9 = vpop.permute.xlu1 %769  ;;  %v1308_v51 = vpop.permute.xlu0 %1307 }
 0x242   :  { %789 = vst.msk [vmem:[#allocation3 + $0x28] sm:$0xf] %vm783_vm8, %v770_v9 }
 0x243   :  { %1325 = vst.msk [vmem:[#allocation3 + $0x34] sm:$0xf] %vm441_vm2, %v1308_v51  ;;  %1171 = vrot.lane.b32.xlu1 %v1148_v57, %s4223_s22 }
 0x245   :  { %v827_v63 = vpop.permute.xlu1 %826  ;;  %v1364_v3 = vpop.permute.xlu0 %1363 }
 0x246   :  { %846 = vst.msk [vmem:[#allocation3 + $0x28] sm:$0xf] %vm840_vm9, %v827_v63 }
 0x247   :  { %1381 = vst.msk [vmem:[#allocation3 + $0x34] sm:$0xf] %vm498_vm3, %v1364_v3  ;;  %1641 = vrot.lane.b32.xlu1 %v1618_v8, %s4216_s28 }
 0x249   :  { %v884_v31 = vpop.permute.xlu1 %883  ;;  %v1420_v10 = vpop.permute.xlu0 %1419 }
 0x24a   :  { %903 = vst.msk [vmem:[#allocation3 + $0x28] sm:$0xf] %vm897_vm10, %v884_v31 }
 0x24b   :  { %1437 = vst.msk [vmem:[#allocation3 + $0x34] sm:$0xf] %vm555_vm4, %v1420_v10  ;;  %1645 = vrot.lane.b32.xlu1 %v1622_v26, %s4216_s28 }
 0x24c   :  { %959 = vst.msk [vmem:[#allocation3 + $0x28] sm:$0xf] %vm953_vm0, %v4851_v25 }
 0x24d   :  { %v4904_v12 = vpop.permute.xlu1 %943  ;;  %v995_v36 = vpop.permute.xlu0 %994 }
 0x24e   :  { %1015 = vst.msk [vmem:[#allocation3 + $0x20] sm:$0xf] %vm1010_vm1, %v995_v36 }
 0x24f   :  { %1224 = vrot.lane.b32.xlu1 %v1201_v42, %s4224_s24 }
 0x251   :  { %v432_v13 = vpop.permute.xlu1 %431  ;;  %v999_v14 = vpop.permute.xlu0 %998 }
 0x252   :  { %449 = vst.msk [vmem:[#allocation3 + $0x38] sm:$0xf] %vm441_vm2, %v432_v13 }
 0x253   :  { %1017 = vst.msk [vmem:[#allocation3 + $0x30] sm:$0xf] %vm1010_vm1, %v999_v14  ;;  %1228 = vrot.lane.b32.xlu1 %v1205_v48, %s4224_s24 }
 0x255   :  { %v489_v15 = vpop.permute.xlu1 %488  ;;  %v1472_v16 = vpop.permute.xlu0 %1471 }
 0x256   :  { %506 = vst.msk [vmem:[#allocation3 + $0x38] sm:$0xf] %vm498_vm3, %v489_v15 }
 0x257   :  { %1491 = vst.msk [vmem:[#allocation3 + $0x24] sm:$0xf] %vm612_vm5, %v1472_v16  ;;  %1697 = vrot.lane.b32.xlu1 %v1674_v17, %s4217_s29 }
 0x259   :  { %v546_v20 = vpop.permute.xlu1 %545  ;;  %v1476_v21 = vpop.permute.xlu0 %1475 }
 0x25a   :  { %563 = vst.msk [vmem:[#allocation3 + $0x38] sm:$0xf] %vm555_vm4, %v546_v20 }
 0x25b   :  { %1493 = vst.msk [vmem:[#allocation3 + $0x34] sm:$0xf] %vm612_vm5, %v1476_v21  ;;  %1701 = vrot.lane.b32.xlu1 %v1678_v19, %s4217_s29 }
 0x25d   :  { %v603_v22 = vpop.permute.xlu1 %602  ;;  %v1052_v24 = vpop.permute.xlu0 %1051 }
 0x25e   :  { %620 = vst.msk [vmem:[#allocation3 + $0x38] sm:$0xf] %vm612_vm5, %v603_v22 }
 0x25f   :  { %1072 = vst.msk [vmem:[#allocation3 + $0x20] sm:$0xf] %vm1067_vm12, %v1052_v24 }
 0x261   :  { %v1310_v25 = vpop.permute.xlu1 %1309  ;;  %v1056_v28 = vpop.permute.xlu0 %1055 }
 0x262   :  { %1326 = vst.msk [vmem:[#allocation3 + $0x3c] sm:$0xf] %vm441_vm2, %v1310_v25  ;;  %vm1917_vm2 = vcmask 130048  }
 0x263   :  { %1074 = vst.msk [vmem:[#allocation3 + $0x30] sm:$0xf] %vm1067_vm12, %v1056_v28 }
 0x264   :  { %1987 = vst.msk [vmem:[#allocation4] sm:$0xff] %vm1917_vm2, %v4209_v2  ;;  %1988 = vst.msk [vmem:[#allocation4 + $0x8] sm:$0xff] %vm1917_vm2, %v4209_v2 }
 0x265   :  { %v1366_v54 = vpop.permute.xlu1 %1365  ;;  %v1528_v23 = vpop.permute.xlu0 %1527  ;;  %1989 = vst.msk [vmem:[#allocation4 + $0x10] sm:$0xff] %vm1917_vm2, %v4209_v2  ;;  %1990 = vst.msk [vmem:[#allocation4 + $0x18] sm:$0xff] %vm1917_vm2, %v4209_v2 }
 0x266   :  { %1382 = vst.msk [vmem:[#allocation3 + $0x3c] sm:$0xf] %vm498_vm3, %v1366_v54  ;;  %vm2032_vm3 = vcmask 123904  }
 0x267   :  { %1547 = vst.msk [vmem:[#allocation3 + $0x24] sm:$0xf] %vm669_vm6, %v1528_v23 }
 0x268   :  { %1991 = vst.msk [vmem:[#allocation4 + $0x20] sm:$0xff] %vm1917_vm2, %v4209_v2  ;;  %1992 = vst.msk [vmem:[#allocation4 + $0x28] sm:$0xff] %vm1917_vm2, %v4209_v2 }
 0x269   :  { %v1422_v59 = vpop.permute.xlu1 %1421  ;;  %v1532_v1 = vpop.permute.xlu0 %1531  ;;  %1993 = vst.msk [vmem:[#allocation4 + $0x30] sm:$0xff] %vm1917_vm2, %v4209_v2  ;;  %1995 = vst.msk [vmem:[#allocation4 + $0x40] sm:$0xff] %vm1917_vm2, %v4209_v2 }
 0x26a   :  { %1438 = vst.msk [vmem:[#allocation3 + $0x3c] sm:$0xf] %vm555_vm4, %v1422_v59  ;;  %vm2089_vm4 = vcmask 255104  }
 0x26b   :  { %1549 = vst.msk [vmem:[#allocation3 + $0x34] sm:$0xf] %vm669_vm6, %v1532_v1  ;;  %v2038_v53 = vld [vmem:[#allocation4 + $0x1] ss:$2 sm:$0x3] }
 0x26c   :  { %1996 = vst.msk [vmem:[#allocation4 + $0x48] sm:$0xff] %vm1917_vm2, %v4209_v2  ;;  %1997 = vst.msk [vmem:[#allocation4 + $0x50] sm:$0xff] %vm1917_vm2, %v4209_v2  ;;  %v2055_v27 = vrot.slane %v2038_v53, %v4972_v55 }
 0x26d   :  { %v660_v29 = vpop.permute.xlu1 %659  ;;  %v1109_v7 = vpop.permute.xlu0 %1108  ;;  %1998 = vst.msk [vmem:[#allocation4 + $0x58] sm:$0xff] %vm1917_vm2, %v4209_v2  ;;  %1999 = vst.msk [vmem:[#allocation4 + $0x60] sm:$0xff] %vm1917_vm2, %v4209_v2 }
 0x26e   :  { %677 = vst.msk [vmem:[#allocation3 + $0x38] sm:$0xf] %vm669_vm6, %v660_v29  ;;  %2077 = vrot.lane.b32.xlu0 %v2055_v27, %s4211_s12 }
 0x26f   :  { %1129 = vst.msk [vmem:[#allocation3 + $0x20] sm:$0xf] %vm1124_vm13, %v1109_v7 }
 0x270   :  { %2000 = vst.msk [vmem:[#allocation4 + $0x68] sm:$0xff] %vm1917_vm2, %v4209_v2  ;;  %2001 = vst.msk [vmem:[#allocation4 + $0x70] sm:$0xff] %vm1917_vm2, %v4209_v2  ;;  %v2042_v7 = vld [vmem:[#allocation4 + $0x41] ss:$2 sm:$0x3] }
 0x271   :  { %v717_v30 = vpop.permute.xlu1 %716  ;;  %v1113_v33 = vpop.permute.xlu0 %1112  ;;  %v3022_v44 = vld [vmem:[#allocation4 + $0x30] ss:$2 sm:$0x3]  ;;  %v3078_v53 = vld [vmem:[#allocation4 + $0x31] ss:$2 sm:$0x3] }
 0x272   :  { %734 = vst.msk [vmem:[#allocation3 + $0x38] sm:$0xf] %vm726_vm7, %v717_v30  ;;  %v2069_v30 = vrot.slane %v2042_v7, %v4972_v55  ;;  %v3044_v46 = vrot.slane %v3022_v44, %v4972_v55  ;;  %v3100_v27 = vrot.slane %v3078_v53, %v4972_v55 }
 0x273   :  { %1131 = vst.msk [vmem:[#allocation3 + $0x30] sm:$0xf] %vm1124_vm13, %v1113_v33  ;;  %v2449_v33 = vld [vmem:[#allocation4 + $0xc] ss:$2 sm:$0x3] }
 0x274   :  { %2081 = vrot.lane.b32.xlu0 %v2069_v30, %s4211_s12  ;;  %3061 = vrot.lane.b32.xlu1 %v3044_v46, %s4217_s29 }
 0x275   :  { %v774_v34 = vpop.permute.xlu1 %773  ;;  %v1584_v35 = vpop.permute.xlu0 %1583 }
 0x276   :  { %791 = vst.msk [vmem:[#allocation3 + $0x38] sm:$0xf] %vm783_vm8, %v774_v34  ;;  %v2466_v34 = vrot.slane %v2449_v33, %v4972_v55 }
 0x277   :  { %1603 = vst.msk [vmem:[#allocation3 + $0x24] sm:$0xf] %vm726_vm7, %v1584_v35  ;;  %v2453_v35 = vld [vmem:[#allocation4 + $0x4c] ss:$2 sm:$0x3] }
 0x278   :  { %2488 = vrot.lane.b32.xlu0 %v2466_v34, %s4211_s12 }
 0x279   :  { %v831_v38 = vpop.permute.xlu1 %830  ;;  %v1588_v39 = vpop.permute.xlu0 %1587 }
 0x27a   :  { %848 = vst.msk [vmem:[#allocation3 + $0x38] sm:$0xf] %vm840_vm9, %v831_v38  ;;  %v2480_v38 = vrot.slane %v2453_v35, %v4972_v55 }
 0x27b   :  { %1605 = vst.msk [vmem:[#allocation3 + $0x34] sm:$0xf] %vm726_vm7, %v1588_v39  ;;  %v2095_v39 = vld [vmem:[#allocation4 + $0x2] ss:$2 sm:$0x3] }
 0x27c   :  { %2492 = vrot.lane.b32.xlu0 %v2480_v38, %s4211_s12 }
 0x27d   :  { %v888_v40 = vpop.permute.xlu1 %887  ;;  %v1166_v41 = vpop.permute.xlu0 %1165 }
 0x27e   :  { %905 = vst.msk [vmem:[#allocation3 + $0x38] sm:$0xf] %vm897_vm10, %v888_v40  ;;  %v2112_v40 = vrot.slane %v2095_v39, %v4972_v55 }
 0x27f   :  { %1186 = vst.msk [vmem:[#allocation3 + $0x20] sm:$0xf] %vm1181_vm14, %v1166_v41  ;;  %v2099_v41 = vld [vmem:[#allocation4 + $0x42] ss:$2 sm:$0x3] }
 0x280   :  { %961 = vst.msk [vmem:[#allocation3 + $0x38] sm:$0xf] %vm953_vm0, %v4904_v12  ;;  %2134 = vrot.lane.b32.xlu0 %v2112_v40, %s4213_s18 }
 0x281   :  { %v997_v60 = vpop.permute.xlu1 %996  ;;  %v1170_v43 = vpop.permute.xlu0 %1169 }
 0x282   :  { %1016 = vst.msk [vmem:[#allocation3 + $0x28] sm:$0xf] %vm1010_vm1, %v997_v60  ;;  %v2152_v60 = vld [vmem:[#allocation4 + $0x3] ss:$2 sm:$0x3] }
 0x283   :  { %1188 = vst.msk [vmem:[#allocation3 + $0x30] sm:$0xf] %vm1181_vm14, %v1170_v43  ;;  %v2126_v43 = vrot.slane %v2099_v41, %v4972_v55  ;;  %v2169_v45 = vrot.slane %v2152_v60, %v4972_v55 }
 0x285   :  { %v1001_v49 = vpop.permute.xlu1 %1000  ;;  %v1640_v50 = vpop.permute.xlu0 %1639  ;;  %2138 = vrot.lane.b32.xlu0 %v2126_v43, %s4213_s18 }
 0x286   :  { %1018 = vst.msk [vmem:[#allocation3 + $0x38] sm:$0xf] %vm1010_vm1, %v1001_v49  ;;  %v3026_v49 = vld [vmem:[#allocation4 + $0x70] ss:$2 sm:$0x3]  ;;  %vm2260_vm1 = vcmask 648704  }
 0x287   :  { %1659 = vst.msk [vmem:[#allocation3 + $0x24] sm:$0xf] %vm783_vm8, %v1640_v50  ;;  %v2156_v50 = vld [vmem:[#allocation4 + $0x43] ss:$2 sm:$0x3]  ;;  %v3058_v52 = vrot.slane %v3026_v49, %v4972_v55 }
 0x289   :  { %v1474_v18 = vpop.permute.xlu1 %1473  ;;  %v1644_v56 = vpop.permute.xlu0 %1643  ;;  %2191 = vrot.lane.b32.xlu0 %v2169_v45, %s4215_s23  ;;  %3065 = vrot.lane.b32.xlu1 %v3058_v52, %s4217_s29 }
 0x28a   :  { %1492 = vst.msk [vmem:[#allocation3 + $0x2c] sm:$0xf] %vm612_vm5, %v1474_v18  ;;  %v2183_v18 = vrot.slane %v2156_v50, %v4972_v55 }
 0x28b   :  { %1661 = vst.msk [vmem:[#allocation3 + $0x34] sm:$0xf] %vm783_vm8, %v1644_v56  ;;  %v2209_v56 = vld [vmem:[#allocation4 + $0x4] ss:$2 sm:$0x3] }
 0x28d   :  { %v1478_v32 = vpop.permute.xlu1 %1477  ;;  %v1223_v58 = vpop.permute.xlu0 %1222  ;;  %2195 = vrot.lane.b32.xlu0 %v2183_v18, %s4215_s23  ;;  %3117 = vrot.lane.b32.xlu1 %v3100_v27, %s4219_s16 }
 0x28e   :  { %1494 = vst.msk [vmem:[#allocation3 + $0x3c] sm:$0xf] %vm612_vm5, %v1478_v32  ;;  %v3082_v32 = vld [vmem:[#allocation4 + $0x71] ss:$2 sm:$0x3]  ;;  %vm2146_vm5 = vcmask 386304  }
 0x28f   :  { %1243 = vst.msk [vmem:[#allocation3 + $0x20] sm:$0xf] %vm1238_vm11, %v1223_v58  ;;  %v2226_v58 = vrot.slane %v2209_v56, %v4972_v55 }
 0x291   :  { %v1054_v37 = vpop.permute.xlu1 %1053  ;;  %v1227_v61 = vpop.permute.xlu0 %1226  ;;  %2248 = vrot.lane.b32.xlu0 %v2226_v58, %s4217_s29 }
 0x292   :  { %1073 = vst.msk [vmem:[#allocation3 + $0x28] sm:$0xf] %vm1067_vm12, %v1054_v37  ;;  %v2213_v37 = vld [vmem:[#allocation4 + $0x44] ss:$2 sm:$0x3] }
 0x293   :  { %1245 = vst.msk [vmem:[#allocation3 + $0x30] sm:$0xf] %vm1238_vm11, %v1227_v61  ;;  %v3114_v61 = vrot.slane %v3082_v32, %v4972_v55 }
 0x295   :  { %v1058_v62 = vpop.permute.xlu1 %1057  ;;  %v1696_v0 = vpop.permute.xlu0 %1695  ;;  %3121 = vrot.lane.b32.xlu1 %v3114_v61, %s4219_s16 }
 0x296   :  { %1075 = vst.msk [vmem:[#allocation3 + $0x38] sm:$0xf] %vm1067_vm12, %v1058_v62  ;;  %v3134_v62 = vld [vmem:[#allocation4 + $0x32] ss:$2 sm:$0x3]  ;;  %vm2317_vm12 = vcmask 779904  }
 0x297   :  { %1715 = vst.msk [vmem:[#allocation3 + $0x24] sm:$0xf] %vm840_vm9, %v1696_v0  ;;  %v2240_v0 = vrot.slane %v2213_v37, %v4972_v55 }
 0x299   :  { %v1530_v4 = vpop.permute.xlu1 %1529  ;;  %v1700_v5 = vpop.permute.xlu0 %1699  ;;  %2252 = vrot.lane.b32.xlu0 %v2240_v0, %s4217_s29  ;;  %v1959_v0 = vsub.s32 0, %v4967_v47 }
 0x29a   :  { %1548 = vst.msk [vmem:[#allocation3 + $0x2c] sm:$0xf] %vm669_vm6, %v1530_v4  ;;  %v2266_v4 = vld [vmem:[#allocation4 + $0x8] ss:$2 sm:$0x3] }
 0x29b   :  { %1717 = vst.msk [vmem:[#allocation3 + $0x34] sm:$0xf] %vm840_vm9, %v1700_v5  ;;  %v3156_v5 = vrot.slane %v3134_v62, %v4972_v55  ;;  %v1915_v62 = vld [vmem:[%s5456_s5 + $0x1] sm:$0x1] }
 0x29d   :  { %v1534_v6 = vpop.permute.xlu1 %1533  ;;  %3173 = vrot.lane.b32.xlu1 %v3156_v5, %s4221_s20 }
 0x29e   :  { %1550 = vst.msk [vmem:[#allocation3 + $0x3c] sm:$0xf] %vm669_vm6, %v1534_v6  ;;  %v3138_v6 = vld [vmem:[#allocation4 + $0x72] ss:$2 sm:$0x3]  ;;  %vm2203_vm6 = vcmask 517504  }
 0x2a1   :  { %v1111_v9 = vpop.permute.xlu1 %1110 }
 0x2a2   :  { %1130 = vst.msk [vmem:[#allocation3 + $0x28] sm:$0xf] %vm1124_vm13, %v1111_v9  ;;  %v2283_v9 = vrot.slane %v2266_v4, %v4972_v55 }
 0x2a4   :  { %2305 = vrot.lane.b32.xlu0 %v2283_v9, %s4219_s16  ;;  %v1916_v9 = vld [vmem:[%s5456_s5 + $0x2] sm:$0x1] }
 0x2a5   :  { %v1115_v51 = vpop.permute.xlu1 %1114 }
 0x2a6   :  { %1132 = vst.msk [vmem:[#allocation3 + $0x38] sm:$0xf] %vm1124_vm13, %v1115_v51  ;;  %v2270_v51 = vld [vmem:[#allocation4 + $0x48] ss:$2 sm:$0x3]  ;;  %vm2374_vm13 = vcmask 911104  }
 0x2a9   :  { %v1586_v57 = vpop.permute.xlu1 %1585 }
 0x2aa   :  { %1604 = vst.msk [vmem:[#allocation3 + $0x2c] sm:$0xf] %vm726_vm7, %v1586_v57  ;;  %v3170_v57 = vrot.slane %v3138_v6, %v4972_v55 }
 0x2ac   :  { %3177 = vrot.lane.b32.xlu1 %v3170_v57, %s4221_s20 }
 0x2ad   :  { %v1590_v63 = vpop.permute.xlu1 %1589 }
 0x2ae   :  { %1606 = vst.msk [vmem:[#allocation3 + $0x3c] sm:$0xf] %vm726_vm7, %v1590_v63  ;;  %v3190_v63 = vld [vmem:[#allocation4 + $0x33] ss:$2 sm:$0x3]  ;;  %vm2016_vm7 = vcmask 125952  }
 0x2b1   :  { %v1168_v3 = vpop.permute.xlu1 %1167 }
 0x2b2   :  { %1187 = vst.msk [vmem:[#allocation3 + $0x28] sm:$0xf] %vm1181_vm14, %v1168_v3  ;;  %v2297_v3 = vrot.slane %v2270_v51, %v4972_v55 }
 0x2b4   :  { %2309 = vrot.lane.b32.xlu0 %v2297_v3, %s4219_s16 }
 0x2b5   :  { %v1172_v8 = vpop.permute.xlu1 %1171 }
 0x2b6   :  { %1189 = vst.msk [vmem:[#allocation3 + $0x38] sm:$0xf] %vm1181_vm14, %v1172_v8  ;;  %v2323_v8 = vld [vmem:[#allocation4 + $0x9] ss:$2 sm:$0x3]  ;;  %vm2431_vm14 = vcmask 1042304  }
 0x2b9   :  { %v1642_v26 = vpop.permute.xlu1 %1641 }
 0x2ba   :  { %1660 = vst.msk [vmem:[#allocation3 + $0x2c] sm:$0xf] %vm783_vm8, %v1642_v26  ;;  %v3212_v26 = vrot.slane %v3190_v63, %v4972_v55 }
 0x2bc   :  { %3229 = vrot.lane.b32.xlu1 %v3212_v26, %s4223_s22 }
 0x2bd   :  { %v1646_v31 = vpop.permute.xlu1 %1645 }
 0x2be   :  { %1662 = vst.msk [vmem:[#allocation3 + $0x3c] sm:$0xf] %vm783_vm8, %v1646_v31  ;;  %v2340_v31 = vrot.slane %v2323_v8, %v4972_v55 }
 0x2c0   :  { %2362 = vrot.lane.b32.xlu0 %v2340_v31, %s4221_s20 }
 0x2c1   :  { %v1225_v10 = vpop.permute.xlu1 %1224 }
 0x2c2   :  { %1244 = vst.msk [vmem:[#allocation3 + $0x28] sm:$0xf] %vm1238_vm11, %v1225_v10  ;;  %v2327_v10 = vld [vmem:[#allocation4 + $0x49] ss:$2 sm:$0x3] }
 0x2c5   :  { %v1229_v12 = vpop.permute.xlu1 %1228 }
 0x2c6   :  { %1246 = vst.msk [vmem:[#allocation3 + $0x38] sm:$0xf] %vm1238_vm11, %v1229_v12  ;;  %v2354_v12 = vrot.slane %v2327_v10, %v4972_v55  ;;  %vm3594_vm11 = vcmask 261120  }
 0x2c8   :  { %2366 = vrot.lane.b32.xlu0 %v2354_v12, %s4221_s20 }
 0x2c9   :  { %v1698_v36 = vpop.permute.xlu1 %1697  ;;  %v4150_v14 = vld [vmem:[#allocation3 + $0x20] ss:$8 sps:$4 sm:$0xff]  }
 0x2ca   :  { %1716 = vst.msk [vmem:[#allocation3 + $0x2c] sm:$0xf] %vm840_vm9, %v1698_v36  ;;  %v2380_v36 = vld [vmem:[#allocation4 + $0xa] ss:$2 sm:$0x3] }
 0x2cd   :  { %v1702_v42 = vpop.permute.xlu1 %1701  ;;  %v4151_v15 = vld [vmem:[#allocation3 + $0x30] ss:$8 sps:$4 sm:$0xff]  }
 0x2ce   :  { %1718 = vst.msk [vmem:[#allocation3 + $0x3c] sm:$0xf] %vm840_vm9, %v1702_v42  ;;  %v1753_v17 = vpack.c.bf16 %v4151_v15, %v4150_v14  ;;  %v2397_v42 = vrot.slane %v2380_v36, %v4972_v55 }
 0x2d0   :  { %2419 = vrot.lane.b32.xlu0 %v2397_v42, %s4223_s22 }
 0x2d1   :  { %v4146_v13 = vld [vmem:[#allocation3 + $0x24] ss:$8 sps:$4 sm:$0xff]  }
 0x2d5   :  { %v4148_v48 = vld [vmem:[#allocation3 + $0x34] ss:$8 sps:$4 sm:$0xff]  }
 0x2d6   :  { %v1754_v16 = vpack.c.bf16 %v4148_v48, %v4146_v13  ;;  %v2384_v13 = vld [vmem:[#allocation4 + $0x4a] ss:$2 sm:$0x3]  ;;  %v2025_v48 = vld [vmem:[#allocation4] ss:$2 sm:$0x3] }
 0x2d7   :  { %v2411_v14 = vrot.slane %v2384_v13, %v4972_v55  ;;  %2033 = vst.msk [vmem:[#allocation5] sm:$0x3] %vm2032_vm3, %v2025_v48 }
 0x2d8   :  { %3970 = vmatprep.mubr.msk.bf16.mxu1 %vm1855_vm15, %v1754_v16  ;;  %v2029_v16 = vld [vmem:[#allocation4 + $0x40] ss:$2 sm:$0x3]  ;;  %vm4228_vm15 = vmmov 0  }
 0x2d9   :  { %1907 = vmatmul.mubr.bf16.gmra.mrb[4].mxu1 %v1753_v17  ;;  %2423 = vrot.lane.b32.xlu0 %v2411_v14, %s4223_s22  ;;  %2035 = vst.msk [vmem:[#allocation5 + $0x10] sm:$0x3] %vm2032_vm3, %v2029_v16  ;;  %v2437_v17 = vld [vmem:[#allocation4 + $0xb] ss:$2 sm:$0x3] }
 0x2da   :  { %2444 = vst.msk [vmem:[#allocation5 + $0x2] sm:$0x3] %vm2032_vm3, %v2437_v17 }
 0x2e0   :  { %v2078_v15 = vpop.permute.xlu0 %2077 }
 0x2e1   :  { %2090 = vst.msk [vmem:[#allocation5] sm:$0x3] %vm2089_vm4, %v2078_v15 }
 0x2fb   :  { %v5000_v19 = vpop.f32.mrb[0].mxu1 }
 0x2fc   :  { %v1933_v20 = vmul.f32 %v5000_v19, %v5000_v19  ;;  %v1902_v21 = vpop.f32.mrb[1].mxu1  ;;  %v1918_v24 = vsel %vm1917_vm2, %v5000_v19, 0.0 }
 0x2fd   :  { %v5004_v22 = vpop.f32.mrb[2].mxu1  ;;  %v2441_v21 = vld [vmem:[#allocation4 + $0x4b] ss:$2 sm:$0x3] }
 0x2fe   :  { %v1919_v25 = vsel %vm1917_vm2, %v5004_v22, 0.0  ;;  %v1934_v28 = vmul.f32 %v5004_v22, %v5004_v22  ;;  %v1905_v54 = vpop.f32.mrb[3].mxu1  ;;  %v1937_v59 = vsel %vm1917_vm2, %v1933_v20, 0.0  ;;  %v2082_v20 = vpop.permute.xlu0 %2081  ;;  %2446 = vst.msk [vmem:[#allocation5 + $0x12] sm:$0x3] %vm2032_vm3, %v2441_v21 }
 0x2ff   :  { %v5012_v23 = vadd.f32 %v1919_v25, %v1918_v24  ;;  %2092 = vst.msk [vmem:[#allocation5 + $0x10] sm:$0x3] %vm2089_vm4, %v2082_v20 }
 0x300   :  { %v1938_v1 = vsel %vm1917_vm2, %v1934_v28, 0.0 }
 0x301   :  { %v5016_v29 = vadd.f32 %v1938_v1, %v1937_v59 }
 0x302   :  { %v2489_v61 = vpop.permute.xlu0 %2488 }
 0x303   :  { %2500 = vst.msk [vmem:[#allocation5 + $0x2] sm:$0x3] %vm2089_vm4, %v2489_v61 }
 0x306   :  { %v2493_v5 = vpop.permute.xlu0 %2492 }
 0x307   :  { %2502 = vst.msk [vmem:[#allocation5 + $0x12] sm:$0x3] %vm2089_vm4, %v2493_v5 }
 0x30a   :  { %v2135_v63 = vpop.permute.xlu0 %2134 }
 0x30b   :  { %2147 = vst.msk [vmem:[#allocation5] sm:$0x3] %vm2146_vm5, %v2135_v63 }
 0x30e   :  { %v2139_v12 = vpop.permute.xlu0 %2138 }
 0x30f   :  { %2149 = vst.msk [vmem:[#allocation5 + $0x10] sm:$0x3] %vm2146_vm5, %v2139_v12 }
 0x3ac   :  { %v1908_v24 = vpop.f32.mrb[4].mxu1 }
 0x3ad   :  { %v1921_v25 = vsel %vm1917_vm2, %v1908_v24, 0.0  ;;  %v1935_v28 = vmul.f32 %v1908_v24, %v1908_v24  ;;  %v1910_v54 = vpop.f32.mrb[5].mxu1 }
 0x3ae   :  { %v1922_v59 = vadd.f32 %v1921_v25, %v5012_v23  ;;  %v1911_v1 = vpop.f32.mrb[6].mxu1 }
 0x3af   :  { %v1940_v7 = vsel %vm1917_vm2, %v1935_v28, 0.0  ;;  %v1923_v30 = vsel %vm1917_vm2, %v1911_v1, 0.0  ;;  %v1936_v33 = vmul.f32 %v1911_v1, %v1911_v1  ;;  %v1913_v34 = vpop.f32.mrb[7].mxu1 }
 0x3b0   :  { %v1941_v35 = vadd.f32 %v1940_v7, %v5016_v29  ;;  %v1924_v38 = vadd.f32 %v1923_v30, %v1922_v59 }
 0x3b1   :  { %v1942_v39 = vsel %vm1917_vm2, %v1936_v33, 0.0 }
 0x3b2   :  { %v1925_v40 = vrot.slane %v1924_v38, 4  ;;  %v1943_v41 = vadd.f32 %v1942_v39, %v1941_v35 }
 0x3b4   :  { %v1926_v60 = vadd.f32 %v1925_v40, %v1924_v38  ;;  %v1944_v43 = vrot.slane %v1943_v41, 4 }
 0x3b6   :  { %v1927_v44 = vrot.slane %v1926_v60, 2  ;;  %v1945_v45 = vadd.f32 %v1944_v43, %v1943_v41 }
 0x3b8   :  { %v1928_v46 = vadd.f32 %v1927_v44, %v1926_v60  ;;  %v1946_v23 = vrot.slane %v1945_v45, 2 }
 0x3ba   :  { %v1929_v49 = vrot.slane %v1928_v46, 1  ;;  %v1947_v50 = vadd.f32 %v1946_v23, %v1945_v45 }
 0x3bc   :  { %v1930_v52 = vadd.f32 %v1929_v49, %v1928_v46  ;;  %v1948_v53 = vrot.slane %v1947_v50, 1 }
 0x3be   :  { %v1932_v18 = vmul.f32 0.03125, %v1930_v52  ;;  %v1949_v56 = vadd.f32 %v1948_v53, %v1947_v50 }
 0x3c0   :  { %v1950_v27 = vmul.f32 0.03125, %v1949_v56  ;;  %v1951_v32 = vmul.f32 %v1932_v18, %v1932_v18 }
 0x3c2   :  { %v1952_v29 = vsub.f32 %v1950_v27, %v1951_v32 }
 0x3c4   :  { %v1953_v58 = vmax.f32 %v1952_v29, 0.0 }
 0x3c6   :  { %v1954_v37 = vadd.f32 1e-05, %v1953_v58 }
 0x3c8   :  { %4183 = vrsqrt.f32 %v1954_v37 }
 0x3d2   :  { %v4184_v4 = vpop.eup %4183 }
 0x3d3   :  { %v1956_v6 = vmul.f32 %v4184_v4, %v1915_v62 }
 0x3d5   :  { %v1960_v51 = vrot.slane %v1956_v6, %v1959_v0  ;;  %v1965_v57 = vmul.f32 %v1956_v6, %v1932_v18 }
 0x3d7   :  { %v1961_v3 = vmul.f32 %v1960_v51, %v5000_v19  ;;  %v1962_v8 = vmul.f32 %v1960_v51, %v5004_v22  ;;  %v1963_v26 = vmul.f32 %v1960_v51, %v1908_v24  ;;  %v1964_v31 = vmul.f32 %v1960_v51, %v1911_v1  ;;  %v2192_v19 = vpop.permute.xlu0 %2191 }
 0x3d8   :  { %v1966_v47 = vsub.f32 %v1916_v9, %v1965_v57  ;;  %2204 = vst.msk [vmem:[#allocation5] sm:$0x3] %vm2203_vm6, %v2192_v19 }
 0x3da   :  { %v1970_v10 = vrot.slane %v1966_v47, %v1959_v0 }
 0x3db   :  { %v2196_v59 = vpop.permute.xlu0 %2195 }
 0x3dc   :  { %v1971_v36 = vadd.f32 %v1970_v10, %v1961_v3  ;;  %v1972_v42 = vadd.f32 %v1970_v10, %v1962_v8  ;;  %v1973_v13 = vadd.f32 %v1970_v10, %v1963_v26  ;;  %v1974_v14 = vadd.f32 %v1970_v10, %v1964_v31  ;;  %2206 = vst.msk [vmem:[#allocation5 + $0x10] sm:$0x3] %vm2203_vm6, %v2196_v59 }
 0x3de   :  { %vm1975_vm8 = vcmp.ge.f32.partialorder %v1971_v36, 0.0  ;;  %vm1976_vm9 = vcmp.ge.f32.partialorder %v1972_v42, 0.0  ;;  %vm1977_vm10 = vcmp.ge.f32.partialorder %v1973_v13, 0.0  ;;  %vm1978_vm0 = vcmp.ge.f32.partialorder %v1974_v14, 0.0 }
 0x3df   :  { %v1979_v22 = vmul.f32 0.2, %v1971_v36  ;;  %v1980_v48 = vmul.f32 0.2, %v1972_v42  ;;  %v1981_v15 = vmul.f32 0.2, %v1973_v13  ;;  %v2249_v7 = vpop.permute.xlu0 %2248 }
 0x3e0   :  { %v1982_v16 = vmul.f32 0.2, %v1974_v14  ;;  %2261 = vst.msk [vmem:[#allocation5] sm:$0x3] %vm2260_vm1, %v2249_v7 }
 0x3e1   :  { %v1983_v17 = vsel %vm1975_vm8, %v1971_v36, %v1979_v22  ;;  %v1984_v20 = vsel %vm1976_vm9, %v1972_v42, %v1980_v48  ;;  %v1985_v21 = vsel %vm1977_vm10, %v1973_v13, %v1981_v15 }
 0x3e2   :  { %v1986_v24 = vsel %vm1978_vm0, %v1974_v14, %v1982_v16  ;;  %v2007_v25 = vcombine.high %v1983_v17, %v1983_v17  ;;  %v2008_v28 = vcombine.high %v1984_v20, %v1984_v20  ;;  %v2009_v54 = vcombine.high %v1985_v21, %v1985_v21  ;;  %2017 = vst.msk [vmem:[#allocation4 + $0x12] sm:$0xf] %vm2016_vm7, %v1983_v17 }
 0x3e3   :  { %2019 = vst.msk [vmem:[#allocation4 + $0x22] sm:$0xf] %vm2016_vm7, %v1984_v20  ;;  %2021 = vst.msk [vmem:[#allocation4 + $0x52] sm:$0xf] %vm2016_vm7, %v1985_v21  ;;  %v2010_v1 = vcombine.high %v1986_v24, %v1986_v24  ;;  %v2253_v38 = vpop.permute.xlu0 %2252 }
 0x3e4   :  { %2023 = vst.msk [vmem:[#allocation4 + $0x62] sm:$0xf] %vm2016_vm7, %v1986_v24  ;;  %2018 = vst.msk [vmem:[#allocation4 + $0x1a] sm:$0xf] %vm2016_vm7, %v2007_v25 }
 0x3e5   :  { %2020 = vst.msk [vmem:[#allocation4 + $0x2a] sm:$0xf] %vm2016_vm7, %v2008_v28  ;;  %2022 = vst.msk [vmem:[#allocation4 + $0x5a] sm:$0xf] %vm2016_vm7, %v2009_v54 }
 0x3e6   :  { %2024 = vst.msk [vmem:[#allocation4 + $0x6a] sm:$0xf] %vm2016_vm7, %v2010_v1 }
 0x3e7   :  { %2263 = vst.msk [vmem:[#allocation5 + $0x10] sm:$0x3] %vm2260_vm1, %v2253_v38  ;;  %v2306_v43 = vpop.permute.xlu0 %2305 }
 0x3e8   :  { %2318 = vst.msk [vmem:[#allocation5] sm:$0x3] %vm2317_vm12, %v2306_v43 }
 0x3e9   :  { %v2504_v30 = vld [vmem:[#allocation4 + $0x10] ss:$2 sm:$0x3]  ;;  %v2040_v33 = vld [vmem:[#allocation4 + $0x11] ss:$2 sm:$0x3] }
 0x3ea   :  { %v2521_v34 = vrot.slane %v2504_v30, %v4972_v55  ;;  %v2062_v35 = vrot.slane %v2040_v33, %v4972_v55  ;;  %v2508_v39 = vld [vmem:[#allocation4 + $0x50] ss:$2 sm:$0x3]  ;;  %v2044_v40 = vld [vmem:[#allocation4 + $0x51] ss:$2 sm:$0x3] }
 0x3eb   :  { %v2535_v41 = vrot.slane %v2508_v39, %v4972_v55  ;;  %v2076_v60 = vrot.slane %v2044_v40, %v4972_v55  ;;  %v2560_v44 = vld [vmem:[#allocation4 + $0x11] ss:$2 sm:$0x3]  ;;  %v2097_v45 = vld [vmem:[#allocation4 + $0x12] ss:$2 sm:$0x3]  ;;  %v2310_v49 = vpop.permute.xlu0 %2309 }
 0x3ec   :  { %2543 = vrot.lane.b32.xlu0 %v2521_v34, %s4213_s18  ;;  %2079 = vrot.lane.b32.xlu1 %v2062_v35, %s4211_s12  ;;  %v2577_v46 = vrot.slane %v2560_v44, %v4972_v55  ;;  %v2119_v23 = vrot.slane %v2097_v45, %v4972_v55  ;;  %v2564_v50 = vld [vmem:[#allocation4 + $0x51] ss:$2 sm:$0x3]  ;;  %v2101_v52 = vld [vmem:[#allocation4 + $0x52] ss:$2 sm:$0x3] }
 0x3ed   :  { %2320 = vst.msk [vmem:[#allocation5 + $0x10] sm:$0x3] %vm2317_vm12, %v2310_v49  ;;  %v2591_v53 = vrot.slane %v2564_v50, %v4972_v55  ;;  %v2133_v18 = vrot.slane %v2101_v52, %v4972_v55  ;;  %v2616_v27 = vld [vmem:[#allocation4 + $0x12] ss:$2 sm:$0x3] }
 0x3ee   :  { %v2506_v32 = vld [vmem:[#allocation4 + $0x20] ss:$2 sm:$0x3]  ;;  %v2633_v29 = vrot.slane %v2616_v27, %v4972_v55  ;;  %v2620_v61 = vld [vmem:[#allocation4 + $0x52] ss:$2 sm:$0x3] }
 0x3ef   :  { %v2363_v56 = vpop.permute.xlu0 %2362  ;;  %v2528_v58 = vrot.slane %v2506_v32, %v4972_v55  ;;  %v2510_v62 = vld [vmem:[#allocation4 + $0x60] ss:$2 sm:$0x3]  ;;  %v2647_v0 = vrot.slane %v2620_v61, %v4972_v55  ;;  %v2154_v9 = vld [vmem:[#allocation4 + $0x13] ss:$2 sm:$0x3] }
 0x3f0   :  { %2547 = vrot.lane.b32.xlu0 %v2535_v41, %s4213_s18  ;;  %2083 = vrot.lane.b32.xlu1 %v2076_v60, %s4211_s12  ;;  %2375 = vst.msk [vmem:[#allocation5] sm:$0x3] %vm2374_vm13, %v2363_v56  ;;  %v2542_v4 = vrot.slane %v2510_v62, %v4972_v55  ;;  %v3020_v6 = vld [vmem:[#allocation4 + $0x20] ss:$2 sm:$0x3]  ;;  %v2176_v57 = vrot.slane %v2154_v9, %v4972_v55 }
 0x3f1   :  { %v3037_v51 = vrot.slane %v3020_v6, %v4972_v55  ;;  %v3024_v3 = vld [vmem:[#allocation4 + $0x60] ss:$2 sm:$0x3]  ;;  %v2158_v8 = vld [vmem:[#allocation4 + $0x53] ss:$2 sm:$0x3] }
 0x3f2   :  { %v2027_v26 = vld [vmem:[#allocation4 + $0x10] ss:$2 sm:$0x3]  ;;  %v3051_v47 = vrot.slane %v3024_v3, %v4972_v55  ;;  %v2190_v10 = vrot.slane %v2158_v8, %v4972_v55  ;;  %v2672_v12 = vld [vmem:[#allocation4 + $0x13] ss:$2 sm:$0x3] }
 0x3f3   :  { %v2367_v37 = vpop.permute.xlu0 %2366  ;;  %2034 = vst.msk [vmem:[#allocation5 + $0x8] sm:$0x3] %vm2032_vm3, %v2027_v26  ;;  %v2031_v31 = vld [vmem:[#allocation4 + $0x50] ss:$2 sm:$0x3]  ;;  %v2689_v48 = vrot.slane %v2672_v12, %v4972_v55 }
 0x3f4   :  { %2599 = vrot.lane.b32.xlu0 %v2577_v46, %s4215_s23  ;;  %2136 = vrot.lane.b32.xlu1 %v2119_v23, %s4213_s18  ;;  %2377 = vst.msk [vmem:[#allocation5 + $0x10] sm:$0x3] %vm2374_vm13, %v2367_v37  ;;  %v2562_v36 = vld [vmem:[#allocation4 + $0x21] ss:$2 sm:$0x3] }
 0x3f5   :  { %2036 = vst.msk [vmem:[#allocation5 + $0x18] sm:$0x3] %vm2032_vm3, %v2031_v31  ;;  %v2840_v42 = vld [vmem:[#allocation4 + $0x19] ss:$2 sm:$0x3]  ;;  %v2584_v15 = vrot.slane %v2562_v36, %v4972_v55 }
 0x3f6   :  { %v2676_v13 = vld [vmem:[#allocation4 + $0x53] ss:$2 sm:$0x3]  ;;  %v2566_v14 = vld [vmem:[#allocation4 + $0x61] ss:$2 sm:$0x3] }
 0x3f7   :  { %v2420_v5 = vpop.permute.xlu0 %2419  ;;  %2847 = vst.msk [vmem:[#allocation5 + $0x4] sm:$0x3] %vm2032_vm3, %v2840_v42  ;;  %v2844_v19 = vld [vmem:[#allocation4 + $0x59] ss:$2 sm:$0x3]  ;;  %v2703_v25 = vrot.slane %v2676_v13, %v4972_v55  ;;  %v2598_v28 = vrot.slane %v2566_v14, %v4972_v55 }
 0x3f8   :  { %2603 = vrot.lane.b32.xlu0 %v2591_v53, %s4215_s23  ;;  %2140 = vrot.lane.b32.xlu1 %v2133_v18, %s4213_s18  ;;  %2432 = vst.msk [vmem:[#allocation5] sm:$0x3] %vm2431_vm14, %v2420_v5  ;;  %v2439_v22 = vld [vmem:[#allocation4 + $0x1b] ss:$2 sm:$0x3] }
 0x3f9   :  { %2849 = vst.msk [vmem:[#allocation5 + $0x14] sm:$0x3] %vm2032_vm3, %v2844_v19  ;;  %2445 = vst.msk [vmem:[#allocation5 + $0xa] sm:$0x3] %vm2032_vm3, %v2439_v22 }
 0x3fa   :  { %v2443_v16 = vld [vmem:[#allocation4 + $0x5b] ss:$2 sm:$0x3]  ;;  %v2842_v17 = vld [vmem:[#allocation4 + $0x29] ss:$2 sm:$0x3] }
 0x3fb   :  { %v2424_v63 = vpop.permute.xlu0 %2423  ;;  %2447 = vst.msk [vmem:[#allocation5 + $0x1a] sm:$0x3] %vm2032_vm3, %v2443_v16  ;;  %2848 = vst.msk [vmem:[#allocation5 + $0xc] sm:$0x3] %vm2032_vm3, %v2842_v17 }
 0x3fc   :  { %2655 = vrot.lane.b32.xlu0 %v2633_v29, %s4217_s29  ;;  %2545 = vrot.lane.b32.xlu1 %v2528_v58, %s4213_s18  ;;  %2434 = vst.msk [vmem:[#allocation5 + $0x10] sm:$0x3] %vm2431_vm14, %v2424_v63  ;;  %v2846_v20 = vld [vmem:[#allocation4 + $0x69] ss:$2 sm:$0x3]  ;;  %v5191_v63 = vpop.permute.xlu1 %3061 }
 0x3fd   :  { %v3244_v21 = vld [vmem:[#allocation4 + $0x24] ss:$2 sm:$0x3]  ;;  %2850 = vst.msk [vmem:[#allocation5 + $0x1c] sm:$0x3] %vm2032_vm3, %v2846_v20 }
 0x3fe   :  { %v3248_v24 = vld [vmem:[#allocation4 + $0x64] ss:$2 sm:$0x3]  ;;  %3251 = vst.msk [vmem:[#allocation5 + $0x6] sm:$0x3] %vm2032_vm3, %v3244_v21 }
 0x3ff   :  { %3253 = vst.msk [vmem:[#allocation5 + $0x16] sm:$0x3] %vm2032_vm3, %v3248_v24  ;;  %v3076_v54 = vld [vmem:[#allocation4 + $0x21] ss:$2 sm:$0x3] }
 0x400   :  { %2659 = vrot.lane.b32.xlu0 %v2647_v0, %s4217_s29  ;;  %2549 = vrot.lane.b32.xlu1 %v2542_v4, %s4213_s18  ;;  %v2211_v59 = vld [vmem:[#allocation4 + $0x14] ss:$2 sm:$0x3]  ;;  %v3093_v1 = vrot.slane %v3076_v54, %v4972_v55  ;;  %v3080_v30 = vld [vmem:[#allocation4 + $0x61] ss:$2 sm:$0x3]  ;;  %v5199_v12 = vpop.permute.xlu1 %3065 }
 0x401   :  { %v2233_v7 = vrot.slane %v2211_v59, %v4972_v55  ;;  %v2215_v33 = vld [vmem:[#allocation4 + $0x54] ss:$2 sm:$0x3]  ;;  %v3107_v34 = vrot.slane %v3080_v30, %v4972_v55  ;;  %v2618_v39 = vld [vmem:[#allocation4 + $0x22] ss:$2 sm:$0x3] }
 0x402   :  { %v2247_v35 = vrot.slane %v2215_v33, %v4972_v55  ;;  %v2728_v38 = vld [vmem:[#allocation4 + $0x14] ss:$2 sm:$0x3]  ;;  %v2640_v41 = vrot.slane %v2618_v39, %v4972_v55  ;;  %v2622_v43 = vld [vmem:[#allocation4 + $0x62] ss:$2 sm:$0x3] }
 0x403   :  { %v2745_v40 = vrot.slane %v2728_v38, %v4972_v55  ;;  %v2732_v60 = vld [vmem:[#allocation4 + $0x54] ss:$2 sm:$0x3]  ;;  %v2654_v45 = vrot.slane %v2622_v43, %v4972_v55  ;;  %v3132_v46 = vld [vmem:[#allocation4 + $0x22] ss:$2 sm:$0x3] }
 0x404   :  { %3059 = vrot.lane.b32.xlu0 %v3037_v51, %s4217_s29  ;;  %2193 = vrot.lane.b32.xlu1 %v2176_v57, %s4215_s23  ;;  %v2759_v44 = vrot.slane %v2732_v60, %v4972_v55  ;;  %v2674_v23 = vld [vmem:[#allocation4 + $0x23] ss:$2 sm:$0x3]  ;;  %v3149_v49 = vrot.slane %v3132_v46, %v4972_v55  ;;  %v3136_v52 = vld [vmem:[#allocation4 + $0x62] ss:$2 sm:$0x3] }
 0x405   :  { %v2696_v50 = vrot.slane %v2674_v23, %v4972_v55  ;;  %v2678_v53 = vld [vmem:[#allocation4 + $0x63] ss:$2 sm:$0x3]  ;;  %v3163_v18 = vrot.slane %v3136_v52, %v4972_v55  ;;  %v2730_v32 = vld [vmem:[#allocation4 + $0x24] ss:$2 sm:$0x3] }
 0x406   :  { %v2710_v56 = vrot.slane %v2678_v53, %v4972_v55  ;;  %v3188_v27 = vld [vmem:[#allocation4 + $0x23] ss:$2 sm:$0x3]  ;;  %v2752_v58 = vrot.slane %v2730_v32, %v4972_v55  ;;  %v2734_v37 = vld [vmem:[#allocation4 + $0x64] ss:$2 sm:$0x3] }
 0x407   :  { %v3205_v29 = vrot.slane %v3188_v27, %v4972_v55  ;;  %v2852_v61 = vld [vmem:[#allocation4 + $0x1a] ss:$2 sm:$0x3]  ;;  %v2766_v62 = vrot.slane %v2734_v37, %v4972_v55  ;;  %v2908_v51 = vld [vmem:[#allocation4 + $0x1b] ss:$2 sm:$0x3] }
 0x408   :  { %3063 = vrot.lane.b32.xlu0 %v3051_v47, %s4217_s29  ;;  %2197 = vrot.lane.b32.xlu1 %v2190_v10, %s4215_s23  ;;  %v2869_v0 = vrot.slane %v2852_v61, %v4972_v55  ;;  %v2856_v4 = vld [vmem:[#allocation4 + $0x5a] ss:$2 sm:$0x3]  ;;  %v2925_v3 = vrot.slane %v2908_v51, %v4972_v55  ;;  %v2912_v26 = vld [vmem:[#allocation4 + $0x5b] ss:$2 sm:$0x3] }
 0x409   :  { %v2451_v5 = vld [vmem:[#allocation4 + $0x1c] ss:$2 sm:$0x3]  ;;  %v2883_v6 = vrot.slane %v2856_v4, %v4972_v55  ;;  %v2854_v31 = vld [vmem:[#allocation4 + $0x2a] ss:$2 sm:$0x3]  ;;  %v2939_v47 = vrot.slane %v2912_v26, %v4972_v55 }
 0x40a   :  { %v2473_v9 = vrot.slane %v2451_v5, %v4972_v55  ;;  %v2455_v57 = vld [vmem:[#allocation4 + $0x5c] ss:$2 sm:$0x3]  ;;  %v2876_v10 = vrot.slane %v2854_v31, %v4972_v55  ;;  %v2858_v42 = vld [vmem:[#allocation4 + $0x6a] ss:$2 sm:$0x3] }
 0x40b   :  { %v2487_v8 = vrot.slane %v2455_v57, %v4972_v55  ;;  %v2964_v36 = vld [vmem:[#allocation4 + $0x1c] ss:$2 sm:$0x3]  ;;  %v2890_v14 = vrot.slane %v2858_v42, %v4972_v55  ;;  %v2910_v22 = vld [vmem:[#allocation4 + $0x2b] ss:$2 sm:$0x3] }
 0x40c   :  { %2711 = vrot.lane.b32.xlu0 %v2689_v48, %s4219_s16  ;;  %2601 = vrot.lane.b32.xlu1 %v2584_v15, %s4215_s23  ;;  %v2981_v13 = vrot.slane %v2964_v36, %v4972_v55  ;;  %v2968_v19 = vld [vmem:[#allocation4 + $0x5c] ss:$2 sm:$0x3]  ;;  %v5207_v48 = vpop.permute.xlu1 %3117  ;;  %v2932_v16 = vrot.slane %v2910_v22, %v4972_v55  ;;  %v2784_v17 = vld [vmem:[#allocation4 + $0x18] ss:$2 sm:$0x3] }
 0x40d   :  { %v2995_v15 = vrot.slane %v2968_v19, %v4972_v55  ;;  %v2914_v20 = vld [vmem:[#allocation4 + $0x6b] ss:$2 sm:$0x3]  ;;  %v2801_v21 = vrot.slane %v2784_v17, %v4972_v55  ;;  %v2966_v54 = vld [vmem:[#allocation4 + $0x2c] ss:$2 sm:$0x3] }
 0x40e   :  { %v2946_v24 = vrot.slane %v2914_v20, %v4972_v55  ;;  %v2970_v30 = vld [vmem:[#allocation4 + $0x6c] ss:$2 sm:$0x3]  ;;  %v2268_v38 = vld [vmem:[#allocation4 + $0x18] ss:$2 sm:$0x3] }
 0x40f   :  { %v2290_v39 = vrot.slane %v2268_v38, %v4972_v55  ;;  %v4152_v60 = vld [vmem:[%s5454_s3 + $0x80] sm:$0xff]   ;;  %v4155_v23 = vld [vmem:[%s5454_s3 + $0x88] sm:$0xff]   ;;  %v2329_v52 = vld [vmem:[#allocation4 + $0x59] ss:$2 sm:$0x3] }
 0x410   :  { %2715 = vrot.lane.b32.xlu0 %v2703_v25, %s4219_s16  ;;  %2605 = vrot.lane.b32.xlu1 %v2598_v28, %s4215_s23  ;;  %v5215_v25 = vpop.permute.xlu1 %3121  ;;  %v2788_v28 = vld [vmem:[#allocation4 + $0x58] ss:$2 sm:$0x3]  ;;  %v4154_v46 = vld [vmem:[%s5454_s3] sm:$0xff]   ;;  %v4156_v53 = vld [vmem:[%s5454_s3 + $0x48] sm:$0xff]  }
 0x411   :  { %v2815_v59 = vrot.slane %v2788_v28, %v4972_v55  ;;  %3551 = vmatpush1.bf16.msra.mxu1 %v4152_v60  ;;  %v4159_v37 = vld [vmem:[%s5454_s3 + $0x50] sm:$0xff]   ;;  %v4163_v51 = vld [vmem:[%s5454_s3 + $0x18] sm:$0xff]   ;;  %v4164_v57 = vld [vmem:[%s5454_s3 + $0xa0] sm:$0xff]  }
 0x412   :  { %3552 = vmatprep.subr.bf16.mxu1 %v4225_v11  ;;  %v4160_v61 = vld [vmem:[%s5454_s3 + $0x10] sm:$0xff]   ;;  %v2786_v31 = vld [vmem:[#allocation4 + $0x28] ss:$2 sm:$0x3]  ;;  %v4173_v28 = vld [vmem:[%s5454_s3 + $0xb8] sm:$0xff]  }
 0x413   :  { %v4167_v36 = vld [vmem:[%s5454_s3 + $0xa8] sm:$0xff]   ;;  %v2808_v22 = vrot.slane %v2786_v31, %v4972_v55  ;;  %v4171_v17 = vld [vmem:[%s5454_s3 + $0x70] sm:$0xff]  }
 0x414   :  { %3115 = vrot.lane.b32.xlu0 %v3093_v1, %s4219_s16  ;;  %2250 = vrot.lane.b32.xlu1 %v2233_v7, %s4217_s29  ;;  %v2988_v1 = vrot.slane %v2966_v54, %v4972_v55  ;;  %v3192_v7 = vld [vmem:[#allocation4 + $0x63] ss:$2 sm:$0x3]  ;;  %v5223_v33 = vpop.permute.xlu1 %3173  ;;  %v4168_v42 = vld [vmem:[%s5454_s3 + $0x68] sm:$0xff]  }
 0x415   :  { %3553 = vmatpush1.bf16.msra.mxu1 %v4155_v23  ;;  %v3246_v20 = vld [vmem:[#allocation4 + $0x34] ss:$2 sm:$0x3] }
 0x416   :  { %3554 = vmatprep.subr.bf16.mxu1 %v4225_v11  ;;  %3252 = vst.msk [vmem:[#allocation5 + $0xe] sm:$0x3] %vm2032_vm3, %v3246_v20 }
 0x418   :  { %3119 = vrot.lane.b32.xlu0 %v3107_v34, %s4219_s16  ;;  %2254 = vrot.lane.b32.xlu1 %v2247_v35, %s4217_s29  ;;  %v3219_v34 = vrot.slane %v3192_v7, %v4972_v55  ;;  %v3002_v35 = vrot.slane %v2970_v30, %v4972_v55  ;;  %v4172_v7 = vld [vmem:[%s5454_s3 + $0x30] sm:$0xff]   ;;  %v4174_v30 = vld [vmem:[%s5454_s3 + $0x78] sm:$0xff]  }
 0x41c   :  { %2767 = vrot.lane.b32.xlu0 %v2745_v40, %s4221_s20  ;;  %2657 = vrot.lane.b32.xlu1 %v2640_v41, %s4217_s29  ;;  %v5230_v40 = vpop.permute.xlu1 %3177  ;;  %v2272_v41 = vld [vmem:[#allocation4 + $0x58] ss:$2 sm:$0x3] }
 0x41d   :  { %v2304_v43 = vrot.slane %v2272_v41, %v4972_v55  ;;  %v4175_v41 = vld [vmem:[%s5454_s3 + $0x38] sm:$0xff]  }
 0x420   :  { %2771 = vrot.lane.b32.xlu0 %v2759_v44, %s4221_s20  ;;  %2661 = vrot.lane.b32.xlu1 %v2654_v45, %s4217_s29  ;;  %v2325_v44 = vld [vmem:[#allocation4 + $0x19] ss:$2 sm:$0x3]  ;;  %v4153_v45 = vld [vmem:[%s5454_s3 + $0x40] sm:$0xff]  }
 0x421   :  { %4014 = vmatprep.subr.bf16.mxu0 %v4153_v45 }
 0x422   :  { %4015 = vmatpush3.bf16.msra.mxu0 %v4154_v46 }
 0x423   :  { %4016 = vmatprep.subr.bf16.mxu0 %v4156_v53 }
 0x424   :  { %3171 = vrot.lane.b32.xlu0 %v3149_v49, %s4221_s20  ;;  %2713 = vrot.lane.b32.xlu1 %v2696_v50, %s4219_s16  ;;  %v5248_v49 = vpop.permute.xlu1 %3229  ;;  %v2347_v50 = vrot.slane %v2325_v44, %v4972_v55  ;;  %v4227_v44 = vmov 0.0|0.0  }
 0x428   :  { %3175 = vrot.lane.b32.xlu0 %v3163_v18, %s4221_s20  ;;  %2717 = vrot.lane.b32.xlu1 %v2710_v56, %s4219_s16  ;;  %v4157_v18 = vld [vmem:[%s5454_s3 + $0x8] sm:$0xff]   ;;  %v4158_v56 = vld [vmem:[%s5454_s3 + $0x90] sm:$0xff]  }
 0x429   :  { %3555 = vmatpush1.bf16.msra.mxu1 %v4158_v56  ;;  %4017 = vmatpush3.bf16.msra.mxu0 %v4157_v18 }
 0x42a   :  { %3556 = vmatprep.subr.bf16.mxu1 %v4225_v11  ;;  %4018 = vmatprep.subr.bf16.mxu0 %v4159_v37 }
 0x42c   :  { %3227 = vrot.lane.b32.xlu0 %v3205_v29, %s4223_s22  ;;  %2769 = vrot.lane.b32.xlu1 %v2752_v58, %s4221_s20  ;;  %v2361_v29 = vrot.slane %v2329_v52, %v4972_v55  ;;  %v2382_v58 = vld [vmem:[#allocation4 + $0x1a] ss:$2 sm:$0x3] }
 0x42d   :  { %v2404_v5 = vrot.slane %v2382_v58, %v4972_v55  ;;  %4019 = vmatpush3.bf16.msra.mxu0 %v4160_v61 }
 0x430   :  { %2773 = vrot.lane.b32.xlu1 %v2766_v62, %s4221_s20  ;;  %2891 = vrot.lane.b32.xlu0 %v2869_v0, %s4211_s12  ;;  %v4161_v62 = vld [vmem:[%s5454_s3 + $0x98] sm:$0xff]  }
 0x431   :  { %3557 = vmatpush1.bf16.msra.mxu1 %v4161_v62 }
 0x432   :  { %3558 = vmatprep.subr.bf16.mxu1 %v4225_v11 }
 0x434   :  { %2895 = vrot.lane.b32.xlu0 %v2883_v6, %s4211_s12  ;;  %2490 = vrot.lane.b32.xlu1 %v2473_v9, %s4211_s12  ;;  %v2386_v6 = vld [vmem:[#allocation4 + $0x5a] ss:$2 sm:$0x3] }
 0x435   :  { %v4162_v9 = vld [vmem:[%s5454_s3 + $0x58] sm:$0xff]   ;;  %3559 = vmatpush1.bf16.msra.mxu1 %v4164_v57  ;;  %v2418_v26 = vrot.slane %v2386_v6, %v4972_v55 }
 0x436   :  { %4020 = vmatprep.subr.bf16.mxu0 %v4162_v9  ;;  %3560 = vmatprep.subr.bf16.mxu1 %v4225_v11 }
 0x437   :  { %4021 = vmatpush3.bf16.msra.mxu0 %v4163_v51 }
 0x438   :  { %2947 = vrot.lane.b32.xlu0 %v2925_v3, %s4213_s18  ;;  %2494 = vrot.lane.b32.xlu1 %v2487_v8, %s4211_s12 }
 0x439   :  { %3561 = vmatpush1.bf16.msra.mxu1 %v4167_v36 }
 0x43a   :  { %3562 = vmatprep.subr.bf16.mxu1 %v4225_v11 }
 0x43c   :  { %2951 = vrot.lane.b32.xlu0 %v2939_v47, %s4213_s18  ;;  %2893 = vrot.lane.b32.xlu1 %v2876_v10, %s4211_s12  ;;  %v4165_v47 = vld [vmem:[%s5454_s3 + $0x60] sm:$0xff]  }
 0x43d   :  { %v4166_v10 = vld [vmem:[%s5454_s3 + $0x20] sm:$0xff]   ;;  %4022 = vmatprep.subr.bf16.mxu0 %v4165_v47 }
 0x43e   :  { %4023 = vmatpush3.bf16.msra.mxu0 %v4166_v10 }
 0x43f   :  { %4024 = vmatprep.subr.bf16.mxu0 %v4168_v42 }
 0x440   :  { %3003 = vrot.lane.b32.xlu0 %v2981_v13, %s4215_s23  ;;  %2897 = vrot.lane.b32.xlu1 %v2890_v14, %s4211_s12  ;;  %v4170_v13 = vld [vmem:[%s5454_s3 + $0xb0] sm:$0xff]  }
 0x441   :  { %3563 = vmatpush1.bf16.msra.mxu1 %v4170_v13 }
 0x442   :  { %3564 = vmatprep.subr.bf16.mxu1 %v4225_v11 }
 0x444   :  { %3007 = vrot.lane.b32.xlu0 %v2995_v15, %s4215_s23  ;;  %2949 = vrot.lane.b32.xlu1 %v2932_v16, %s4213_s18  ;;  %v2790_v15 = vld [vmem:[#allocation4 + $0x68] ss:$2 sm:$0x3] }
 0x445   :  { %v4169_v16 = vld [vmem:[%s5454_s3 + $0x28] sm:$0xff]   ;;  %3565 = vmatpush1.bf16.msra.mxu1 %v4173_v28 }
 0x446   :  { %4025 = vmatpush3.bf16.msra.mxu0 %v4169_v16  ;;  %3566 = vmatprep.subr.bf16.mxu1 %v4225_v11 }
 0x447   :  { %4026 = vmatprep.subr.bf16.mxu0 %v4171_v17 }
 0x448   :  { %2823 = vrot.lane.b32.xlu0 %v2801_v21, %s4223_s22  ;;  %2953 = vrot.lane.b32.xlu1 %v2946_v24, %s4213_s18  ;;  %v3250_v21 = vld [vmem:[#allocation4 + $0x74] ss:$2 sm:$0x3]  ;;  %v3194_v24 = vld [vmem:[#allocation4 + $0x73] ss:$2 sm:$0x3] }
 0x449   :  { %3254 = vst.msk [vmem:[#allocation5 + $0x1e] sm:$0x3] %vm2032_vm3, %v3250_v21 }
 0x44a   :  { %4027 = vmatpush3.bf16.msra.mxu0 %v4172_v7 }
 0x44b   :  { %4028 = vmatprep.subr.bf16.mxu0 %v4174_v30 }
 0x44c   :  { %2827 = vrot.lane.b32.xlu0 %v2815_v59, %s4223_s22  ;;  %3005 = vrot.lane.b32.xlu1 %v2988_v1, %s4215_s23  ;;  %v2822_v1 = vrot.slane %v2790_v15, %v4972_v55 }
 0x44e   :  { %4029 = vmatpush3.bf16.msra.mxu0 %v4175_v41 }
 0x44f   :  { %4084 = vmatprep.subr.bf16.mxu0 %v4227_v44 }
 0x450   :  { %3231 = vrot.lane.b32.xlu0 %v3219_v34, %s4223_s22  ;;  %3009 = vrot.lane.b32.xlu1 %v3002_v35, %s4215_s23  ;;  %v3226_v34 = vrot.slane %v3194_v24, %v4972_v55  ;;  %v4176_v35 = vld [vmem:[%s5454_s3 + $0xc0] sm:$0xff]  }
 0x451   :  { %3567 = vmatpush1.bf16.msra.mxu1 %v4176_v35  ;;  %v3590_v35 = vld [vmem:[%s5455_s4] sm:$0xff] }
 0x454   :  { %2307 = vrot.lane.b32.xlu1 %v2290_v39, %s4219_s16 }
 0x458   :  { %2311 = vrot.lane.b32.xlu1 %v2304_v43, %s4219_s16 }
 0x45c   :  { %2364 = vrot.lane.b32.xlu1 %v2347_v50, %s4221_s20 }
 0x45e   :  { %v2544_v27 = vpop.permute.xlu0 %2543  ;;  %v2080_v32 = vpop.permute.xlu1 %2079 }
 0x45f   :  { %2555 = vst.msk [vmem:[#allocation5 + $0x2] sm:$0x3] %vm2146_vm5, %v2544_v27 }
 0x460   :  { %2091 = vst.msk [vmem:[#allocation5 + $0x8] sm:$0x3] %vm2089_vm4, %v2080_v32  ;;  %2368 = vrot.lane.b32.xlu1 %v2361_v29, %s4221_s20 }
 0x462   :  { %v2548_v0 = vpop.permute.xlu0 %2547  ;;  %v2084_v4 = vpop.permute.xlu1 %2083 }
 0x463   :  { %2557 = vst.msk [vmem:[#allocation5 + $0x12] sm:$0x3] %vm2146_vm5, %v2548_v0 }
 0x464   :  { %2093 = vst.msk [vmem:[#allocation5 + $0x18] sm:$0x3] %vm2089_vm4, %v2084_v4  ;;  %2421 = vrot.lane.b32.xlu1 %v2404_v5, %s4223_s22 }
 0x466   :  { %v2600_v3 = vpop.permute.xlu0 %2599  ;;  %v2137_v8 = vpop.permute.xlu1 %2136 }
 0x467   :  { %2611 = vst.msk [vmem:[#allocation5 + $0x2] sm:$0x3] %vm2203_vm6, %v2600_v3 }
 0x468   :  { %2148 = vst.msk [vmem:[#allocation5 + $0x8] sm:$0x3] %vm2146_vm5, %v2137_v8  ;;  %2425 = vrot.lane.b32.xlu1 %v2418_v26, %s4223_s22 }
 0x46a   :  { %v2604_v14 = vpop.permute.xlu0 %2603  ;;  %v2141_v19 = vpop.permute.xlu1 %2140 }
 0x46b   :  { %2613 = vst.msk [vmem:[#allocation5 + $0x12] sm:$0x3] %vm2203_vm6, %v2604_v14 }
 0x46c   :  { %2150 = vst.msk [vmem:[#allocation5 + $0x18] sm:$0x3] %vm2146_vm5, %v2141_v19  ;;  %2825 = vrot.lane.b32.xlu1 %v2808_v22, %s4223_s22 }
 0x46e   :  { %v2656_v54 = vpop.permute.xlu0 %2655  ;;  %v2546_v59 = vpop.permute.xlu1 %2545 }
 0x46f   :  { %2667 = vst.msk [vmem:[#allocation5 + $0x2] sm:$0x3] %vm2260_vm1, %v2656_v54 }
 0x470   :  { %2829 = vrot.lane.b32.xlu1 %v2822_v1, %s4223_s22 }
 0x472   :  { %v2660_v38 = vpop.permute.xlu0 %2659  ;;  %v2550_v39 = vpop.permute.xlu1 %2549 }
 0x473   :  { %2669 = vst.msk [vmem:[#allocation5 + $0x12] sm:$0x3] %vm2260_vm1, %v2660_v38  ;;  %v3591_v38 = vld [vmem:[%s5455_s4 + $0x8] sm:$0xff] }
 0x474   :  { %3233 = vrot.lane.b32.xlu1 %v3226_v34, %s4223_s22 }
 0x476   :  { %v3060_v60 = vpop.permute.xlu0 %3059  ;;  %v2194_v43 = vpop.permute.xlu1 %2193 }
 0x477   :  { %2205 = vst.msk [vmem:[#allocation5 + $0x8] sm:$0x3] %vm2203_vm6, %v2194_v43 }
 0x47a   :  { %v5348_v45 = vpop.permute.xlu0 %3063  ;;  %v2198_v46 = vpop.permute.xlu1 %2197 }
 0x47b   :  { %2207 = vst.msk [vmem:[#allocation5 + $0x18] sm:$0x3] %vm2203_vm6, %v2198_v46 }
 0x47e   :  { %v2712_v11 = vpop.permute.xlu0 %2711  ;;  %v2602_v23 = vpop.permute.xlu1 %2601 }
 0x47f   :  { %2723 = vst.msk [vmem:[#allocation5 + $0x2] sm:$0x3] %vm2317_vm12, %v2712_v11 }
 0x482   :  { %v2716_v50 = vpop.permute.xlu0 %2715  ;;  %v2606_v52 = vpop.permute.xlu1 %2605 }
 0x483   :  { %2725 = vst.msk [vmem:[#allocation5 + $0x12] sm:$0x3] %vm2317_vm12, %v2716_v50 }
 0x486   :  { %v3116_v53 = vpop.permute.xlu0 %3115  ;;  %v2251_v18 = vpop.permute.xlu1 %2250 }
 0x487   :  { %2262 = vst.msk [vmem:[#allocation5 + $0x8] sm:$0x3] %vm2260_vm1, %v2251_v18 }
 0x48a   :  { %v3120_v56 = vpop.permute.xlu0 %3119  ;;  %v2255_v27 = vpop.permute.xlu1 %2254 }
 0x48b   :  { %2264 = vst.msk [vmem:[#allocation5 + $0x18] sm:$0x3] %vm2260_vm1, %v2255_v27 }
 0x48e   :  { %v2768_v32 = vpop.permute.xlu0 %2767  ;;  %v2658_v29 = vpop.permute.xlu1 %2657 }
 0x48f   :  { %2779 = vst.msk [vmem:[#allocation5 + $0x2] sm:$0x3] %vm2374_vm13, %v2768_v32 }
 0x492   :  { %v2772_v58 = vpop.permute.xlu0 %2771  ;;  %v2662_v37 = vpop.permute.xlu1 %2661 }
 0x493   :  { %2781 = vst.msk [vmem:[#allocation5 + $0x12] sm:$0x3] %vm2374_vm13, %v2772_v58 }
 0x496   :  { %v3172_v61 = vpop.permute.xlu0 %3171  ;;  %v2714_v62 = vpop.permute.xlu1 %2713 }
 0x49a   :  { %v3176_v0 = vpop.permute.xlu0 %3175  ;;  %v2718_v4 = vpop.permute.xlu1 %2717 }
 0x49e   :  { %v3228_v5 = vpop.permute.xlu0 %3227  ;;  %v2770_v6 = vpop.permute.xlu1 %2769 }
 0x4a2   :  { %v2774_v9 = vpop.permute.xlu1 %2773  ;;  %v2892_v51 = vpop.permute.xlu0 %2891 }
 0x4a3   :  { %2903 = vst.msk [vmem:[#allocation5 + $0x4] sm:$0x3] %vm2089_vm4, %v2892_v51 }
 0x4a6   :  { %v2896_v57 = vpop.permute.xlu0 %2895  ;;  %v2491_v3 = vpop.permute.xlu1 %2490 }
 0x4a7   :  { %2905 = vst.msk [vmem:[#allocation5 + $0x14] sm:$0x3] %vm2089_vm4, %v2896_v57  ;;  %2501 = vst.msk [vmem:[#allocation5 + $0xa] sm:$0x3] %vm2089_vm4, %v2491_v3 }
 0x4a8   :  { %2556 = vst.msk [vmem:[#allocation5 + $0xa] sm:$0x3] %vm2146_vm5, %v2546_v59 }
 0x4a9   :  { %2612 = vst.msk [vmem:[#allocation5 + $0xa] sm:$0x3] %vm2203_vm6, %v2602_v23 }
 0x4aa   :  { %2668 = vst.msk [vmem:[#allocation5 + $0xa] sm:$0x3] %vm2260_vm1, %v2658_v29  ;;  %v2948_v8 = vpop.permute.xlu0 %2947  ;;  %v2495_v26 = vpop.permute.xlu1 %2494 }
 0x4ab   :  { %2959 = vst.msk [vmem:[#allocation5 + $0x4] sm:$0x3] %vm2146_vm5, %v2948_v8 }
 0x4ac   :  { %2724 = vst.msk [vmem:[#allocation5 + $0xa] sm:$0x3] %vm2317_vm12, %v2714_v62 }
 0x4ad   :  { %2503 = vst.msk [vmem:[#allocation5 + $0x1a] sm:$0x3] %vm2089_vm4, %v2495_v26 }
 0x4ae   :  { %2558 = vst.msk [vmem:[#allocation5 + $0x1a] sm:$0x3] %vm2146_vm5, %v2550_v39  ;;  %v2952_v31 = vpop.permute.xlu0 %2951  ;;  %v2894_v47 = vpop.permute.xlu1 %2893 }
 0x4af   :  { %2780 = vst.msk [vmem:[#allocation5 + $0xa] sm:$0x3] %vm2374_vm13, %v2770_v6 }
 0x4b0   :  { %2614 = vst.msk [vmem:[#allocation5 + $0x1a] sm:$0x3] %vm2203_vm6, %v2606_v52  ;;  %v3593_v52 = vld [vmem:[%s5455_s4 + $0x18] sm:$0xff] }
 0x4b1   :  { %2670 = vst.msk [vmem:[#allocation5 + $0x1a] sm:$0x3] %vm2260_vm1, %v2662_v37 }
 0x4b2   :  { %2961 = vst.msk [vmem:[#allocation5 + $0x14] sm:$0x3] %vm2146_vm5, %v2952_v31  ;;  %v3004_v10 = vpop.permute.xlu0 %3003  ;;  %v2898_v36 = vpop.permute.xlu1 %2897 }
 0x4b3   :  { %2726 = vst.msk [vmem:[#allocation5 + $0x1a] sm:$0x3] %vm2317_vm12, %v2718_v4 }
 0x4b4   :  { %2904 = vst.msk [vmem:[#allocation5 + $0xc] sm:$0x3] %vm2089_vm4, %v2894_v47  ;;  %2906 = vst.msk [vmem:[#allocation5 + $0x1c] sm:$0x3] %vm2089_vm4, %v2898_v36 }
 0x4b5   :  { %2782 = vst.msk [vmem:[#allocation5 + $0x1a] sm:$0x3] %vm2374_vm13, %v2774_v9 }
 0x4b6   :  { %3015 = vst.msk [vmem:[#allocation5 + $0x4] sm:$0x3] %vm2203_vm6, %v3004_v10  ;;  %v3008_v42 = vpop.permute.xlu0 %3007  ;;  %v2950_v13 = vpop.permute.xlu1 %2949 }
 0x4b7   :  { %3071 = vst.msk [vmem:[#allocation5 + $0x4] sm:$0x3] %vm2260_vm1, %v3060_v60 }
 0x4b8   :  { %3127 = vst.msk [vmem:[#allocation5 + $0x4] sm:$0x3] %vm2317_vm12, %v3116_v53 }
 0x4b9   :  { %3183 = vst.msk [vmem:[#allocation5 + $0x4] sm:$0x3] %vm2374_vm13, %v3172_v61 }
 0x4ba   :  { %3239 = vst.msk [vmem:[#allocation5 + $0x4] sm:$0x3] %vm2431_vm14, %v3228_v5  ;;  %v2824_v14 = vpop.permute.xlu0 %2823  ;;  %v2954_v19 = vpop.permute.xlu1 %2953 }
 0x4bb   :  { %3017 = vst.msk [vmem:[#allocation5 + $0x14] sm:$0x3] %vm2203_vm6, %v3008_v42 }
 0x4bc   :  { %2960 = vst.msk [vmem:[#allocation5 + $0xc] sm:$0x3] %vm2146_vm5, %v2950_v13  ;;  %2962 = vst.msk [vmem:[#allocation5 + $0x1c] sm:$0x3] %vm2146_vm5, %v2954_v19  ;;  %v3668_v13 = vld [vmem:[%s5456_s5 + $0x3] sm:$0x1] }
 0x4bd   :  { %3073 = vst.msk [vmem:[#allocation5 + $0x14] sm:$0x3] %vm2260_vm1, %v5348_v45  ;;  %v4085_v45 = vpack.c.bf16 %v3591_v38, %v3590_v35 }
 0x4be   :  { %3129 = vst.msk [vmem:[#allocation5 + $0x14] sm:$0x3] %vm2317_vm12, %v3120_v56  ;;  %v2828_v22 = vpop.permute.xlu0 %2827  ;;  %v3006_v15 = vpop.permute.xlu1 %3005 }
 0x4bf   :  { %3185 = vst.msk [vmem:[#allocation5 + $0x14] sm:$0x3] %vm2374_vm13, %v3176_v0 }
 0x4c0   :  { %2835 = vst.msk [vmem:[#allocation5 + $0x2] sm:$0x3] %vm2431_vm14, %v2824_v14  ;;  %2837 = vst.msk [vmem:[#allocation5 + $0x12] sm:$0x3] %vm2431_vm14, %v2828_v22 }
 0x4c1   :  { %3016 = vst.msk [vmem:[#allocation5 + $0xc] sm:$0x3] %vm2203_vm6, %v3006_v15 }
 0x4c2   :  { %3072 = vst.msk [vmem:[#allocation5 + $0xc] sm:$0x3] %vm2260_vm1, %v5191_v63  ;;  %v3232_v16 = vpop.permute.xlu0 %3231  ;;  %v3010_v17 = vpop.permute.xlu1 %3009 }
 0x4c3   :  { %3128 = vst.msk [vmem:[#allocation5 + $0xc] sm:$0x3] %vm2317_vm12, %v5207_v48 }
 0x4c4   :  { %3184 = vst.msk [vmem:[#allocation5 + $0xc] sm:$0x3] %vm2374_vm13, %v5223_v33 }
 0x4c5   :  { %3240 = vst.msk [vmem:[#allocation5 + $0xc] sm:$0x3] %vm2431_vm14, %v5248_v49  ;;  %3241 = vst.msk [vmem:[#allocation5 + $0x14] sm:$0x3] %vm2431_vm14, %v3232_v16 }
 0x4c6   :  { %3018 = vst.msk [vmem:[#allocation5 + $0x1c] sm:$0x3] %vm2203_vm6, %v3010_v17  ;;  %v2308_v63 = vpop.permute.xlu1 %2307 }
 0x4c7   :  { %3074 = vst.msk [vmem:[#allocation5 + $0x1c] sm:$0x3] %vm2260_vm1, %v5199_v12 }
 0x4c8   :  { %3130 = vst.msk [vmem:[#allocation5 + $0x1c] sm:$0x3] %vm2317_vm12, %v5215_v25  ;;  %2319 = vst.msk [vmem:[#allocation5 + $0x8] sm:$0x3] %vm2317_vm12, %v2308_v63 }
 0x4c9   :  { %3186 = vst.msk [vmem:[#allocation5 + $0x1c] sm:$0x3] %vm2374_vm13, %v5230_v40 }
 0x4ca   :  { %v2312_v48 = vpop.permute.xlu1 %2311 }
 0x4cb   :  { %2321 = vst.msk [vmem:[#allocation5 + $0x18] sm:$0x3] %vm2317_vm12, %v2312_v48 }
 0x4cc   :  { %v4179_v28 = vld [vmem:[#allocation5 + $0x4] ss:$8 sps:$4 sm:$0xff]  }
 0x4cd   :  { %v3280_v30 = vrot.slane %v4179_v28, %v4972_v55 }
 0x4ce   :  { %v2365_v33 = vpop.permute.xlu1 %2364 }
 0x4cf   :  { %2376 = vst.msk [vmem:[#allocation5 + $0x8] sm:$0x3] %vm2374_vm13, %v2365_v33 }
 0x4d2   :  { %v2369_v49 = vpop.permute.xlu1 %2368 }
 0x4d3   :  { %2378 = vst.msk [vmem:[#allocation5 + $0x18] sm:$0x3] %vm2374_vm13, %v2369_v49 }
 0x4d6   :  { %v2422_v20 = vpop.permute.xlu1 %2421 }
 0x4d7   :  { %2433 = vst.msk [vmem:[#allocation5 + $0x8] sm:$0x3] %vm2431_vm14, %v2422_v20 }
 0x4da   :  { %v2426_v12 = vpop.permute.xlu1 %2425 }
 0x4db   :  { %2435 = vst.msk [vmem:[#allocation5 + $0x18] sm:$0x3] %vm2431_vm14, %v2426_v12 }
 0x4de   :  { %v2826_v25 = vpop.permute.xlu1 %2825 }
 0x4df   :  { %2836 = vst.msk [vmem:[#allocation5 + $0xa] sm:$0x3] %vm2431_vm14, %v2826_v25 }
 0x4e2   :  { %v2830_v40 = vpop.permute.xlu1 %2829 }
 0x4e3   :  { %2838 = vst.msk [vmem:[#allocation5 + $0x1a] sm:$0x3] %vm2431_vm14, %v2830_v40 }
 0x4e6   :  { %v3234_v21 = vpop.permute.xlu1 %3233  ;;  %v4177_v24 = vld [vmem:[#allocation5] ss:$8 sps:$4 sm:$0xff]  }
 0x4e7   :  { %3242 = vst.msk [vmem:[#allocation5 + $0x1c] sm:$0x3] %vm2431_vm14, %v3234_v21  ;;  %v3273_v1 = vrot.slane %v4177_v24, %v4972_v55 }
 0x4ea   :  { %v4180_v54 = vld [vmem:[#allocation5 + $0x10] ss:$8 sps:$4 sm:$0xff]  }
 0x4eb   :  { %v3287_v7 = vrot.slane %v4180_v54, %v4972_v55 }
 0x4ed   :  { %v3295_v39 = vcombine.low %v3273_v1, %v3287_v7  ;;  %v3296_v41 = vcombine.high %v3273_v1, %v3287_v7 }
 0x4ee   :  { %v4182_v59 = vld [vmem:[#allocation5 + $0x14] ss:$8 sps:$4 sm:$0xff]  }
 0x4ef   :  { %v3294_v34 = vrot.slane %v4182_v59, %v4972_v55  ;;  %v3303_v46 = vpack.c.bf16 %v3295_v39, %v3295_v39  ;;  %v3304_v11 = vpack.c.bf16 %v3296_v41, %v3296_v41  ;;  %v3592_v55 = vld [vmem:[%s5455_s4 + $0x10] sm:$0xff] }
 0x4f0   :  { %v4088_v53 = vpack.c.bf16 %v3593_v52, %v3592_v55 }
 0x4f1   :  { %v3297_v60 = vcombine.low %v3280_v30, %v3294_v34  ;;  %v3298_v43 = vcombine.high %v3280_v30, %v3294_v34  ;;  %3542 = vmatprep.mubr.bf16.mxu0 %v3304_v11 }
 0x4f2   :  { %3543 = vmatmul.mubr.bf16.vlgmr.msra.gmra.mrb[16].mxu0 %v3303_v46 }
 0x4f3   :  { %v3306_v23 = vpack.c.bf16 %v3298_v43, %v3298_v43  ;;  %v3305_v50 = vpack.c.bf16 %v3297_v60, %v3297_v60  ;;  %4086 = vmatpush3.bf16.msra.mxu0 %v4085_v45  ;;  %4081 = vmatprep.mubr.msk.f32.mxu0 %vm4228_vm15, %v4209_v2 }
 0x4f4   :  { %4087 = vmatprep.subr.bf16.mxu0 %v4227_v44 }
 0x4f5   :  { %3996 = vmatprep.mubr.msk.bf16.mxu1 %vm1917_vm2, %v3306_v23  ;;  %vm5459_vm2 = vcmask 1043456  }
 0x4f6   :  { %3583 = vmatmul.mubr.bf16.vlgmr.msra.gmra.mrb[8].mxu1 %v3305_v50  ;;  %vm5460_vm3 = vmmov %vm5459_vm2 }
 0x4f7   :  { %4089 = vmatpush3.bf16.msra.mxu0 %v4088_v53 }
 0x5c5   :  { %v4030_v18 = vpop.f32.mrb[16].mxu0 }
 0x5c6   :  { %v4031_v27 = vpop.f32.mrb[17].mxu0 }
 0x5c7   :  { %v4032_v29 = vadd.f32 %v4031_v27, %v4030_v18  ;;  %v4033_v58 = vpop.f32.mrb[18].mxu0 }
 0x5c8   :  { %v4034_v37 = vpop.f32.mrb[19].mxu0 }
 0x5c9   :  { %v3584_v56 = vpop.f32.mrb[8].mxu1 }
 0x5ca   :  { %v3586_v32 = vpop.f32.mrb[9].mxu1  ;;  %v3585_v62 = vadd.f32 %v4032_v29, %v3584_v56 }
 0x5cb   :  { %v3587_v44 = vpop.f32.mrb[10].mxu1 }
 0x5cc   :  { %v3588_v61 = vpop.f32.mrb[11].mxu1  ;;  %4082 = vmatmul.mubr.msk.f32.vlgmr.msra.gmra.mrb[20].mxu0 %vm3594_vm11, %v3585_v62 }
 0x69f   :  { %v3664_v0 = vpop.f32.mrb[20].mxu0 }
 0x6a0   :  { %v3669_v4 = vsel %vm5459_vm2, %v3664_v0, 0.0  ;;  %v3681_v5 = vrot.slane %v3664_v0, 4  ;;  %v4083_v6 = vpop.f32.mrb[21].mxu0 }
 0x6a1   :  { %v3670_v9 = vrot.slane %v3669_v4, 4 }
 0x6a2   :  { %v3683_v2 = vsel %vm5460_vm3, %v3681_v5, 0.0 }
 0x6a3   :  { %v3671_v51 = vadd.f32 %v3670_v9, %v3669_v4  ;;  %v3684_v57 = vrot.slane %v3683_v2, 4 }
 0x6a5   :  { %v3672_v3 = vrot.slane %v3671_v51, 2  ;;  %v3685_v8 = vadd.f32 %v3684_v57, %v3683_v2 }
 0x6a7   :  { %v3673_v26 = vadd.f32 %v3672_v3, %v3671_v51  ;;  %v3686_v31 = vrot.slane %v3685_v8, 2 }
 0x6a9   :  { %v3674_v47 = vrot.slane %v3673_v26, 1  ;;  %v3687_v10 = vadd.f32 %v3686_v31, %v3685_v8 }
 0x6ab   :  { %v3675_v36 = vadd.f32 %v3674_v47, %v3673_v26  ;;  %v3688_v42 = vrot.slane %v3687_v10, 1 }
 0x6ad   :  { %v3677_v14 = vmul.f32 0.25, %v3675_v36  ;;  %v3689_v19 = vadd.f32 %v3688_v42, %v3687_v10 }
 0x6af   :  { %v3678_v22 = vadd.f32 %v3677_v14, %v3668_v13  ;;  %v3690_v15 = vmul.f32 0.25, %v3689_v19 }
 0x6b1   :  { %3679 = vst [vmem:[#allocation6] sm:$0x1] %v3678_v22  ;;  %v3691_v16 = vadd.f32 %v3690_v15, %v3668_v13 }
 0x6b3   :  { %3692 = vst [vmem:[#allocation6 + $0x1] sm:$0x1] %v3691_v16 }
 0x6b4   :  { %4196 = shalt.err (!%p4193_p4)
}
 0x6b5   :  { %s4197_s5 = scalar_lea.hbm %s5457_s6, 32 }
 0x6b6   :  { %p4198_p5 = scmp.ne.s32.totalorder %s5457_s6, %s4197_s5  ;;  %p4201_p6 = scmp.lt.u32.totalorder %s4197_s5, %s5457_s6 }
 0x6b8   :  { %p4203_p7 = pnand %p4201_p6, %p4198_p5 }
 0x6ba   :  { %4206 = shalt.err (!%p4203_p7)
}
 0x6bb   :  { %3702 = dma.vmem_to_hbm [thread:$0]  %s3700_s19, 32, %s5457_s6, [#allocation7]  }
 0x6bc   :  { %4207 = dma.done.wait [#allocation7], 32  }
 0x6bd   :  { %4208 = vsyncadd [#allocation7], 4294967264 }
 0x6be   :  { %3706 = vsyncpa [#allocation7], 1 }

</bundles_post_ra>
